<compile_context>
chip_gen: v6e
topology: v6e:2x2x1
jax: 0.10.0
libtpu: 0.0.40
codegen_flags: <defaults>
</compile_context>

<pallas_src>
import jax
import jax.numpy as jnp
from jax.experimental import pallas as pl
from jax.experimental.pallas import tpu as pltpu

# Layer sizes of Net2514.
DIMS = (98, 512, 512, 256, 64, 16, 2)
F_PAD = 128     # fc1 input features padded 98 -> 128 (zero rows in W1)
OUT_PAD = 128   # fc6 output padded 2 -> 128 (zero cols in W6/b6), lane-dense store


def _mlp_kernel(x_ref,
                w1, b1, w2, b2, w3, b3, w4, b4, w5, b5, w6, b6,
                o_ref):
    """Fused forward pass: fc1..fc5 each followed by ReLU, fc6 linear."""
    h = x_ref[...].astype(jnp.float32)

    def dense(h, w_ref, b_ref, relu):
        # Cast activations to the weight dtype (bf16 weights -> full-rate bf16
        # MXU pass on v6e/v7x); always accumulate in f32.
        y = jnp.dot(h.astype(w_ref.dtype), w_ref[...],
                    preferred_element_type=jnp.float32)
        y = y + b_ref[...].astype(jnp.float32)
        return jnp.maximum(y, 0.0) if relu else y

    h = dense(h, w1, b1, True)    # fc1 + ReLU   (dropout = identity in eval)
    h = dense(h, w2, b2, True)    # fc2 + ReLU
    h = dense(h, w3, b3, True)    # fc3 + ReLU
    h = dense(h, w4, b4, True)    # fc4 + ReLU
    h = dense(h, w5, b5, True)    # fc5 + ReLU
    o_ref[...] = dense(h, w6, b6, False).astype(o_ref.dtype)   # fc6 (padded to 128)


def _choose_bm(batch):
    """Big MXU-friendly batch tiles; >=2 grid steps when the batch allows it
    (v7x shards the 'parallel' axis across its 2 TensorCores).  All choices fit
    comfortably inside the default scoped VMEM on v5e/v6e/v7x."""
    if batch >= 1024:
        return 512
    if batch >= 512:
        return 256
    if batch >= 256:
        return 128
    return max(8, ((batch + 7) // 8) * 8)   # small batch: a single tile


def prepare_params(params, weight_dtype=jnp.float32):
    """Pad fc1 rows 98->128 and fc6 cols 2->128 with zeros; cast weights to
    weight_dtype (biases stay f32).  Numerically identical to the unpadded net."""
    prepped = []
    last = len(params) - 1
    for idx, (w, b) in enumerate(params):
        if idx == 0:
            w = jnp.pad(w, ((0, F_PAD - w.shape[0]), (0, 0)))
        if idx == last:
            w = jnp.pad(w, ((0, 0), (0, OUT_PAD - w.shape[1])))
            b = jnp.pad(b, ((0, 0), (0, OUT_PAD - b.shape[1])))
        prepped.append((w.astype(weight_dtype), b.astype(jnp.float32)))
    return prepped


def net2514_forward(x, prepped_params, *, bm=None):
    """x: (B, 98) float32.  prepped_params: output of prepare_params()."""
    B, F = x.shape
    assert F == DIMS[0]
    if bm is None:
        bm = _choose_bm(B)
    bm = max(8, min(int(bm), 512))
    b_pad = pl.cdiv(B, bm) * bm

    # Zero-pad features 98 -> 128 and the batch up to a multiple of the tile.
    x_pad = jnp.pad(x, ((0, b_pad - B), (0, F_PAD - F)))

    flat_params = []
    param_specs = []
    for (w, b) in prepped_params:
        flat_params += [w, b]
        # Constant index_map: each weight/bias is resident across the grid and
        # only DMA'd once (no per-step refetch).
        param_specs.append(pl.BlockSpec(w.shape, lambda i: (0, 0)))
        param_specs.append(pl.BlockSpec(b.shape, lambda i: (0, 0)))

    x_spec = pl.BlockSpec((bm, F_PAD), lambda i: (i, 0))
    out_spec = pl.BlockSpec((bm, OUT_PAD), lambda i: (i, 0))

    out_padded = pl.pallas_call(
        _mlp_kernel,
        out_shape=jax.ShapeDtypeStruct((b_pad, OUT_PAD), jnp.float32),
        grid_spec=pltpu.PrefetchScalarGridSpec(
            num_scalar_prefetch=0,
            grid=(b_pad // bm,),
            in_specs=[x_spec] + param_specs,
            out_specs=out_spec,
        ),
        compiler_params=pltpu.CompilerParams(
            dimension_semantics=("parallel",),
        ),
    )(x_pad, *flat_params)

    return out_padded[:B, :DIMS[-1]]


def init_params(key):
    """Deterministic init matching nn.Linear's U(-1/sqrt(fan_in), 1/sqrt(fan_in)).
    Weights stored as (in, out), biases as (1, out)."""
    params = []
    for i in range(len(DIMS) - 1):
        fan_in, fan_out = DIMS[i], DIMS[i + 1]
        key, kw, kb = jax.random.split(key, 3)
        bound = 1.0 / jnp.sqrt(jnp.float32(fan_in))
        w = jax.random.uniform(kw, (fan_in, fan_out), jnp.float32, -bound, bound)
        b = jax.random.uniform(kb, (1, fan_out), jnp.float32, -bound, bound)
        params.append((w, b))
    return params


def reference_forward(x, params, cast_dtype=None):
    """Pure-JAX reference.  If cast_dtype is given, mimic the kernel's per-dot
    cast with f32 accumulation (for the bf16-weights check)."""
    h = x
    for i, (w, b) in enumerate(params):
        lhs = h if cast_dtype is None else h.astype(cast_dtype)
        rhs = w if cast_dtype is None else w.astype(cast_dtype)
        h = jnp.dot(lhs, rhs, preferred_element_type=jnp.float32) + b
        if i < len(params) - 1:
            h = jnp.maximum(h, 0.0)
    return h


if __name__ == "__main__":
    key = jax.random.PRNGKey(0)
    key, kx = jax.random.split(key)

    B = 256  # small batch; kernel auto-picks a 128-row tile -> 2 grid steps
    x = jax.random.normal(kx, (B, DIMS[0]), jnp.float32)
    params = init_params(key)

    # f32 weights: tight check against the pure-JAX reference.
    out_f32 = net2514_forward(x, prepare_params(params, jnp.float32))
    out_f32 = jax.block_until_ready(out_f32)
    ref_f32 = reference_forward(x, params)
    assert out_f32.shape == (B, 2), out_f32.shape
    assert jnp.allclose(out_f32, ref_f32, atol=1e-4, rtol=1e-4), "f32 mismatch"

    # bf16 weights (f32 accumulation): check against a matching bf16 reference.
    out_bf16 = net2514_forward(x, prepare_params(params, jnp.bfloat16))
    out_bf16 = jax.block_until_ready(out_bf16)
    ref_bf16 = reference_forward(x, params, cast_dtype=jnp.bfloat16)
    assert out_bf16.shape == (B, 2), out_bf16.shape
    assert jnp.allclose(out_bf16, ref_bf16, atol=2e-2, rtol=2e-2), "bf16 mismatch"

    print("KERNEL_OK")
</pallas_src>

<mosaic_0001>
module attributes {stable_mosaic.version = 11 : i64} {
  func.func @_mlp_kernel(%arg0: i32, %arg1: memref<128x128xf32, #tpu.memory_space<vmem>>, %arg2: memref<128x512xf32, #tpu.memory_space<vmem>>, %arg3: memref<1x512xf32, #tpu.memory_space<vmem>>, %arg4: memref<512x512xf32, #tpu.memory_space<vmem>>, %arg5: memref<1x512xf32, #tpu.memory_space<vmem>>, %arg6: memref<512x256xf32, #tpu.memory_space<vmem>>, %arg7: memref<1x256xf32, #tpu.memory_space<vmem>>, %arg8: memref<256x64xf32, #tpu.memory_space<vmem>>, %arg9: memref<1x64xf32, #tpu.memory_space<vmem>>, %arg10: memref<64x16xf32, #tpu.memory_space<vmem>>, %arg11: memref<1x16xf32, #tpu.memory_space<vmem>>, %arg12: memref<16x128xf32, #tpu.memory_space<vmem>>, %arg13: memref<1x128xf32, #tpu.memory_space<vmem>>, %arg14: memref<128x128xf32, #tpu.memory_space<vmem>>) attributes {dimension_semantics = [#tpu.dimension_semantics<parallel>], iteration_bounds = array<i64: 2>, scalar_prefetch = 0 : i64, scratch_operands = 0 : i64, tpu.core_type = #tpu.core_type<tc>, window_params = [{transform_indices = @transform_0, window_bounds = array<i64: 128, 128>}, {pipeline_mode = #tpu.pipeline_mode<synchronous>, transform_indices = @transform_1, window_bounds = array<i64: 128, 512>}, {pipeline_mode = #tpu.pipeline_mode<synchronous>, transform_indices = @transform_2, window_bounds = array<i64: 1, 512>}, {pipeline_mode = #tpu.pipeline_mode<synchronous>, transform_indices = @transform_3, window_bounds = array<i64: 512, 512>}, {pipeline_mode = #tpu.pipeline_mode<synchronous>, transform_indices = @transform_4, window_bounds = array<i64: 1, 512>}, {pipeline_mode = #tpu.pipeline_mode<synchronous>, transform_indices = @transform_5, window_bounds = array<i64: 512, 256>}, {pipeline_mode = #tpu.pipeline_mode<synchronous>, transform_indices = @transform_6, window_bounds = array<i64: 1, 256>}, {pipeline_mode = #tpu.pipeline_mode<synchronous>, transform_indices = @transform_7, window_bounds = array<i64: 256, 64>}, {pipeline_mode = #tpu.pipeline_mode<synchronous>, transform_indices = @transform_8, window_bounds = array<i64: 1, 64>}, {pipeline_mode = #tpu.pipeline_mode<synchronous>, transform_indices = @transform_9, window_bounds = array<i64: 64, 16>}, {pipeline_mode = #tpu.pipeline_mode<synchronous>, transform_indices = @transform_10, window_bounds = array<i64: 1, 16>}, {pipeline_mode = #tpu.pipeline_mode<synchronous>, transform_indices = @transform_11, window_bounds = array<i64: 16, 128>}, {pipeline_mode = #tpu.pipeline_mode<synchronous>, transform_indices = @transform_12, window_bounds = array<i64: 1, 128>}, {transform_indices = @transform_13, window_bounds = array<i64: 128, 128>}]} {
    %c0 = arith.constant 0 : index
    %c0_0 = arith.constant 0 : index
    %0 = vector.load %arg1[%c0, %c0_0] : memref<128x128xf32, #tpu.memory_space<vmem>>, vector<128x128xf32>
    %c0_1 = arith.constant 0 : index
    %c0_2 = arith.constant 0 : index
    %1 = vector.load %arg2[%c0_1, %c0_2] : memref<128x512xf32, #tpu.memory_space<vmem>>, vector<128x512xf32>
    %cst = arith.constant dense<0.000000e+00> : vector<128x512xf32>
    %2 = tpu.matmul %0, %1, %cst {dimension_numbers = #tpu.dot_dimension_numbers<[1], [0], [0], [1], [0, 0, 1, 1], [], []>} : vector<128x128xf32>, vector<128x512xf32>, vector<128x512xf32> -> vector<128x512xf32>
    %c0_3 = arith.constant 0 : index
    %c0_4 = arith.constant 0 : index
    %3 = vector.load %arg3[%c0_3, %c0_4] : memref<1x512xf32, #tpu.memory_space<vmem>>, vector<1x512xf32>
    %4 = vector.broadcast %3 : vector<1x512xf32> to vector<128x512xf32>
    %5 = arith.addf %2, %4 : vector<128x512xf32>
    %cst_5 = arith.constant 0.000000e+00 : f32
    %6 = vector.broadcast %cst_5 : f32 to vector<128x512xf32>
    %7 = arith.maximumf %5, %6 : vector<128x512xf32>
    %c0_6 = arith.constant 0 : index
    %c0_7 = arith.constant 0 : index
    %8 = vector.load %arg4[%c0_6, %c0_7] : memref<512x512xf32, #tpu.memory_space<vmem>>, vector<512x512xf32>
    %cst_8 = arith.constant dense<0.000000e+00> : vector<128x512xf32>
    %9 = tpu.matmul %7, %8, %cst_8 {dimension_numbers = #tpu.dot_dimension_numbers<[1], [0], [0], [1], [0, 0, 1, 1], [], []>} : vector<128x512xf32>, vector<512x512xf32>, vector<128x512xf32> -> vector<128x512xf32>
    %c0_9 = arith.constant 0 : index
    %c0_10 = arith.constant 0 : index
    %10 = vector.load %arg5[%c0_9, %c0_10] : memref<1x512xf32, #tpu.memory_space<vmem>>, vector<1x512xf32>
    %11 = vector.broadcast %10 : vector<1x512xf32> to vector<128x512xf32>
    %12 = arith.addf %9, %11 : vector<128x512xf32>
    %cst_11 = arith.constant 0.000000e+00 : f32
    %13 = vector.broadcast %cst_11 : f32 to vector<128x512xf32>
    %14 = arith.maximumf %12, %13 : vector<128x512xf32>
    %c0_12 = arith.constant 0 : index
    %c0_13 = arith.constant 0 : index
    %15 = vector.load %arg6[%c0_12, %c0_13] : memref<512x256xf32, #tpu.memory_space<vmem>>, vector<512x256xf32>
    %cst_14 = arith.constant dense<0.000000e+00> : vector<128x256xf32>
    %16 = tpu.matmul %14, %15, %cst_14 {dimension_numbers = #tpu.dot_dimension_numbers<[1], [0], [0], [1], [0, 0, 1, 1], [], []>} : vector<128x512xf32>, vector<512x256xf32>, vector<128x256xf32> -> vector<128x256xf32>
    %c0_15 = arith.constant 0 : index
    %c0_16 = arith.constant 0 : index
    %17 = vector.load %arg7[%c0_15, %c0_16] : memref<1x256xf32, #tpu.memory_space<vmem>>, vector<1x256xf32>
    %18 = vector.broadcast %17 : vector<1x256xf32> to vector<128x256xf32>
    %19 = arith.addf %16, %18 : vector<128x256xf32>
    %cst_17 = arith.constant 0.000000e+00 : f32
    %20 = vector.broadcast %cst_17 : f32 to vector<128x256xf32>
    %21 = arith.maximumf %19, %20 : vector<128x256xf32>
    %c0_18 = arith.constant 0 : index
    %c0_19 = arith.constant 0 : index
    %22 = vector.load %arg8[%c0_18, %c0_19] : memref<256x64xf32, #tpu.memory_space<vmem>>, vector<256x64xf32>
    %cst_20 = arith.constant dense<0.000000e+00> : vector<128x64xf32>
    %23 = tpu.matmul %21, %22, %cst_20 {dimension_numbers = #tpu.dot_dimension_numbers<[1], [0], [0], [1], [0, 0, 1, 1], [], []>} : vector<128x256xf32>, vector<256x64xf32>, vector<128x64xf32> -> vector<128x64xf32>
    %c0_21 = arith.constant 0 : index
    %c0_22 = arith.constant 0 : index
    %24 = vector.load %arg9[%c0_21, %c0_22] : memref<1x64xf32, #tpu.memory_space<vmem>>, vector<1x64xf32>
    %25 = vector.broadcast %24 : vector<1x64xf32> to vector<128x64xf32>
    %26 = arith.addf %23, %25 : vector<128x64xf32>
    %cst_23 = arith.constant 0.000000e+00 : f32
    %27 = vector.broadcast %cst_23 : f32 to vector<128x64xf32>
    %28 = arith.maximumf %26, %27 : vector<128x64xf32>
    %c0_24 = arith.constant 0 : index
    %c0_25 = arith.constant 0 : index
    %29 = vector.load %arg10[%c0_24, %c0_25] : memref<64x16xf32, #tpu.memory_space<vmem>>, vector<64x16xf32>
    %cst_26 = arith.constant dense<0.000000e+00> : vector<128x16xf32>
    %30 = tpu.matmul %28, %29, %cst_26 {dimension_numbers = #tpu.dot_dimension_numbers<[1], [0], [0], [1], [0, 0, 1, 1], [], []>} : vector<128x64xf32>, vector<64x16xf32>, vector<128x16xf32> -> vector<128x16xf32>
    %c0_27 = arith.constant 0 : index
    %c0_28 = arith.constant 0 : index
    %31 = vector.load %arg11[%c0_27, %c0_28] : memref<1x16xf32, #tpu.memory_space<vmem>>, vector<1x16xf32>
    %32 = vector.broadcast %31 : vector<1x16xf32> to vector<128x16xf32>
    %33 = arith.addf %30, %32 : vector<128x16xf32>
    %cst_29 = arith.constant 0.000000e+00 : f32
    %34 = vector.broadcast %cst_29 : f32 to vector<128x16xf32>
    %35 = arith.maximumf %33, %34 : vector<128x16xf32>
    %c0_30 = arith.constant 0 : index
    %c0_31 = arith.constant 0 : index
    %36 = vector.load %arg12[%c0_30, %c0_31] : memref<16x128xf32, #tpu.memory_space<vmem>>, vector<16x128xf32>
    %cst_32 = arith.constant dense<0.000000e+00> : vector<128x128xf32>
    %37 = tpu.matmul %35, %36, %cst_32 {dimension_numbers = #tpu.dot_dimension_numbers<[1], [0], [0], [1], [0, 0, 1, 1], [], []>} : vector<128x16xf32>, vector<16x128xf32>, vector<128x128xf32> -> vector<128x128xf32>
    %c0_33 = arith.constant 0 : index
    %c0_34 = arith.constant 0 : index
    %38 = vector.load %arg13[%c0_33, %c0_34] : memref<1x128xf32, #tpu.memory_space<vmem>>, vector<1x128xf32>
    %39 = vector.broadcast %38 : vector<1x128xf32> to vector<128x128xf32>
    %40 = arith.addf %37, %39 : vector<128x128xf32>
    %c0_35 = arith.constant 0 : index
    %c0_36 = arith.constant 0 : index
    %41 = vector.load %arg14[%c0_35, %c0_36] : memref<128x128xf32, #tpu.memory_space<vmem>>, vector<128x128xf32>
    tpu.vector_store %arg14[%c0_35, %c0_36], %40 {strides = array<i32>} : memref<128x128xf32, #tpu.memory_space<vmem>>, vector<128x128xf32>,
    return
  }
  func.func @transform_0(%arg0: i32) -> (i32, i32) {
    %c0_i32 = arith.constant 0 : i32
    %c0_i32_0 = arith.constant 0 : i32
    return %arg0, %c0_i32 : i32, i32
  }
  func.func @transform_1(%arg0: i32) -> (i32, i32) {
    %c0_i32 = arith.constant 0 : i32
    %c0_i32_0 = arith.constant 0 : i32
    %c0_i32_1 = arith.constant 0 : i32
    return %c0_i32, %c0_i32_0 : i32, i32
  }
  func.func @transform_2(%arg0: i32) -> (i32, i32) {
    %c0_i32 = arith.constant 0 : i32
    %c0_i32_0 = arith.constant 0 : i32
    %c0_i32_1 = arith.constant 0 : i32
    return %c0_i32, %c0_i32_0 : i32, i32
  }
  func.func @transform_3(%arg0: i32) -> (i32, i32) {
    %c0_i32 = arith.constant 0 : i32
    %c0_i32_0 = arith.constant 0 : i32
    %c0_i32_1 = arith.constant 0 : i32
    return %c0_i32, %c0_i32_0 : i32, i32
  }
  func.func @transform_4(%arg0: i32) -> (i32, i32) {
    %c0_i32 = arith.constant 0 : i32
    %c0_i32_0 = arith.constant 0 : i32
    %c0_i32_1 = arith.constant 0 : i32
    return %c0_i32, %c0_i32_0 : i32, i32
  }
  func.func @transform_5(%arg0: i32) -> (i32, i32) {
    %c0_i32 = arith.constant 0 : i32
    %c0_i32_0 = arith.constant 0 : i32
    %c0_i32_1 = arith.constant 0 : i32
    return %c0_i32, %c0_i32_0 : i32, i32
  }
  func.func @transform_6(%arg0: i32) -> (i32, i32) {
    %c0_i32 = arith.constant 0 : i32
    %c0_i32_0 = arith.constant 0 : i32
    %c0_i32_1 = arith.constant 0 : i32
    return %c0_i32, %c0_i32_0 : i32, i32
  }
  func.func @transform_7(%arg0: i32) -> (i32, i32) {
    %c0_i32 = arith.constant 0 : i32
    %c0_i32_0 = arith.constant 0 : i32
    %c0_i32_1 = arith.constant 0 : i32
    return %c0_i32, %c0_i32_0 : i32, i32
  }
  func.func @transform_8(%arg0: i32) -> (i32, i32) {
    %c0_i32 = arith.constant 0 : i32
    %c0_i32_0 = arith.constant 0 : i32
    %c0_i32_1 = arith.constant 0 : i32
    return %c0_i32, %c0_i32_0 : i32, i32
  }
  func.func @transform_9(%arg0: i32) -> (i32, i32) {
    %c0_i32 = arith.constant 0 : i32
    %c0_i32_0 = arith.constant 0 : i32
    %c0_i32_1 = arith.constant 0 : i32
    return %c0_i32, %c0_i32_0 : i32, i32
  }
  func.func @transform_10(%arg0: i32) -> (i32, i32) {
    %c0_i32 = arith.constant 0 : i32
    %c0_i32_0 = arith.constant 0 : i32
    %c0_i32_1 = arith.constant 0 : i32
    return %c0_i32, %c0_i32_0 : i32, i32
  }
  func.func @transform_11(%arg0: i32) -> (i32, i32) {
    %c0_i32 = arith.constant 0 : i32
    %c0_i32_0 = arith.constant 0 : i32
    %c0_i32_1 = arith.constant 0 : i32
    return %c0_i32, %c0_i32_0 : i32, i32
  }
  func.func @transform_12(%arg0: i32) -> (i32, i32) {
    %c0_i32 = arith.constant 0 : i32
    %c0_i32_0 = arith.constant 0 : i32
    %c0_i32_1 = arith.constant 0 : i32
    return %c0_i32, %c0_i32_0 : i32, i32
  }
  func.func @transform_13(%arg0: i32) -> (i32, i32) {
    %c0_i32 = arith.constant 0 : i32
    %c0_i32_0 = arith.constant 0 : i32
    return %arg0, %c0_i32 : i32, i32
  }
}

</mosaic_0001>

<bundles_post_ra>
// kernel: tpu_custom_call.1
= control target key start
LH: loop header
LB: loop body
LE: loop exit
PB: predicated region body
PF: predicated region fallthrough
CT: control target
= control target key end

     0   :  { %18 = vsyncpa [#allocation3], 0  ;;  %s4933_s0 = inlined_call_operand.vmem [shape: f32[256,128], index: 0, kind: input, shape index: {}]   ;;  %s4934_s1 = inlined_call_operand.hbm [shape: f32[128,512], index: 1, kind: input, shape index: {}]   ;;  %s4935_s2 = inlined_call_operand.vmem [shape: f32[1,512], index: 2, kind: input, shape index: {}]   ;;  %s4936_s3 = inlined_call_operand.hbm [shape: f32[512,512], index: 3, kind: input, shape index: {}]   ;;  %s4937_s4 = inlined_call_operand.vmem [shape: f32[1,512], index: 4, kind: input, shape index: {}]   ;;  %s4938_s5 = inlined_call_operand.hbm [shape: f32[512,256], index: 5, kind: input, shape index: {}]   ;;  %s4939_s6 = inlined_call_operand.vmem [shape: f32[1,256], index: 6, kind: input, shape index: {}]   ;;  %s4940_s7 = inlined_call_operand.vmem [shape: f32[256,64], index: 7, kind: input, shape index: {}]   ;;  %s4941_s8 = inlined_call_operand.vmem [shape: f32[1,64], index: 8, kind: input, shape index: {}]   ;;  %s4942_s9 = inlined_call_operand.vmem [shape: f32[64,16], index: 9, kind: input, shape index: {}]   ;;  %s4943_s10 = inlined_call_operand.vmem [shape: f32[1,16], index: 10, kind: input, shape index: {}]   ;;  %s4944_s11 = inlined_call_operand.vmem [shape: f32[16,128], index: 11, kind: input, shape index: {}]   ;;  %s4945_s12 = inlined_call_operand.vmem [shape: f32[1,128], index: 12, kind: input, shape index: {}]   ;;  %s4946_s13 = inlined_call_operand.hbm [shape: f32[256,128], index: 13, kind: output, shape index: {}]  }
   0x1   :  { %19 = vsyncpa [#allocation6], 0 }
   0x2   :  { %20 = vsyncpa [#allocation4], 0 }
   0x3   :  { %22 = vsyncpa [#allocation4 + $0x1], 0  ;;  %s3755_s25 = smov 0   ;;  %s3757_s26 = smov 0  }
   0x4   :  { %s3759_s27 = smov 0   ;;  %s3761_s28 = smov 0  }
   0x5 LB: > { %5016 = sst [smem:[#allocation12_spill]] %s3668_s27  ;;  %s3776_s29 = sadd.s32 4294967295, %s3672_s28   ;;  %s3672_s28 = sphi %s3761_s28, %s5154_s28   ;;  %s3668_s27 = sphi %s3759_s27, %s5159_s27   ;;  %s3664_s26 = sphi %s3757_s26, %s5158_s26   ;;  %s3660_s25 = sphi %s3755_s25, %s5157_s25  }
   0x6   : > { %s3205_s30 = sadd.s32 4294967294, %s3672_s28   ;;  %s3780_s14 = sadd.s32 1, %s3672_s28  }
   0x7   : > { %5017 = sst [smem:[#allocation13_spill]] %s3780_s14  ;;  %s313_s15 = sadd.s32 1, %s3668_s27 }
   0x8   : > { %s310_s16 = ssub.s32 %s3672_s28, %s3780_s14  ;;  %p323_p0 = scmp.ne.s32.totalorder %s3668_s27, %s3664_s26 }
   0x9   : > { %p311_p1 = scmp.eq.s32.totalorder %s310_s16, 0  ;;  %p324_p2 = scmp.eq.s32.totalorder %s3776_s29, 1 }
   0xa   : > { %p329_p3 = scmp.ne.s32.totalorder %s3664_s26, %s3660_s25  ;;  %p330_p4 = scmp.eq.s32.totalorder %s3205_s30, 1 }
   0xb   : > { %s3791_s17 = scalar_select %p311_p1, %s3668_s27, %s313_s15  }
   0xc   : > { %p3793_p5 = por %p324_p2, %p323_p0  ;;  %p3797_p6 = por %p330_p4, %p329_p3 }
   0xd   : > { %5018 = sst [smem:[#allocation14_spill]] %s3791_s17  ;;  %p3206_p7 = scmp.ge.s32.totalorder %s3672_s28, 1 }
   0xe   : > { %s5019_s18 = scalar_select %p3793_p5, 1, 0 }
   0xf   : > { %s5020_s19 = scalar_select %p3797_p6, 1, 0 }
  0x10   : > { %p337_p8 = scmp.lt.s32.totalorder %s3672_s28, 3  ;;  %p4950_p9 = scmp.eq.s32.totalorder %s3776_s29, 0 }
  0x11   : > { %5021 = sst [smem:[#allocation15_spill]] %s5020_s19  ;;  %s3674_s21 = smov [#allocation5]  }
  0x12   : > { %p3804_p10 = pnand %p3206_p7, %p337_p8  ;;  %s365_s22 = sshll.u32 %s3674_s21, 4  ;;  %s366_s22 = int_to_ptr.vmem [resolvable:$true] %s365_s22 }
  0x13   : > { %s3675_s24 = smov [#allocation2]   ;;  %s3676_s15 = smov [#allocation7]  }
  0x14   : > { %p3463_p11 = pneg %p3804_p10  ;;  %s349_s30 = sshll.u32 %s3675_s24, 4  ;;  %s350_s30 = int_to_ptr.vmem [resolvable:$true] %s349_s30 }
  0x15   : > { %s381_s16 = sshll.u32 %s3676_s15, 4  ;;  %s3537_s17 = scalar_lea.vmem %s366_s22, 32768  ;;  %s382_s16 = int_to_ptr.vmem [resolvable:$true] %s381_s16 }
  0x16   : > { %p3812_p12 = pnand %p4950_p9, %p3463_p11  ;;  %p3538_p0 = scmp.ne.s32.totalorder %s366_s22, %s3537_s17 }
  0x17   : > { %p3545_p3 = scmp.lt.s32.totalorder %s366_s22, %s366_s22  ;;  %p3546_p4 = scmp.lt.s32.totalorder %s3537_s17, %s3537_s17 }
  0x18   : > { %p3528_p13 = pneg %p3812_p12 }
  0x19   : > { %p3547_p7 = por %p3546_p4, %p3545_p3 }
  0x1a   : > { %p3540_p1 = pnand %p3538_p0, %p3528_p13 }
  0x1c   : > { %p3541_p2 = pneg %p3540_p1 }
  0x1e   : > { %p3548_p8 = pnand %p3547_p7, %p3541_p2 }
  0x20   : > { %3551 = shalt.err (!%p3548_p8)
}
  0x21   : > { %s3677_s21 = smov 512   ;;  %s3678_s24 = smov 32  }
  0x22   : > { %3469 = dma.hbm_to_vmem [thread:$0]  (!%p3812_p12), %s4936_s3, 32768, %s366_s22, [#allocation6], %s3677_s21, %s3677_s21, %s3678_s24  }
  0x23   : > { %s3563_s14 = scalar_lea.vmem %s350_s30, 8192  ;;  %p3571_p9 = scmp.lt.s32.totalorder %s350_s30, %s350_s30 }
  0x24   : > { %p3564_p11 = scmp.ne.s32.totalorder %s350_s30, %s3563_s14  ;;  %p3572_p6 = scmp.lt.s32.totalorder %s3563_s14, %s3563_s14 }
  0x26   : > { %p3566_p0 = pnand %p3564_p11, %p3528_p13  ;;  %p3573_p3 = por %p3572_p6, %p3571_p9 }
  0x28   : > { %p3567_p1 = pneg %p3566_p0 }
  0x2a   : > { %p3574_p2 = pnand %p3573_p3, %p3567_p1 }
  0x2c   : > { %3577 = shalt.err (!%p3574_p2)
}
  0x2d   : > { %3466 = dma.hbm_to_vmem [thread:$0]  (!%p3812_p12), %s4934_s1, 8192, %s350_s30, [#allocation3], %s3677_s21, %s3677_s21, %s3678_s24  }
  0x2e   : > { %s3589_s27 = scalar_lea.vmem %s382_s16, 16384  ;;  %p3597_p11 = scmp.lt.s32.totalorder %s382_s16, %s382_s16 }
  0x2f   : > { %p3590_p4 = scmp.ne.s32.totalorder %s382_s16, %s3589_s27  ;;  %p3598_p0 = scmp.lt.s32.totalorder %s3589_s27, %s3589_s27 }
  0x31   : > { %p3592_p7 = pnand %p3590_p4, %p3528_p13  ;;  %p3599_p5 = por %p3598_p0, %p3597_p11 }
  0x33   : > { %p3593_p8 = pneg %p3592_p7 }
  0x35   : > { %p3600_p6 = pnand %p3599_p5, %p3593_p8 }
  0x37   : > { %3603 = shalt.err (!%p3600_p6)
}
  0x38   : > { %s3679_s14 = smov 256   ;;  %s3680_s22 = smov 16  }
  0x39   : > { %3472 = dma.hbm_to_vmem [thread:$0]  (!%p3812_p12), %s4938_s5, 16384, %s382_s16, [#allocation6], %s3679_s14, %s3679_s14, %s3680_s22  }
  0x3a   : > { %427 = sbr.rel (%p3804_p10) target bundleno = 1471 (0x5bf), region = 72 }
  0x3f   : > { %p5024_p9 = scmp.eq.s32.totalorder %s3776_s29, 0 }
  0x41   : > { %3647 = dma.done.wait (%p5024_p9), [#allocation3], 8192   ;;  %p5025_p13 = pmov %p5024_p9 }
  0x42   : > { %p5026_p5 = pmov %p5024_p9 }
  0x43   : > { %3649 = vsyncadd (%p5025_p13), [#allocation3], 4294959104 }
  0x44   : > { %3651 = dma.done.wait (%p5026_p5), [#allocation6], 49152   ;;  %p5027_p1 = pmov %p5026_p5 }
  0x45   : > { %v3681_v0 = vmov 0.0   ;;  %v563_v1 = vld [vmem:[#allocation2 + $0x1e8] sm:$0xff]  ;;  %v565_v2 = vld [vmem:[#allocation2 + $0x1f8] sm:$0xff]  ;;  %v562_v3 = vld [vmem:[#allocation2 + $0x1e0] sm:$0xff]  ;;  %s3216_s20 = sshll.u32 %s3776_s29, 4  ;;  %vm2669_vm0 = vcmask 523264  }
  0x46   : > { %3653 = vsyncadd (%p5027_p1), [#allocation6], 4294918144  ;;  %652 = vmatprep.mubr.f32.mxu0 %v3681_v0  ;;  %813 = vmatprep.mubr.f32.mxu1 %v3681_v0  ;;  %v564_v4 = vld [vmem:[#allocation2 + $0x1f0] sm:$0xff]  ;;  %v559_v5 = vld [vmem:[#allocation2 + $0x1c8] sm:$0xff]  ;;  %p3857_p10 = scmp.lt.s32.totalorder %s3216_s20, 31  ;;  %vm2888_vm1 = vcmask 130048  }
  0x47   : > { %588 = vmatprep.subr.mxu0 %v563_v1  ;;  %749 = vmatprep.subr.mxu1 %v565_v2  ;;  %v561_v6 = vld [vmem:[#allocation2 + $0x1d8] sm:$0xff]  ;;  %v558_v7 = vld [vmem:[#allocation2 + $0x1c0] sm:$0xff]  ;;  %v560_v8 = vld [vmem:[#allocation2 + $0x1d0] sm:$0xff]  ;;  %s476_s21 = sand.u32 1, %s3664_s26   ;;  %s3258_s22 = sshll.u32 %s3776_s29, 11 }
  0x48   : > { %589 = vmatpush1.msra.mxu0 %v562_v3  ;;  %750 = vmatpush1.msra.mxu1 %v564_v4  ;;  %v555_v9 = vld [vmem:[#allocation2 + $0x1a8] sm:$0xff]  ;;  %v557_v10 = vld [vmem:[#allocation2 + $0x1b8] sm:$0xff]  ;;  %v554_v11 = vld [vmem:[#allocation2 + $0x1a0] sm:$0xff]  ;;  %s5161_s20 = smov (!%p3857_p10, %s3216_s20), 31  ;;  %s4885_s23 = scalar_lea.hbm %s4946_s13, %s3258_s22 }
  0x49   : > { %590 = vmatprep.subr.mxu0 %v559_v5  ;;  %751 = vmatprep.subr.mxu1 %v561_v6  ;;  %v556_v12 = vld [vmem:[#allocation2 + $0x1b0] sm:$0xff]  ;;  %v551_v13 = vld [vmem:[#allocation2 + $0x188] sm:$0xff]  ;;  %v553_v14 = vld [vmem:[#allocation2 + $0x198] sm:$0xff]  ;;  %s3217_s30 = sshll.u32 %s5161_s20, 3  ;;  %p5151_p3 = scmp.ne.s32.totalorder %s5019_s18, 0 }
  0x4a   : > { %591 = vmatpush1.msra.mxu0 %v558_v7  ;;  %752 = vmatpush1.msra.mxu1 %v560_v8  ;;  %v550_v15 = vld [vmem:[#allocation2 + $0x180] sm:$0xff]  ;;  %v552_v16 = vld [vmem:[#allocation2 + $0x190] sm:$0xff]  ;;  %v547_v17 = vld [vmem:[#allocation2 + $0x168] sm:$0xff]  ;;  %s3871_s24 = scalar_lea.vmem %s4933_s0, %s3217_s30  ;;  %s4893_s30 = scalar_lea.sflag [#allocation4], %s476_s21 }
  0x4b   : > { %592 = vmatprep.subr.mxu0 %v555_v9  ;;  %753 = vmatprep.subr.mxu1 %v557_v10  ;;  %v549_v18 = vld [vmem:[#allocation2 + $0x178] sm:$0xff]  ;;  %v546_v19 = vld [vmem:[#allocation2 + $0x160] sm:$0xff]  ;;  %v548_v20 = vld [vmem:[#allocation2 + $0x170] sm:$0xff]  ;;  %s3682_s16 = smov [#allocation8]  }
  0x4c   : > { %593 = vmatpush1.msra.mxu0 %v554_v11  ;;  %754 = vmatpush1.msra.mxu1 %v556_v12  ;;  %v543_v21 = vld [vmem:[#allocation2 + $0x148] sm:$0xff]  ;;  %v545_v22 = vld [vmem:[#allocation2 + $0x158] sm:$0xff]  ;;  %v542_v23 = vld [vmem:[#allocation2 + $0x140] sm:$0xff] }
  0x4d   : > { %594 = vmatprep.subr.mxu0 %v551_v13  ;;  %755 = vmatprep.subr.mxu1 %v553_v14  ;;  %v544_v24 = vld [vmem:[#allocation2 + $0x150] sm:$0xff]  ;;  %v539_v25 = vld [vmem:[#allocation2 + $0x128] sm:$0xff]  ;;  %v541_v26 = vld [vmem:[#allocation2 + $0x138] sm:$0xff] }
  0x4e   : > { %595 = vmatpush1.msra.mxu0 %v550_v15  ;;  %756 = vmatpush1.msra.mxu1 %v552_v16  ;;  %v538_v27 = vld [vmem:[#allocation2 + $0x120] sm:$0xff]  ;;  %v540_v28 = vld [vmem:[#allocation2 + $0x130] sm:$0xff]  ;;  %v535_v29 = vld [vmem:[#allocation2 + $0x108] sm:$0xff] }
  0x4f   : > { %596 = vmatprep.subr.mxu0 %v547_v17  ;;  %757 = vmatprep.subr.mxu1 %v549_v18  ;;  %v537_v30 = vld [vmem:[#allocation2 + $0x118] sm:$0xff]  ;;  %v534_v31 = vld [vmem:[#allocation2 + $0x100] sm:$0xff]  ;;  %v536_v32 = vld [vmem:[#allocation2 + $0x110] sm:$0xff] }
  0x50   : > { %597 = vmatpush1.msra.mxu0 %v546_v19  ;;  %758 = vmatpush1.msra.mxu1 %v548_v20  ;;  %v531_v33 = vld [vmem:[#allocation2 + $0xe8] sm:$0xff]  ;;  %v533_v34 = vld [vmem:[#allocation2 + $0xf8] sm:$0xff]  ;;  %v530_v35 = vld [vmem:[#allocation2 + $0xe0] sm:$0xff] }
  0x51   : > { %598 = vmatprep.subr.mxu0 %v543_v21  ;;  %759 = vmatprep.subr.mxu1 %v545_v22  ;;  %v532_v36 = vld [vmem:[#allocation2 + $0xf0] sm:$0xff]  ;;  %v527_v37 = vld [vmem:[#allocation2 + $0xc8] sm:$0xff]  ;;  %v529_v38 = vld [vmem:[#allocation2 + $0xd8] sm:$0xff] }
  0x52   : > { %599 = vmatpush1.msra.mxu0 %v542_v23  ;;  %760 = vmatpush1.msra.mxu1 %v544_v24  ;;  %v526_v39 = vld [vmem:[#allocation2 + $0xc0] sm:$0xff]  ;;  %v528_v40 = vld [vmem:[#allocation2 + $0xd0] sm:$0xff]  ;;  %v523_v41 = vld [vmem:[#allocation2 + $0xa8] sm:$0xff] }
  0x53   : > { %600 = vmatprep.subr.mxu0 %v539_v25  ;;  %761 = vmatprep.subr.mxu1 %v541_v26  ;;  %v525_v42 = vld [vmem:[#allocation2 + $0xb8] sm:$0xff]  ;;  %v522_v43 = vld [vmem:[#allocation2 + $0xa0] sm:$0xff]  ;;  %v524_v44 = vld [vmem:[#allocation2 + $0xb0] sm:$0xff] }
  0x54   : > { %601 = vmatpush1.msra.mxu0 %v538_v27  ;;  %762 = vmatpush1.msra.mxu1 %v540_v28  ;;  %v519_v45 = vld [vmem:[#allocation2 + $0x88] sm:$0xff]  ;;  %v521_v46 = vld [vmem:[#allocation2 + $0x98] sm:$0xff]  ;;  %v518_v47 = vld [vmem:[#allocation2 + $0x80] sm:$0xff] }
  0x55   : > { %602 = vmatprep.subr.mxu0 %v535_v29  ;;  %763 = vmatprep.subr.mxu1 %v537_v30  ;;  %v520_v48 = vld [vmem:[#allocation2 + $0x90] sm:$0xff]  ;;  %v515_v49 = vld [vmem:[#allocation2 + $0x68] sm:$0xff]  ;;  %v517_v50 = vld [vmem:[#allocation2 + $0x78] sm:$0xff] }
  0x56   : > { %603 = vmatpush1.msra.mxu0 %v534_v31  ;;  %764 = vmatpush1.msra.mxu1 %v536_v32  ;;  %v514_v51 = vld [vmem:[#allocation2 + $0x60] sm:$0xff]  ;;  %v516_v52 = vld [vmem:[#allocation2 + $0x70] sm:$0xff]  ;;  %v511_v53 = vld [vmem:[#allocation2 + $0x48] sm:$0xff] }
  0x57   : > { %604 = vmatprep.subr.mxu0 %v531_v33  ;;  %765 = vmatprep.subr.mxu1 %v533_v34  ;;  %v513_v54 = vld [vmem:[#allocation2 + $0x58] sm:$0xff]  ;;  %v510_v55 = vld [vmem:[#allocation2 + $0x40] sm:$0xff]  ;;  %v512_v56 = vld [vmem:[#allocation2 + $0x50] sm:$0xff] }
  0x58   : > { %605 = vmatpush1.msra.mxu0 %v530_v35  ;;  %766 = vmatpush1.msra.mxu1 %v532_v36  ;;  %v507_v57 = vld [vmem:[#allocation2 + $0x28] sm:$0xff]  ;;  %v509_v58 = vld [vmem:[#allocation2 + $0x38] sm:$0xff]  ;;  %v506_v59 = vld [vmem:[#allocation2 + $0x20] sm:$0xff] }
  0x59   : > { %606 = vmatprep.subr.mxu0 %v527_v37  ;;  %767 = vmatprep.subr.mxu1 %v529_v38  ;;  %v508_v60 = vld [vmem:[#allocation2 + $0x30] sm:$0xff]  ;;  %v503_v61 = vld [vmem:[#allocation2 + $0x8] sm:$0xff]  ;;  %v505_v62 = vld [vmem:[#allocation2 + $0x18] sm:$0xff] }
  0x5a   : > { %607 = vmatpush1.msra.mxu0 %v526_v39  ;;  %768 = vmatpush1.msra.mxu1 %v528_v40  ;;  %v502_v63 = vld [vmem:[#allocation2] sm:$0xff]  ;;  %v504_v1 = vld [vmem:[#allocation2 + $0x10] sm:$0xff]  ;;  %v1035_v3 = vld [vmem:[#allocation5 + $0x1e8] sm:$0xff] }
  0x5b   : > { %608 = vmatprep.subr.mxu0 %v523_v41  ;;  %769 = vmatprep.subr.mxu1 %v525_v42  ;;  %v486_v2 = vld [vmem:[%s3871_s24] sm:$0xff]  ;;  %v1163_v4 = vld [vmem:[#allocation5 + $0x5e8] sm:$0xff]  ;;  %v488_v12 = vld [vmem:[%s3871_s24 + $0x10] sm:$0xff] }
  0x5c   : > { %609 = vmatpush1.msra.mxu0 %v522_v43  ;;  %770 = vmatpush1.msra.mxu1 %v524_v44  ;;  %v1034_v5 = vld [vmem:[#allocation5 + $0x1e0] sm:$0xff]  ;;  %v487_v7 = vld [vmem:[%s3871_s24 + $0x8] sm:$0xff]  ;;  %v489_v17 = vld [vmem:[%s3871_s24 + $0x18] sm:$0xff] }
  0x5d   : > { %610 = vmatprep.subr.mxu0 %v519_v45  ;;  %771 = vmatprep.subr.mxu1 %v521_v46  ;;  %v1162_v6 = vld [vmem:[#allocation5 + $0x5e0] sm:$0xff]  ;;  %v1031_v8 = vld [vmem:[#allocation5 + $0x1c8] sm:$0xff]  ;;  %v492_v32 = vld [vmem:[%s3871_s24 + $0x30] sm:$0xff] }
  0x5e   : > { %611 = vmatpush1.msra.mxu0 %v518_v47  ;;  %772 = vmatpush1.msra.mxu1 %v520_v48  ;;  %v1159_v9 = vld [vmem:[#allocation5 + $0x5c8] sm:$0xff]  ;;  %v1030_v10 = vld [vmem:[#allocation5 + $0x1c0] sm:$0xff]  ;;  %v493_v37 = vld [vmem:[%s3871_s24 + $0x38] sm:$0xff] }
  0x5f   : > { %612 = vmatprep.subr.mxu0 %v515_v49  ;;  %773 = vmatprep.subr.mxu1 %v517_v50  ;;  %v1158_v11 = vld [vmem:[#allocation5 + $0x5c0] sm:$0xff]  ;;  %v1027_v13 = vld [vmem:[#allocation5 + $0x1a8] sm:$0xff] }
  0x60   : > { %613 = vmatpush1.msra.mxu0 %v514_v51  ;;  %774 = vmatpush1.msra.mxu1 %v516_v52  ;;  %v1155_v14 = vld [vmem:[#allocation5 + $0x5a8] sm:$0xff]  ;;  %v1026_v15 = vld [vmem:[#allocation5 + $0x1a0] sm:$0xff]  ;;  %v496_v52 = vld [vmem:[%s3871_s24 + $0x50] sm:$0xff] }
  0x61   : > { %614 = vmatprep.subr.mxu0 %v511_v53  ;;  %775 = vmatprep.subr.mxu1 %v513_v54  ;;  %v1154_v16 = vld [vmem:[#allocation5 + $0x5a0] sm:$0xff]  ;;  %v1023_v18 = vld [vmem:[#allocation5 + $0x188] sm:$0xff] }
  0x62   : > { %615 = vmatpush1.msra.mxu0 %v510_v55  ;;  %776 = vmatpush1.msra.mxu1 %v512_v56  ;;  %v1151_v19 = vld [vmem:[#allocation5 + $0x588] sm:$0xff]  ;;  %v1022_v20 = vld [vmem:[#allocation5 + $0x180] sm:$0xff] }
  0x63   : > { %616 = vmatprep.subr.mxu0 %v507_v57  ;;  %777 = vmatprep.subr.mxu1 %v509_v58  ;;  %v1150_v21 = vld [vmem:[#allocation5 + $0x580] sm:$0xff]  ;;  %v1019_v23 = vld [vmem:[#allocation5 + $0x168] sm:$0xff]  ;;  %v497_v57 = vld [vmem:[%s3871_s24 + $0x58] sm:$0xff] }
  0x64   : > { %617 = vmatpush1.msra.mxu0 %v506_v59  ;;  %778 = vmatpush1.msra.mxu1 %v508_v60  ;;  %v490_v22 = vld [vmem:[%s3871_s24 + $0x20] sm:$0xff]  ;;  %v1147_v24 = vld [vmem:[#allocation5 + $0x568] sm:$0xff] }
  0x65   : > { %618 = vmatprep.subr.mxu0 %v503_v61  ;;  %779 = vmatprep.subr.mxu1 %v505_v62  ;;  %v1018_v25 = vld [vmem:[#allocation5 + $0x160] sm:$0xff]  ;;  %v491_v27 = vld [vmem:[%s3871_s24 + $0x28] sm:$0xff] }
  0x66   : > { %619 = vmatpush1.msra.mxu0 %v502_v63  ;;  %780 = vmatpush1.msra.mxu1 %v504_v1  ;;  %v1146_v26 = vld [vmem:[#allocation5 + $0x560] sm:$0xff]  ;;  %v1015_v28 = vld [vmem:[#allocation5 + $0x148] sm:$0xff] }
  0x67   : > { %653 = vmatmul.mubr.f32.vlgmr.msra.gmra.mxu0 %v486_v2  ;;  %814 = vmatmul.mubr.f32.vlgmr.msra.gmra.mxu1 %v486_v2  ;;  %v1143_v29 = vld [vmem:[#allocation5 + $0x548] sm:$0xff]  ;;  %v1014_v30 = vld [vmem:[#allocation5 + $0x140] sm:$0xff] }
  0x68   : > { %658 = vmatprep.mubr.f32.mxu0 %v3681_v0  ;;  %819 = vmatprep.mubr.f32.mxu1 %v3681_v0  ;;  %v1142_v31 = vld [vmem:[#allocation5 + $0x540] sm:$0xff]  ;;  %v1011_v33 = vld [vmem:[#allocation5 + $0x128] sm:$0xff] }
  0x69   : > { %1252 = vmatprep.subr.mxu0 %v1035_v3  ;;  %1413 = vmatprep.subr.mxu1 %v1163_v4  ;;  %v1139_v34 = vld [vmem:[#allocation5 + $0x528] sm:$0xff]  ;;  %v1010_v35 = vld [vmem:[#allocation5 + $0x120] sm:$0xff] }
  0x6a   : > { %1253 = vmatpush1.msra.mxu0 %v1034_v5  ;;  %1414 = vmatpush1.msra.mxu1 %v1162_v6  ;;  %v1138_v36 = vld [vmem:[#allocation5 + $0x520] sm:$0xff]  ;;  %v1007_v38 = vld [vmem:[#allocation5 + $0x108] sm:$0xff] }
  0x6b   : > { %659 = vmatmul.mubr.f32.gmra.mxu0 %v487_v7  ;;  %820 = vmatmul.mubr.f32.gmra.mxu1 %v487_v7  ;;  %v1135_v39 = vld [vmem:[#allocation5 + $0x508] sm:$0xff]  ;;  %v1006_v40 = vld [vmem:[#allocation5 + $0x100] sm:$0xff] }
  0x6c   : > { %664 = vmatprep.mubr.f32.mxu0 %v3681_v0  ;;  %825 = vmatprep.mubr.f32.mxu1 %v3681_v0  ;;  %v1134_v41 = vld [vmem:[#allocation5 + $0x500] sm:$0xff]  ;;  %v1003_v43 = vld [vmem:[#allocation5 + $0xe8] sm:$0xff] }
  0x6d   : > { %1254 = vmatprep.subr.mxu0 %v1031_v8  ;;  %1415 = vmatprep.subr.mxu1 %v1159_v9  ;;  %v494_v42 = vld [vmem:[%s3871_s24 + $0x40] sm:$0xff]  ;;  %v1131_v44 = vld [vmem:[#allocation5 + $0x4e8] sm:$0xff]  ;;  %v500_v9 = vld [vmem:[%s3871_s24 + $0x70] sm:$0xff] }
  0x6e   : > { %1255 = vmatpush1.msra.mxu0 %v1030_v10  ;;  %1416 = vmatpush1.msra.mxu1 %v1158_v11  ;;  %v1002_v45 = vld [vmem:[#allocation5 + $0xe0] sm:$0xff]  ;;  %v495_v47 = vld [vmem:[%s3871_s24 + $0x48] sm:$0xff] }
  0x6f   : > { %665 = vmatmul.mubr.f32.gmra.mxu0 %v488_v12  ;;  %826 = vmatmul.mubr.f32.gmra.mxu1 %v488_v12  ;;  %v1130_v46 = vld [vmem:[#allocation5 + $0x4e0] sm:$0xff]  ;;  %v999_v48 = vld [vmem:[#allocation5 + $0xc8] sm:$0xff] }
  0x70   : > { %670 = vmatprep.mubr.f32.mxu0 %v3681_v0  ;;  %831 = vmatprep.mubr.f32.mxu1 %v3681_v0  ;;  %v1127_v49 = vld [vmem:[#allocation5 + $0x4c8] sm:$0xff]  ;;  %v998_v50 = vld [vmem:[#allocation5 + $0xc0] sm:$0xff] }
  0x71   : > { %1256 = vmatprep.subr.mxu0 %v1027_v13  ;;  %1417 = vmatprep.subr.mxu1 %v1155_v14  ;;  %v1126_v51 = vld [vmem:[#allocation5 + $0x4c0] sm:$0xff]  ;;  %v995_v53 = vld [vmem:[#allocation5 + $0xa8] sm:$0xff]  ;;  %v501_v14 = vld [vmem:[%s3871_s24 + $0x78] sm:$0xff] }
  0x72   : > { %1257 = vmatpush1.msra.mxu0 %v1026_v15  ;;  %1418 = vmatpush1.msra.mxu1 %v1154_v16  ;;  %v1123_v54 = vld [vmem:[#allocation5 + $0x4a8] sm:$0xff]  ;;  %v994_v55 = vld [vmem:[#allocation5 + $0xa0] sm:$0xff] }
  0x73   : > { %671 = vmatmul.mubr.f32.gmra.mxu0 %v489_v17  ;;  %832 = vmatmul.mubr.f32.gmra.mxu1 %v489_v17  ;;  %v1122_v56 = vld [vmem:[#allocation5 + $0x4a0] sm:$0xff]  ;;  %v991_v58 = vld [vmem:[#allocation5 + $0x88] sm:$0xff] }
  0x74   : > { %676 = vmatprep.mubr.f32.mxu0 %v3681_v0  ;;  %837 = vmatprep.mubr.f32.mxu1 %v3681_v0  ;;  %v1119_v59 = vld [vmem:[#allocation5 + $0x488] sm:$0xff]  ;;  %v990_v60 = vld [vmem:[#allocation5 + $0x80] sm:$0xff] }
  0x75   : > { %1258 = vmatprep.subr.mxu0 %v1023_v18  ;;  %1419 = vmatprep.subr.mxu1 %v1151_v19  ;;  %v1118_v61 = vld [vmem:[#allocation5 + $0x480] sm:$0xff]  ;;  %v987_v63 = vld [vmem:[#allocation5 + $0x68] sm:$0xff] }
  0x76   : > { %1259 = vmatpush1.msra.mxu0 %v1022_v20  ;;  %1420 = vmatpush1.msra.mxu1 %v1150_v21  ;;  %v498_v62 = vld [vmem:[%s3871_s24 + $0x60] sm:$0xff]  ;;  %v1115_v1 = vld [vmem:[#allocation5 + $0x468] sm:$0xff] }
  0x77   : > { %677 = vmatmul.mubr.f32.gmra.mxu0 %v490_v22  ;;  %838 = vmatmul.mubr.f32.gmra.mxu1 %v490_v22  ;;  %v986_v2 = vld [vmem:[#allocation5 + $0x60] sm:$0xff]  ;;  %v499_v4 = vld [vmem:[%s3871_s24 + $0x68] sm:$0xff]  ;;  %s3215_s24 = sshll.u32 %s476_s21, 7 }
  0x78   : > { %682 = vmatprep.mubr.f32.mxu0 %v3681_v0  ;;  %843 = vmatprep.mubr.f32.mxu1 %v3681_v0  ;;  %v1114_v3 = vld [vmem:[#allocation5 + $0x460] sm:$0xff]  ;;  %v983_v5 = vld [vmem:[#allocation5 + $0x48] sm:$0xff]  ;;  %s4864_s14 = scalar_lea.vmem [#allocation8], %s3215_s24  ;;  %s3608_s24 = sshll.u32 %s3682_s16, 4  ;;  %s3609_s24 = int_to_ptr.vmem [resolvable:$false] %s3608_s24 }
  0x79   : > { %1260 = vmatprep.subr.mxu0 %v1019_v23  ;;  %1421 = vmatprep.subr.mxu1 %v1147_v24  ;;  %v1111_v6 = vld [vmem:[#allocation5 + $0x448] sm:$0xff]  ;;  %v982_v7 = vld [vmem:[#allocation5 + $0x40] sm:$0xff]  ;;  %s3112_s15 = sshll.u32 %s4864_s14, 4  ;;  %s3610_s17 = scalar_lea.vmem %s3609_s24, 4096  ;;  %s4887_s15 = int_to_ptr.vmem [resolvable:$true] %s3112_s15 }
  0x7a   : > { %1261 = vmatpush1.msra.mxu0 %v1018_v25  ;;  %1422 = vmatpush1.msra.mxu1 %v1146_v26  ;;  %v1110_v8 = vld [vmem:[#allocation5 + $0x440] sm:$0xff]  ;;  %v979_v10 = vld [vmem:[#allocation5 + $0x28] sm:$0xff]  ;;  %s3604_s29 = scalar_lea.vmem %s4887_s15, 2048  ;;  %p3611_p7 = scmp.lt.s32.totalorder %s4887_s15, %s3609_s24 }
  0x7b   : > { %683 = vmatmul.mubr.f32.gmra.mxu0 %v491_v27  ;;  %844 = vmatmul.mubr.f32.gmra.mxu1 %v491_v27  ;;  %v1107_v11 = vld [vmem:[#allocation5 + $0x428] sm:$0xff]  ;;  %v978_v12 = vld [vmem:[#allocation5 + $0x20] sm:$0xff]  ;;  %p3605_p12 = scmp.ne.s32.totalorder %s4887_s15, %s3604_s29  ;;  %p3612_p8 = scmp.lt.s32.totalorder %s3610_s17, %s3604_s29 }
  0x7c   : > { %688 = vmatprep.mubr.f32.mxu0 %v3681_v0  ;;  %849 = vmatprep.mubr.f32.mxu1 %v3681_v0  ;;  %v1106_v13 = vld [vmem:[#allocation5 + $0x420] sm:$0xff]  ;;  %v975_v15 = vld [vmem:[#allocation5 + $0x8] sm:$0xff] }
  0x7d   : > { %1262 = vmatprep.subr.mxu0 %v1015_v28  ;;  %1423 = vmatprep.subr.mxu1 %v1143_v29  ;;  %v1103_v16 = vld [vmem:[#allocation5 + $0x408] sm:$0xff]  ;;  %v974_v17 = vld [vmem:[#allocation5] sm:$0xff]  ;;  %p3606_p2 = pnand %p3605_p12, %p5151_p3  ;;  %p3613_p11 = por %p3612_p8, %p3611_p7 }
  0x7e   : > { %1263 = vmatpush1.msra.mxu0 %v1014_v30  ;;  %1424 = vmatpush1.msra.mxu1 %v1142_v31  ;;  %v1102_v18 = vld [vmem:[#allocation5 + $0x400] sm:$0xff]  ;;  %v1099_v19 = vld [vmem:[#allocation5 + $0x3e8] sm:$0xff] }
  0x7f   : > { %689 = vmatmul.mubr.f32.gmra.mxu0 %v492_v32  ;;  %850 = vmatmul.mubr.f32.gmra.mxu1 %v492_v32  ;;  %v1227_v20 = vld [vmem:[#allocation5 + $0x7e8] sm:$0xff]  ;;  %v1098_v21 = vld [vmem:[#allocation5 + $0x3e0] sm:$0xff]  ;;  %p3607_p4 = pneg %p3606_p2 }
  0x80   : > { %694 = vmatprep.mubr.f32.mxu0 %v3681_v0  ;;  %855 = vmatprep.mubr.f32.mxu1 %v3681_v0  ;;  %v1226_v22 = vld [vmem:[#allocation5 + $0x7e0] sm:$0xff]  ;;  %v1223_v23 = vld [vmem:[#allocation5 + $0x7c8] sm:$0xff] }
  0x81   : > { %1264 = vmatprep.subr.mxu0 %v1011_v33  ;;  %1425 = vmatprep.subr.mxu1 %v1139_v34  ;;  %v1094_v24 = vld [vmem:[#allocation5 + $0x3c0] sm:$0xff]  ;;  %v1091_v26 = vld [vmem:[#allocation5 + $0x3a8] sm:$0xff]  ;;  %p3614_p0 = pnand %p3613_p11, %p3607_p4 }
  0x82   : > { %1265 = vmatpush1.msra.mxu0 %v1010_v35  ;;  %1426 = vmatpush1.msra.mxu1 %v1138_v36  ;;  %v1222_v25 = vld [vmem:[#allocation5 + $0x7c0] sm:$0xff]  ;;  %v1219_v27 = vld [vmem:[#allocation5 + $0x7a8] sm:$0xff] }
  0x83   : > { %695 = vmatmul.mubr.f32.gmra.mxu0 %v493_v37  ;;  %856 = vmatmul.mubr.f32.gmra.mxu1 %v493_v37  ;;  %v1090_v28 = vld [vmem:[#allocation5 + $0x3a0] sm:$0xff]  ;;  %v1087_v30 = vld [vmem:[#allocation5 + $0x388] sm:$0xff] }
  0x84   : > { %700 = vmatprep.mubr.f32.mxu0 %v3681_v0  ;;  %861 = vmatprep.mubr.f32.mxu1 %v3681_v0  ;;  %v1218_v29 = vld [vmem:[#allocation5 + $0x7a0] sm:$0xff]  ;;  %v1215_v31 = vld [vmem:[#allocation5 + $0x788] sm:$0xff] }
  0x85   : > { %1266 = vmatprep.subr.mxu0 %v1007_v38  ;;  %1427 = vmatprep.subr.mxu1 %v1135_v39  ;;  %v1086_v32 = vld [vmem:[#allocation5 + $0x380] sm:$0xff]  ;;  %v1083_v34 = vld [vmem:[#allocation5 + $0x368] sm:$0xff] }
  0x86   : > { %1267 = vmatpush1.msra.mxu0 %v1006_v40  ;;  %1428 = vmatpush1.msra.mxu1 %v1134_v41  ;;  %v1214_v33 = vld [vmem:[#allocation5 + $0x780] sm:$0xff]  ;;  %v1211_v35 = vld [vmem:[#allocation5 + $0x768] sm:$0xff] }
  0x87   : > { %701 = vmatmul.mubr.f32.gmra.mxu0 %v494_v42  ;;  %862 = vmatmul.mubr.f32.gmra.mxu1 %v494_v42  ;;  %v1082_v36 = vld [vmem:[#allocation5 + $0x360] sm:$0xff]  ;;  %v1079_v38 = vld [vmem:[#allocation5 + $0x348] sm:$0xff] }
  0x88   : > { %706 = vmatprep.mubr.f32.mxu0 %v3681_v0  ;;  %867 = vmatprep.mubr.f32.mxu1 %v3681_v0  ;;  %v1210_v37 = vld [vmem:[#allocation5 + $0x760] sm:$0xff]  ;;  %v1207_v39 = vld [vmem:[#allocation5 + $0x748] sm:$0xff] }
  0x89   : > { %1268 = vmatprep.subr.mxu0 %v1003_v43  ;;  %1429 = vmatprep.subr.mxu1 %v1131_v44  ;;  %v1078_v40 = vld [vmem:[#allocation5 + $0x340] sm:$0xff]  ;;  %v1075_v42 = vld [vmem:[#allocation5 + $0x328] sm:$0xff] }
  0x8a   : > { %1269 = vmatpush1.msra.mxu0 %v1002_v45  ;;  %1430 = vmatpush1.msra.mxu1 %v1130_v46  ;;  %v1206_v41 = vld [vmem:[#allocation5 + $0x740] sm:$0xff]  ;;  %v1203_v43 = vld [vmem:[#allocation5 + $0x728] sm:$0xff] }
  0x8b   : > { %707 = vmatmul.mubr.f32.gmra.mxu0 %v495_v47  ;;  %868 = vmatmul.mubr.f32.gmra.mxu1 %v495_v47  ;;  %v1074_v44 = vld [vmem:[#allocation5 + $0x320] sm:$0xff]  ;;  %v1071_v46 = vld [vmem:[#allocation5 + $0x308] sm:$0xff] }
  0x8c   : > { %712 = vmatprep.mubr.f32.mxu0 %v3681_v0  ;;  %873 = vmatprep.mubr.f32.mxu1 %v3681_v0  ;;  %v1202_v45 = vld [vmem:[#allocation5 + $0x720] sm:$0xff]  ;;  %v1199_v47 = vld [vmem:[#allocation5 + $0x708] sm:$0xff] }
  0x8d   : > { %1270 = vmatprep.subr.mxu0 %v999_v48  ;;  %1431 = vmatprep.subr.mxu1 %v1127_v49  ;;  %v1070_v48 = vld [vmem:[#allocation5 + $0x300] sm:$0xff] }
  0x8e   : > { %1271 = vmatpush1.msra.mxu0 %v998_v50  ;;  %1432 = vmatpush1.msra.mxu1 %v1126_v51  ;;  %v1198_v49 = vld [vmem:[#allocation5 + $0x700] sm:$0xff]  ;;  %v1067_v50 = vld [vmem:[#allocation5 + $0x2e8] sm:$0xff] }
  0x8f   : > { %713 = vmatmul.mubr.f32.gmra.mxu0 %v496_v52  ;;  %874 = vmatmul.mubr.f32.gmra.mxu1 %v496_v52  ;;  %v1195_v51 = vld [vmem:[#allocation5 + $0x6e8] sm:$0xff]  ;;  %v1066_v52 = vld [vmem:[#allocation5 + $0x2e0] sm:$0xff] }
  0x90   : > { %718 = vmatprep.mubr.f32.mxu0 %v3681_v0  ;;  %879 = vmatprep.mubr.f32.mxu1 %v3681_v0 }
  0x91   : > { %1272 = vmatprep.subr.mxu0 %v995_v53  ;;  %1433 = vmatprep.subr.mxu1 %v1123_v54  ;;  %v1194_v53 = vld [vmem:[#allocation5 + $0x6e0] sm:$0xff]  ;;  %v1063_v54 = vld [vmem:[#allocation5 + $0x2c8] sm:$0xff] }
  0x92   : > { %1273 = vmatpush1.msra.mxu0 %v994_v55  ;;  %1434 = vmatpush1.msra.mxu1 %v1122_v56  ;;  %v1191_v55 = vld [vmem:[#allocation5 + $0x6c8] sm:$0xff]  ;;  %v1062_v56 = vld [vmem:[#allocation5 + $0x2c0] sm:$0xff] }
  0x93   : > { %719 = vmatmul.mubr.f32.gmra.mxu0 %v497_v57  ;;  %880 = vmatmul.mubr.f32.gmra.mxu1 %v497_v57  ;;  %v1190_v57 = vld [vmem:[#allocation5 + $0x6c0] sm:$0xff] }
  0x94   : > { %724 = vmatprep.mubr.f32.mxu0 %v3681_v0  ;;  %885 = vmatprep.mubr.f32.mxu1 %v3681_v0 }
  0x95   : > { %1274 = vmatprep.subr.mxu0 %v991_v58  ;;  %1435 = vmatprep.subr.mxu1 %v1119_v59  ;;  %v1059_v58 = vld [vmem:[#allocation5 + $0x2a8] sm:$0xff] }
  0x96   : > { %1275 = vmatpush1.msra.mxu0 %v990_v60  ;;  %1436 = vmatpush1.msra.mxu1 %v1118_v61  ;;  %v1187_v59 = vld [vmem:[#allocation5 + $0x6a8] sm:$0xff]  ;;  %v1058_v60 = vld [vmem:[#allocation5 + $0x2a0] sm:$0xff] }
  0x97   : > { %725 = vmatmul.mubr.f32.gmra.mxu0 %v498_v62  ;;  %886 = vmatmul.mubr.f32.gmra.mxu1 %v498_v62  ;;  %v1186_v61 = vld [vmem:[#allocation5 + $0x6a0] sm:$0xff]  ;;  %v1055_v62 = vld [vmem:[#allocation5 + $0x288] sm:$0xff] }
  0x98   : > { %730 = vmatprep.mubr.f32.mxu0 %v3681_v0  ;;  %891 = vmatprep.mubr.f32.mxu1 %v3681_v0 }
  0x99   : > { %1276 = vmatprep.subr.mxu0 %v987_v63  ;;  %1437 = vmatprep.subr.mxu1 %v1115_v1  ;;  %v1183_v63 = vld [vmem:[#allocation5 + $0x688] sm:$0xff]  ;;  %v1054_v1 = vld [vmem:[#allocation5 + $0x280] sm:$0xff] }
  0x9a   : > { %1277 = vmatpush1.msra.mxu0 %v986_v2  ;;  %1438 = vmatpush1.msra.mxu1 %v1114_v3  ;;  %v1182_v2 = vld [vmem:[#allocation5 + $0x680] sm:$0xff]  ;;  %v1051_v3 = vld [vmem:[#allocation5 + $0x268] sm:$0xff] }
  0x9b   : > { %731 = vmatmul.mubr.f32.gmra.mxu0 %v499_v4  ;;  %892 = vmatmul.mubr.f32.gmra.mxu1 %v499_v4  ;;  %v1179_v4 = vld [vmem:[#allocation5 + $0x668] sm:$0xff] }
  0x9c   : > { %736 = vmatprep.mubr.f32.mxu0 %v3681_v0  ;;  %897 = vmatprep.mubr.f32.mxu1 %v3681_v0 }
  0x9d   : > { %1278 = vmatprep.subr.mxu0 %v983_v5  ;;  %1439 = vmatprep.subr.mxu1 %v1111_v6  ;;  %v1050_v5 = vld [vmem:[#allocation5 + $0x260] sm:$0xff] }
  0x9e   : > { %1279 = vmatpush1.msra.mxu0 %v982_v7  ;;  %1440 = vmatpush1.msra.mxu1 %v1110_v8  ;;  %v1178_v6 = vld [vmem:[#allocation5 + $0x660] sm:$0xff]  ;;  %v1047_v7 = vld [vmem:[#allocation5 + $0x248] sm:$0xff] }
  0x9f   : > { %737 = vmatmul.mubr.f32.gmra.mxu0 %v500_v9  ;;  %898 = vmatmul.mubr.f32.gmra.mxu1 %v500_v9  ;;  %v1175_v8 = vld [vmem:[#allocation5 + $0x648] sm:$0xff]  ;;  %v1046_v9 = vld [vmem:[#allocation5 + $0x240] sm:$0xff] }
  0xa0   : > { %742 = vmatprep.mubr.f32.mxu0 %v3681_v0  ;;  %903 = vmatprep.mubr.f32.mxu1 %v3681_v0  ;;  %v1095_v0 = vld [vmem:[#allocation5 + $0x3c8] sm:$0xff] }
  0xa1   : > { %1280 = vmatprep.subr.mxu0 %v979_v10  ;;  %1441 = vmatprep.subr.mxu1 %v1107_v11  ;;  %v1174_v10 = vld [vmem:[#allocation5 + $0x640] sm:$0xff]  ;;  %v1043_v11 = vld [vmem:[#allocation5 + $0x228] sm:$0xff] }
  0xa2   : > { %1281 = vmatpush1.msra.mxu0 %v978_v12  ;;  %1442 = vmatpush1.msra.mxu1 %v1106_v13  ;;  %v1171_v12 = vld [vmem:[#allocation5 + $0x628] sm:$0xff]  ;;  %v1042_v13 = vld [vmem:[#allocation5 + $0x220] sm:$0xff] }
  0xa3   : > { %743 = vmatmul.mubr.f32.gmra.mxu0 %v501_v14  ;;  %904 = vmatmul.mubr.f32.gmra.mxu1 %v501_v14  ;;  %v1170_v14 = vld [vmem:[#allocation5 + $0x620] sm:$0xff] }
  0xa4   : > { %1282 = vmatprep.subr.mxu0 %v975_v15  ;;  %1443 = vmatprep.subr.mxu1 %v1103_v16  ;;  %v1039_v15 = vld [vmem:[#allocation5 + $0x208] sm:$0xff] }
  0xa5   : > { %1283 = vmatpush1.msra.mxu0 %v974_v17  ;;  %1444 = vmatpush1.msra.mxu1 %v1102_v18  ;;  %v1167_v16 = vld [vmem:[#allocation5 + $0x608] sm:$0xff]  ;;  %v1038_v17 = vld [vmem:[#allocation5 + $0x200] sm:$0xff] }
  0xa6   : > { %1284 = vmatprep.subr.mxu0 %v1099_v19  ;;  %1445 = vmatprep.subr.mxu1 %v1227_v20  ;;  %v1166_v18 = vld [vmem:[#allocation5 + $0x600] sm:$0xff]  ;;  %v1037_v19 = vld [vmem:[#allocation5 + $0x1f8] sm:$0xff] }
  0xa7   : > { %1285 = vmatpush2.msra.mxu0 %v1098_v21  ;;  %1446 = vmatpush2.msra.mxu1 %v1226_v22  ;;  %v1165_v20 = vld [vmem:[#allocation5 + $0x5f8] sm:$0xff]  ;;  %v568_v21 = vlaneseq }
  0xa8   : > { %1286 = vmatprep.subr.mxu0 %v1095_v0  ;;  %1447 = vmatprep.subr.mxu1 %v1223_v23 }
  0xa9   : > { %1287 = vmatpush2.msra.mxu0 %v1094_v24  ;;  %1448 = vmatpush2.msra.mxu1 %v1222_v25  ;;  %v3919_v22 = vshrl.u32 %v568_v21, 7  ;;  %v566_v24 = vld [vmem:[%s4935_s2] sm:$0xf] }
  0xaa   : > { %1288 = vmatprep.subr.mxu0 %v1091_v26  ;;  %1449 = vmatprep.subr.mxu1 %v1219_v27 }
  0xab   : > { %1289 = vmatpush2.msra.mxu0 %v1090_v28  ;;  %1450 = vmatpush2.msra.mxu1 %v1218_v29  ;;  %5029 = vst [vmem:[#allocation16_spill] sm:$0xff] %v3919_v22  ;;  %v4954_v0 = vsub.s32 2, %v3919_v22  ;;  %v3923_v23 = vsub.s32 0, %v3919_v22  ;;  %v3929_v25 = vsub.s32 1, %v3919_v22  ;;  %v4953_v26 = vsub.s32 3, %v3919_v22  ;;  %v1105_v22 = vld [vmem:[#allocation5 + $0x418] sm:$0xff] }
  0xac   : > { %1290 = vmatprep.subr.mxu0 %v1087_v30  ;;  %1451 = vmatprep.subr.mxu1 %v1215_v31 }
  0xad   : > { %1291 = vmatpush2.msra.mxu0 %v1086_v32  ;;  %1452 = vmatpush2.msra.mxu1 %v1214_v33  ;;  %5030 = vst [vmem:[#allocation17_spill] sm:$0xff] %v3923_v23  ;;  %5031 = vst [vmem:[#allocation18_spill] sm:$0xff] %v3929_v25  ;;  %v3934_v27 = vrot.slane %v566_v24, %v4954_v0  ;;  %v3937_v28 = vrot.slane %v566_v24, %v3923_v23  ;;  %v1136_v0 = vld [vmem:[#allocation5 + $0x510] sm:$0xff] }
  0xae   : > { %1292 = vmatprep.subr.mxu0 %v1083_v34  ;;  %1453 = vmatprep.subr.mxu1 %v1211_v35  ;;  %v3940_v29 = vrot.slane %v566_v24, %v3929_v25  ;;  %v3944_v30 = vrot.slane %v566_v24, %v4953_v26  ;;  %v1096_v23 = vld [vmem:[#allocation5 + $0x3d0] sm:$0xff] }
  0xaf   : > { %1293 = vmatpush2.msra.mxu0 %v1082_v36  ;;  %1454 = vmatpush2.msra.mxu1 %v1210_v37 }
  0xb0   : > { %1294 = vmatprep.subr.mxu0 %v1079_v38  ;;  %1455 = vmatprep.subr.mxu1 %v1207_v39 }
  0xb1   : > { %1295 = vmatpush2.msra.mxu0 %v1078_v40  ;;  %1456 = vmatpush2.msra.mxu1 %v1206_v41 }
  0xb2   : > { %1296 = vmatprep.subr.mxu0 %v1075_v42  ;;  %1457 = vmatprep.subr.mxu1 %v1203_v43 }
  0xb3   : > { %1297 = vmatpush2.msra.mxu0 %v1074_v44  ;;  %1458 = vmatpush2.msra.mxu1 %v1202_v45 }
  0xb4   : > { %1298 = vmatprep.subr.mxu0 %v1071_v46  ;;  %1459 = vmatprep.subr.mxu1 %v1199_v47 }
  0xb5   : > { %1299 = vmatpush2.msra.mxu0 %v1070_v48  ;;  %1460 = vmatpush2.msra.mxu1 %v1198_v49  ;;  %v1036_v48 = vld [vmem:[#allocation5 + $0x1f0] sm:$0xff] }
  0xb6   : > { %1300 = vmatprep.subr.mxu0 %v1067_v50  ;;  %1461 = vmatprep.subr.mxu1 %v1195_v51  ;;  %v1164_v49 = vld [vmem:[#allocation5 + $0x5f0] sm:$0xff] }
  0xb7   : > { %1301 = vmatpush2.msra.mxu0 %v1066_v52  ;;  %1462 = vmatpush2.msra.mxu1 %v1194_v53  ;;  %v1033_v53 = vld [vmem:[#allocation5 + $0x1d8] sm:$0xff] }
  0xb8   : > { %1302 = vmatprep.subr.mxu0 %v1063_v54  ;;  %1463 = vmatprep.subr.mxu1 %v1191_v55  ;;  %v1161_v54 = vld [vmem:[#allocation5 + $0x5d8] sm:$0xff] }
  0xb9   : > { %1303 = vmatpush2.msra.mxu0 %v1062_v56  ;;  %1464 = vmatpush2.msra.mxu1 %v1190_v57  ;;  %v1032_v57 = vld [vmem:[#allocation5 + $0x1d0] sm:$0xff] }
  0xba   : > { %1304 = vmatprep.subr.mxu0 %v1059_v58  ;;  %1465 = vmatprep.subr.mxu1 %v1187_v59 }
  0xbb   : > { %1305 = vmatpush2.msra.mxu0 %v1058_v60  ;;  %1466 = vmatpush2.msra.mxu1 %v1186_v61  ;;  %v1029_v60 = vld [vmem:[#allocation5 + $0x1b8] sm:$0xff] }
  0xbc   : > { %1306 = vmatprep.subr.mxu0 %v1055_v62  ;;  %1467 = vmatprep.subr.mxu1 %v1183_v63 }
  0xbd   : > { %1307 = vmatpush2.msra.mxu0 %v1054_v1  ;;  %1468 = vmatpush2.msra.mxu1 %v1182_v2  ;;  %v1160_v1 = vld [vmem:[#allocation5 + $0x5d0] sm:$0xff] }
  0xbe   : > { %1308 = vmatprep.subr.mxu0 %v1051_v3  ;;  %1469 = vmatprep.subr.mxu1 %v1179_v4 }
  0xbf   : > { %1309 = vmatpush2.msra.mxu0 %v1050_v5  ;;  %1470 = vmatpush2.msra.mxu1 %v1178_v6  ;;  %v1028_v5 = vld [vmem:[#allocation5 + $0x1b0] sm:$0xff] }
  0xc0   : > { %1310 = vmatprep.subr.mxu0 %v1047_v7  ;;  %1471 = vmatprep.subr.mxu1 %v1175_v8 }
  0xc1   : > { %1311 = vmatpush2.msra.mxu0 %v1046_v9  ;;  %1472 = vmatpush2.msra.mxu1 %v1174_v10  ;;  %v1157_v9 = vld [vmem:[#allocation5 + $0x5b8] sm:$0xff] }
  0xc2   : > { %1312 = vmatprep.subr.mxu0 %v1043_v11  ;;  %1473 = vmatprep.subr.mxu1 %v1171_v12  ;;  %v1025_v10 = vld [vmem:[#allocation5 + $0x198] sm:$0xff] }
  0xc3   : > { %1313 = vmatpush2.msra.mxu0 %v1042_v13  ;;  %1474 = vmatpush2.msra.mxu1 %v1170_v14  ;;  %v1156_v13 = vld [vmem:[#allocation5 + $0x5b0] sm:$0xff] }
  0xc4   : > { %1314 = vmatprep.subr.mxu0 %v1039_v15  ;;  %1475 = vmatprep.subr.mxu1 %v1167_v16  ;;  %v1024_v14 = vld [vmem:[#allocation5 + $0x190] sm:$0xff] }
  0xc5   : > { %1315 = vmatpush2.msra.mxu0 %v1038_v17  ;;  %1476 = vmatpush2.msra.mxu1 %v1166_v18  ;;  %v1153_v18 = vld [vmem:[#allocation5 + $0x598] sm:$0xff] }
  0xc6   : > { %1574 = vmatprep.subr.mxu0 %v1037_v19  ;;  %1735 = vmatprep.subr.mxu1 %v1165_v20  ;;  %v1021_v20 = vld [vmem:[#allocation5 + $0x178] sm:$0xff] }
 0x127   : > { %v654_v31 = vpop.f32.mrf.mxu0  ;;  %v815_v32 = vpop.f32.mrf.mxu1 }
 0x128   : > { %v3947_v33 = vadd.f32 %v815_v32, %v3934_v27  ;;  %v3950_v34 = vadd.f32 %v654_v31, %v3937_v28  ;;  %v1152_v31 = vld [vmem:[#allocation5 + $0x590] sm:$0xff] }
 0x129   : > { %v656_v35 = vpop.f32.mrf.mxu0  ;;  %v817_v36 = vpop.f32.mrf.mxu1 }
 0x12a   : > { %v3953_v37 = vadd.f32 %v656_v35, %v3940_v29  ;;  %v3956_v38 = vadd.f32 %v817_v36, %v3944_v30  ;;  %v4973_v39 = vmax.f32 %v3947_v33, 0.0  ;;  %v4977_v44 = vmax.f32 %v3950_v34, 0.0 }
 0x12b   : > { %v660_v40 = vpop.f32.mrf.mxu0  ;;  %v821_v41 = vpop.f32.mrf.mxu1 }
 0x12c   : > { %v4981_v42 = vmax.f32 %v3953_v37, 0.0  ;;  %v4979_v43 = vmax.f32 %v3956_v38, 0.0  ;;  %v3963_v45 = vadd.f32 %v821_v41, %v3934_v27  ;;  %v3966_v50 = vadd.f32 %v660_v40, %v3937_v28  ;;  %v1020_v40 = vld [vmem:[#allocation5 + $0x170] sm:$0xff] }
 0x12d   : > { %v662_v46 = vpop.f32.mrf.mxu0  ;;  %v823_v47 = vpop.f32.mrf.mxu1 }
 0x12e   : > { %v3969_v51 = vadd.f32 %v662_v46, %v3940_v29  ;;  %v3972_v52 = vadd.f32 %v823_v47, %v3944_v30  ;;  %1316 = vmatprep.mubr.f32.mxu0 %v4981_v42  ;;  %1477 = vmatprep.mubr.f32.mxu1 %v4979_v43  ;;  %v4966_v61 = vmax.f32 %v3963_v45, 0.0  ;;  %v4970_v2 = vmax.f32 %v3966_v50, 0.0  ;;  %v1149_v46 = vld [vmem:[#allocation5 + $0x578] sm:$0xff] }
 0x12f   : > { %v666_v55 = vpop.f32.mrf.mxu0  ;;  %v827_v56 = vpop.f32.mrf.mxu1  ;;  %1317 = vmatmul.mubr.f32.vlgmr.msra.gmra.mxu0 %v4977_v44  ;;  %1478 = vmatmul.mubr.f32.vlgmr.msra.gmra.mxu1 %v4973_v39  ;;  %v1017_v47 = vld [vmem:[#allocation5 + $0x158] sm:$0xff]  ;;  %v984_v44 = vld [vmem:[#allocation5 + $0x50] sm:$0xff] }
 0x130   : > { %v4975_v58 = vmax.f32 %v3969_v51, 0.0  ;;  %v4971_v59 = vmax.f32 %v3972_v52, 0.0  ;;  %1575 = vmatpush1.msra.mxu0 %v1036_v48  ;;  %1736 = vmatpush1.msra.mxu1 %v1164_v49  ;;  %v3995_v6 = vadd.f32 %v827_v56, %v3934_v27  ;;  %v4000_v11 = vadd.f32 %v666_v55, %v3937_v28  ;;  %v1148_v55 = vld [vmem:[#allocation5 + $0x570] sm:$0xff] }
 0x131   : > { %1576 = vmatprep.subr.mxu0 %v1033_v53  ;;  %v668_v62 = vpop.f32.mrf.mxu0  ;;  %v829_v63 = vpop.f32.mrf.mxu1  ;;  %1737 = vmatprep.subr.mxu1 %v1161_v54  ;;  %v1016_v56 = vld [vmem:[#allocation5 + $0x150] sm:$0xff] }
 0x132   : > { %v3987_v3 = vadd.f32 %v668_v62, %v3940_v29  ;;  %v3990_v4 = vadd.f32 %v829_v63, %v3944_v30  ;;  %1577 = vmatpush1.msra.mxu0 %v1032_v57  ;;  %1322 = vmatprep.mubr.f32.mxu0 %v4975_v58  ;;  %v4959_v21 = vmax.f32 %v3995_v6, 0.0  ;;  %v4963_v36 = vmax.f32 %v4000_v11, 0.0 }
 0x133   : > { %1483 = vmatprep.mubr.f32.mxu1 %v4971_v59  ;;  %1578 = vmatprep.subr.mxu0 %v1029_v60  ;;  %v672_v7 = vpop.f32.mrf.mxu0  ;;  %v833_v8 = vpop.f32.mrf.mxu1  ;;  %v1145_v60 = vld [vmem:[#allocation5 + $0x558] sm:$0xff] }
 0x134   : > { %v4968_v12 = vmax.f32 %v3987_v3, 0.0  ;;  %1738 = vmatpush1.msra.mxu1 %v1160_v1  ;;  %1323 = vmatmul.mubr.f32.gmra.mxu0 %v4970_v2  ;;  %v4965_v15 = vmax.f32 %v3990_v4, 0.0  ;;  %v4019_v41 = vadd.f32 %v833_v8, %v3934_v27  ;;  %v4024_v53 = vadd.f32 %v672_v7, %v3937_v28 }
 0x135   : > { %1484 = vmatmul.mubr.f32.gmra.mxu1 %v4966_v61  ;;  %1579 = vmatpush1.msra.mxu0 %v1028_v5  ;;  %v674_v16 = vpop.f32.mrf.mxu0  ;;  %v835_v17 = vpop.f32.mrf.mxu1  ;;  %v1013_v5 = vld [vmem:[#allocation5 + $0x138] sm:$0xff] }
 0x136   : > { %1739 = vmatprep.subr.mxu1 %v1157_v9  ;;  %1580 = vmatprep.subr.mxu0 %v1025_v10  ;;  %v4009_v19 = vadd.f32 %v674_v16, %v3940_v29  ;;  %v4013_v24 = vadd.f32 %v835_v17, %v3944_v30  ;;  %v4956_v7 = vmax.f32 %v4019_v41, 0.0  ;;  %v1144_v9 = vld [vmem:[#allocation5 + $0x550] sm:$0xff] }
 0x137   : > { %1740 = vmatpush1.msra.mxu1 %v1156_v13  ;;  %1581 = vmatpush1.msra.mxu0 %v1024_v14  ;;  %v678_v32 = vpop.f32.mrf.mxu0  ;;  %v839_v35 = vpop.f32.mrf.mxu1  ;;  %v4955_v14 = vmax.f32 %v4024_v53, 0.0  ;;  %v1012_v16 = vld [vmem:[#allocation5 + $0x130] sm:$0xff] }
 0x138   : > { %1741 = vmatprep.subr.mxu1 %v1153_v18  ;;  %1328 = vmatprep.mubr.f32.mxu0 %v4968_v12  ;;  %v4961_v54 = vmax.f32 %v4009_v19, 0.0  ;;  %v4957_v57 = vmax.f32 %v4013_v24, 0.0  ;;  %v4043_v17 = vadd.f32 %v839_v35, %v3934_v27  ;;  %v1141_v18 = vld [vmem:[#allocation5 + $0x538] sm:$0xff]  ;;  %v1140_v35 = vld [vmem:[#allocation5 + $0x530] sm:$0xff] }
 0x139   : > { %1489 = vmatprep.mubr.f32.mxu1 %v4965_v15  ;;  %1582 = vmatprep.subr.mxu0 %v1021_v20  ;;  %v680_v48 = vpop.f32.mrf.mxu0  ;;  %v841_v49 = vpop.f32.mrf.mxu1  ;;  %v1009_v20 = vld [vmem:[#allocation5 + $0x118] sm:$0xff]  ;;  %v992_v12 = vld [vmem:[#allocation5 + $0x90] sm:$0xff] }
 0x13a   : > { %1742 = vmatpush1.msra.mxu1 %v1152_v31  ;;  %1329 = vmatmul.mubr.f32.gmra.mxu0 %v4963_v36  ;;  %v4033_v1 = vadd.f32 %v680_v48, %v3940_v29  ;;  %v4037_v8 = vadd.f32 %v841_v49, %v3944_v30  ;;  %v1008_v48 = vld [vmem:[#allocation5 + $0x110] sm:$0xff] }
 0x13b   : > { %1490 = vmatmul.mubr.f32.gmra.mxu1 %v4959_v21  ;;  %1583 = vmatpush1.msra.mxu0 %v1020_v40  ;;  %v684_v62 = vpop.f32.mrf.mxu0  ;;  %v845_v63 = vpop.f32.mrf.mxu1 }
 0x13c   : > { %1743 = vmatprep.subr.mxu1 %v1149_v46  ;;  %1584 = vmatprep.subr.mxu0 %v1017_v47  ;;  %v4050_v46 = vadd.f32 %v678_v32, %v3937_v28  ;;  %v4958_v47 = vmax.f32 %v4033_v1, 0.0  ;;  %v4960_v49 = vmax.f32 %v4037_v8, 0.0 }
 0x13d   : > { %1744 = vmatpush1.msra.mxu1 %v1148_v55  ;;  %1585 = vmatpush1.msra.mxu0 %v1016_v56  ;;  %v686_v10 = vpop.f32.mrf.mxu0  ;;  %v847_v13 = vpop.f32.mrf.mxu1  ;;  %v1137_v55 = vld [vmem:[#allocation5 + $0x518] sm:$0xff] }
 0x13e   : > { %1745 = vmatprep.subr.mxu1 %v1145_v60  ;;  %1334 = vmatprep.mubr.f32.mxu0 %v4961_v54  ;;  %v4059_v32 = vadd.f32 %v686_v10, %v3940_v29  ;;  %v4063_v26 = vadd.f32 %v847_v13, %v3944_v30  ;;  %v1004_v10 = vld [vmem:[#allocation5 + $0xf0] sm:$0xff]  ;;  %v1133_v13 = vld [vmem:[#allocation5 + $0x4f8] sm:$0xff] }
 0x13f   : > { %1495 = vmatprep.mubr.f32.mxu1 %v4957_v57  ;;  %1586 = vmatprep.subr.mxu0 %v1013_v5  ;;  %v4047_v31 = vpop.f32.mrf.mxu0  ;;  %v851_v40 = vpop.f32.mrf.mxu1  ;;  %v1005_v5 = vld [vmem:[#allocation5 + $0xf8] sm:$0xff]  ;;  %v4078_v57 = vadd.f32 %v684_v62, %v3937_v28 }
 0x140   : > { %1746 = vmatpush1.msra.mxu1 %v1144_v9  ;;  %1335 = vmatmul.mubr.f32.gmra.mxu0 %v4955_v14  ;;  %v4964_v9 = vmax.f32 %v4043_v17, 0.0  ;;  %v4969_v21 = vmax.f32 %v4063_v26, 0.0  ;;  %v997_v62 = vld [vmem:[#allocation5 + $0xb8] sm:$0xff] }
 0x141   : > { %1496 = vmatmul.mubr.f32.gmra.mxu1 %v4956_v7  ;;  %1587 = vmatpush1.msra.mxu0 %v1012_v16  ;;  %v692_v56 = vpop.f32.mrf.mxu0  ;;  %v853_v60 = vpop.f32.mrf.mxu1  ;;  %v4962_v7 = vmax.f32 %v4050_v46, 0.0  ;;  %v4972_v61 = vmax.f32 %v4078_v57, 0.0 }
 0x142   : > { %1747 = vmatprep.subr.mxu1 %v1141_v18  ;;  %1588 = vmatprep.subr.mxu0 %v1009_v20  ;;  %v4073_v18 = vadd.f32 %v845_v63, %v3934_v27  ;;  %v1001_v20 = vld [vmem:[#allocation5 + $0xd8] sm:$0xff]  ;;  %v1000_v63 = vld [vmem:[#allocation5 + $0xd0] sm:$0xff]  ;;  %v4095_v36 = vadd.f32 %v853_v60, %v3944_v30 }
 0x143   : > { %1748 = vmatpush1.msra.mxu1 %v1140_v35  ;;  %1589 = vmatpush1.msra.mxu0 %v1008_v48  ;;  %v4065_v14 = vpop.f32.mrf.mxu0  ;;  %v4067_v16 = vpop.f32.mrf.mxu1  ;;  %v993_v60 = vld [vmem:[#allocation5 + $0x98] sm:$0xff] }
 0x144   : > { %1749 = vmatprep.subr.mxu1 %v1137_v55  ;;  %1340 = vmatprep.mubr.f32.mxu0 %v4958_v47  ;;  %v4967_v55 = vmax.f32 %v4059_v32, 0.0  ;;  %v1132_v47 = vld [vmem:[#allocation5 + $0x4f0] sm:$0xff] }
 0x145   : > { %1501 = vmatprep.mubr.f32.mxu1 %v4960_v49  ;;  %1590 = vmatprep.subr.mxu0 %v1005_v5  ;;  %v698_v35 = vpop.f32.mrf.mxu0  ;;  %v859_v48 = vpop.f32.mrf.mxu1  ;;  %v1129_v5 = vld [vmem:[#allocation5 + $0x4d8] sm:$0xff] }
 0x146   : > { %1750 = vmatpush1.msra.mxu1 %v1136_v0  ;;  %1341 = vmatmul.mubr.f32.gmra.mxu0 %v4962_v7  ;;  %v4091_v0 = vadd.f32 %v692_v56, %v3940_v29  ;;  %v4974_v7 = vmax.f32 %v4073_v18, 0.0  ;;  %v4101_v56 = vadd.f32 %v851_v40, %v3934_v27  ;;  %v1124_v40 = vld [vmem:[#allocation5 + $0x4b0] sm:$0xff]  ;;  %v4128_v39 = vadd.f32 %v859_v48, %v3944_v30  ;;  %v985_v48 = vld [vmem:[#allocation5 + $0x58] sm:$0xff] }
 0x147   : > { %1502 = vmatmul.mubr.f32.gmra.mxu1 %v4964_v9  ;;  %1591 = vmatpush1.msra.mxu0 %v1004_v10  ;;  %v4086_v49 = vpop.f32.mrf.mxu0  ;;  %v4088_v54 = vpop.f32.mrf.mxu1  ;;  %v1128_v9 = vld [vmem:[#allocation5 + $0x4d0] sm:$0xff] }
 0x148   : > { %1751 = vmatprep.subr.mxu1 %v1133_v13  ;;  %1592 = vmatprep.subr.mxu0 %v1001_v20  ;;  %v996_v13 = vld [vmem:[#allocation5 + $0xb0] sm:$0xff] }
 0x149   : > { %1752 = vmatpush1.msra.mxu1 %v1132_v47  ;;  %1593 = vmatpush1.msra.mxu0 %v1000_v63  ;;  %v704_v10 = vpop.f32.mrf.mxu0  ;;  %v865_v15 = vpop.f32.mrf.mxu1  ;;  %v1125_v47 = vld [vmem:[#allocation5 + $0x4b8] sm:$0xff] }
 0x14a   : > { %1753 = vmatprep.subr.mxu1 %v1129_v5  ;;  %1346 = vmatprep.mubr.f32.mxu0 %v4967_v55  ;;  %v4111_v5 = vadd.f32 %v4047_v31, %v3937_v28  ;;  %v4976_v55 = vmax.f32 %v4091_v0, 0.0  ;;  %v4124_v31 = vadd.f32 %v698_v35, %v3940_v29  ;;  %v4162_v42 = vadd.f32 %v865_v15, %v3944_v30  ;;  %v977_v15 = vld [vmem:[#allocation5 + $0x18] sm:$0xff] }
 0x14b   : > { %1507 = vmatprep.mubr.f32.mxu1 %v4969_v21  ;;  %1594 = vmatprep.subr.mxu0 %v997_v62  ;;  %v4105_v20 = vpop.f32.mrf.mxu0  ;;  %v4107_v63 = vpop.f32.mrf.mxu1  ;;  %v4978_v62 = vmax.f32 %v4095_v36, 0.0  ;;  %v1121_v21 = vld [vmem:[#allocation5 + $0x498] sm:$0xff] }
 0x14c   : > { %1754 = vmatpush1.msra.mxu1 %v1128_v9  ;;  %1347 = vmatmul.mubr.f32.gmra.mxu0 %v4972_v61  ;;  %v989_v9 = vld [vmem:[#allocation5 + $0x78] sm:$0xff]  ;;  %v4982_v61 = vmax.f32 %v4101_v56, 0.0  ;;  %v4980_v58 = vmax.f32 %v4111_v5, 0.0  ;;  %5032 = vst [vmem:[#allocation19_spill] sm:$0xff] %v4162_v42 }
 0x14d   : > { %1508 = vmatmul.mubr.f32.gmra.mxu1 %v4974_v7  ;;  %1595 = vmatpush1.msra.mxu0 %v996_v13  ;;  %v4119_v2 = vpop.f32.mrf.mxu0  ;;  %v4121_v59 = vpop.f32.mrf.mxu1  ;;  %v1120_v7 = vld [vmem:[#allocation5 + $0x490] sm:$0xff] }
 0x14e   : > { %1755 = vmatprep.subr.mxu1 %v1125_v47  ;;  %1596 = vmatprep.subr.mxu0 %v993_v60  ;;  %v988_v47 = vld [vmem:[#allocation5 + $0x70] sm:$0xff]  ;;  %v4139_v60 = vadd.f32 %v4067_v16, %v3934_v27  ;;  %v4984_v16 = vmax.f32 %v4128_v39, 0.0 }
 0x14f   : > { %1756 = vmatpush1.msra.mxu1 %v1124_v40  ;;  %1597 = vmatpush1.msra.mxu0 %v992_v12  ;;  %v4130_v13 = vpop.f32.mrf.mxu0  ;;  %v4135_v35 = vpop.f32.mrf.mxu1  ;;  %v1117_v12 = vld [vmem:[#allocation5 + $0x478] sm:$0xff]  ;;  %v4145_v40 = vadd.f32 %v4065_v14, %v3937_v28  ;;  %v4156_v14 = vadd.f32 %v704_v10, %v3940_v29  ;;  %v4169_v10 = vadd.f32 %v4088_v54, %v3934_v27  ;;  %v1108_v54 = vld [vmem:[#allocation5 + $0x430] sm:$0xff] }
 0x150   : > { %1757 = vmatprep.subr.mxu1 %v1121_v21  ;;  %1352 = vmatprep.mubr.f32.mxu0 %v4976_v55  ;;  %v4983_v21 = vmax.f32 %v4124_v31, 0.0  ;;  %v1116_v55 = vld [vmem:[#allocation5 + $0x470] sm:$0xff] }
 0x151   : > { %1513 = vmatprep.mubr.f32.mxu1 %v4978_v62  ;;  %1598 = vmatprep.subr.mxu0 %v989_v9  ;;  %v1113_v9 = vld [vmem:[#allocation5 + $0x458] sm:$0xff]  ;;  %v4153_v62 = vpop.f32.mrf.mxu0  ;;  %v4158_v43 = vpop.f32.mrf.mxu1  ;;  %5033 = vst [vmem:[#allocation20_spill] sm:$0xff] %v4169_v10 }
 0x152   : > { %1758 = vmatpush1.msra.mxu1 %v1120_v7  ;;  %1353 = vmatmul.mubr.f32.gmra.mxu0 %v4980_v58  ;;  %v981_v7 = vld [vmem:[#allocation5 + $0x38] sm:$0xff] }
 0x153   : > { %1514 = vmatmul.mubr.f32.gmra.mxu1 %v4982_v61  ;;  %1599 = vmatpush1.msra.mxu0 %v988_v47  ;;  %v1112_v61 = vld [vmem:[#allocation5 + $0x450] sm:$0xff]  ;;  %v4987_v47 = vmax.f32 %v4145_v40, 0.0  ;;  %v4182_v58 = vpop.f32.mrf.mxu1 }
 0x154   : > { %1759 = vmatprep.subr.mxu1 %v1117_v12  ;;  %1600 = vmatprep.subr.mxu0 %v985_v48  ;;  %v980_v12 = vld [vmem:[#allocation5 + $0x30] sm:$0xff]  ;;  %v4173_v48 = vpop.f32.mrf.mxu0 }
 0x155   : > { %1760 = vmatpush1.msra.mxu1 %v1116_v55  ;;  %1601 = vmatpush1.msra.mxu0 %v984_v44  ;;  %v1109_v55 = vld [vmem:[#allocation5 + $0x438] sm:$0xff]  ;;  %v4177_v44 = vadd.f32 %v4086_v49, %v3937_v28  ;;  %v4189_v49 = vadd.f32 %v4119_v2, %v3940_v29  ;;  %v883_v2 = vpop.f32.mrf.mxu1 }
 0x156   : > { %1761 = vmatprep.subr.mxu1 %v1113_v9  ;;  %1358 = vmatprep.mubr.f32.mxu0 %v4983_v21  ;;  %v976_v21 = vld [vmem:[#allocation5 + $0x10] sm:$0xff]  ;;  %v4194_v9 = vadd.f32 %v4121_v59, %v3944_v30  ;;  %v722_v25 = vpop.f32.mrf.mxu0  ;;  %v1229_v59 = vld [vmem:[#allocation5 + $0x7f8] sm:$0xff] }
 0x157   : > { %1519 = vmatprep.mubr.f32.mxu1 %v4984_v16  ;;  %1602 = vmatprep.subr.mxu0 %v981_v7  ;;  %v5034_v16 = vmax.f32 %v4139_v60, 0.0  ;;  %5035 = vst [vmem:[#allocation21_spill] sm:$0xff] %v4189_v49  ;;  %v1104_v7 = vld [vmem:[#allocation5 + $0x410] sm:$0xff] }
 0x158   : > { %1762 = vmatpush1.msra.mxu1 %v1112_v61  ;;  %1359 = vmatmul.mubr.f32.gmra.mxu0 %v4987_v47  ;;  %v1101_v61 = vld [vmem:[#allocation5 + $0x3f8] sm:$0xff]  ;;  %5036 = vst [vmem:[#allocation22_spill] sm:$0xff] %v4194_v9  ;;  %v4207_v47 = vadd.f32 %v4105_v20, %v3937_v28  ;;  %v4219_v20 = vadd.f32 %v4153_v62, %v3940_v29  ;;  %v1092_v62 = vld [vmem:[#allocation5 + $0x3b0] sm:$0xff] }
 0x159   : > { %1520 = vmatmul.mubr.f32.gmra.mxu1 %v5034_v16  ;;  %1603 = vmatpush1.msra.mxu0 %v980_v12  ;;  %v4993_v16 = vmax.f32 %v4177_v44, 0.0  ;;  %v5037_v12 = vmax.f32 %v4156_v14, 0.0 }
 0x15a   : > { %1763 = vmatprep.subr.mxu1 %v1109_v55  ;;  %1604 = vmatprep.subr.mxu0 %v977_v15  ;;  %v1100_v55 = vld [vmem:[#allocation5 + $0x3f0] sm:$0xff]  ;;  %v4201_v15 = vadd.f32 %v4107_v63, %v3934_v27  ;;  %5040 = vst [vmem:[#allocation24_spill] sm:$0xff] %v4207_v47  ;;  %v4226_v63 = vadd.f32 %v4158_v43, %v3944_v30  ;;  %v1089_v43 = vld [vmem:[#allocation5 + $0x398] sm:$0xff] }
 0x15b   : > { %1764 = vmatpush1.msra.mxu1 %v1108_v54  ;;  %1605 = vmatpush1.msra.mxu0 %v976_v21  ;;  %v5039_v54 = vmax.f32 %v4162_v42, 0.0  ;;  %v1097_v21 = vld [vmem:[#allocation5 + $0x3d8] sm:$0xff]  ;;  %v5041_v42 = vmax.f32 %v4169_v10, 0.0 }
 0x15c   : > { %1765 = vmatprep.subr.mxu1 %v1105_v22  ;;  %1364 = vmatprep.mubr.f32.mxu0 %v5037_v12  ;;  %5038 = vst [vmem:[#allocation23_spill] sm:$0xff] %v4201_v15  ;;  %v1228_v12 = vld [vmem:[#allocation5 + $0x7f0] sm:$0xff]  ;;  %v4221_v22 = vpop.f32.mrf.mxu1  ;;  %5042 = vst [vmem:[#allocation25_spill] sm:$0xff] %v4226_v63 }
 0x15d   : > { %1525 = vmatprep.mubr.f32.mxu1 %v5039_v54  ;;  %1606 = vmatprep.subr.mxu0 %v1101_v61  ;;  %v1225_v61 = vld [vmem:[#allocation5 + $0x7d8] sm:$0xff]  ;;  %v4215_v54 = vpop.f32.mrf.mxu0 }
 0x15e   : > { %1766 = vmatpush1.msra.mxu1 %v1104_v7  ;;  %1365 = vmatmul.mubr.f32.gmra.mxu0 %v4993_v16  ;;  %v1093_v7 = vld [vmem:[#allocation5 + $0x3b8] sm:$0xff]  ;;  %v5045_v16 = vmax.f32 %v4194_v9, 0.0 }
 0x15f   : > { %1526 = vmatmul.mubr.f32.gmra.mxu1 %v5041_v42  ;;  %1607 = vmatpush2.msra.mxu0 %v1100_v55  ;;  %v1224_v42 = vld [vmem:[#allocation5 + $0x7d0] sm:$0xff]  ;;  %v4997_v55 = vmax.f32 %v4207_v47, 0.0  ;;  %v728_v10 = vpop.f32.mrf.mxu0 }
 0x160   : > { %1767 = vmatprep.subr.mxu1 %v1229_v59  ;;  %1608 = vmatprep.subr.mxu0 %v1097_v21  ;;  %v5043_v59 = vmax.f32 %v4189_v49, 0.0  ;;  %v4233_v21 = vadd.f32 %v4135_v35, %v3934_v27  ;;  %v1088_v35 = vld [vmem:[#allocation5 + $0x390] sm:$0xff]  ;;  %v889_v49 = vpop.f32.mrf.mxu1 }
 0x161   : > { %1768 = vmatpush2.msra.mxu1 %v1228_v12  ;;  %1609 = vmatpush2.msra.mxu0 %v1096_v23  ;;  %v1221_v12 = vld [vmem:[#allocation5 + $0x7b8] sm:$0xff]  ;;  %v4239_v23 = vadd.f32 %v4130_v13, %v3937_v28  ;;  %v4248_v13 = vadd.f32 %v722_v25, %v3940_v29  ;;  %v1216_v47 = vld [vmem:[#allocation5 + $0x790] sm:$0xff]  ;;  %v4254_v9 = vpop.f32.mrf.mxu0 }
 0x162   : > { %1769 = vmatprep.subr.mxu1 %v1225_v61  ;;  %1370 = vmatprep.mubr.f32.mxu0 %v5043_v59  ;;  %5044 = vst [vmem:[#allocation26_spill] sm:$0xff] %v4233_v21  ;;  %v1220_v59 = vld [vmem:[#allocation5 + $0x7b0] sm:$0xff]  ;;  %v1085_v61 = vld [vmem:[#allocation5 + $0x378] sm:$0xff]  ;;  %v4259_v25 = vpop.f32.mrf.mxu1 }
 0x163   : > { %1531 = vmatprep.mubr.f32.mxu1 %v5045_v16  ;;  %1610 = vmatprep.subr.mxu0 %v1093_v7  ;;  %5046 = vst [vmem:[#allocation27_spill] sm:$0xff] %v4239_v23  ;;  %v5047_v16 = vmax.f32 %v4201_v15, 0.0  ;;  %v1217_v7 = vld [vmem:[#allocation5 + $0x798] sm:$0xff]  ;;  %v1080_v15 = vld [vmem:[#allocation5 + $0x350] sm:$0xff] }
 0x164   : > { %1770 = vmatpush2.msra.mxu1 %v1224_v42  ;;  %1371 = vmatmul.mubr.f32.gmra.mxu0 %v4997_v55  ;;  %v4252_v55 = vadd.f32 %v883_v2, %v3944_v30  ;;  %v5051_v2 = vmax.f32 %v4226_v63, 0.0  ;;  %v4269_v42 = vadd.f32 %v4173_v48, %v3937_v28  ;;  %v5053_v63 = vmax.f32 %v4233_v21, 0.0 }
 0x165   : > { %1532 = vmatmul.mubr.f32.gmra.mxu1 %v5047_v16  ;;  %1611 = vmatpush2.msra.mxu0 %v1092_v62  ;;  %v5002_v16 = vmax.f32 %v4239_v23, 0.0  ;;  %v5049_v62 = vmax.f32 %v4219_v20, 0.0  ;;  %v4278_v48 = vadd.f32 %v728_v10, %v3940_v29  ;;  %v4289_v10 = vadd.f32 %v4221_v22, %v3934_v27  ;;  %v1204_v22 = vld [vmem:[#allocation5 + $0x730] sm:$0xff] }
 0x166   : > { %1771 = vmatprep.subr.mxu1 %v1221_v12  ;;  %1612 = vmatprep.subr.mxu0 %v1089_v43  ;;  %5048 = vst [vmem:[#allocation28_spill] sm:$0xff] %v4252_v55  ;;  %v1084_v12 = vld [vmem:[#allocation5 + $0x370] sm:$0xff]  ;;  %v4263_v43 = vadd.f32 %v4182_v58, %v3934_v27  ;;  %5052 = vst [vmem:[#allocation30_spill] sm:$0xff] %v4269_v42 }
 0x167   : > { %1772 = vmatpush2.msra.mxu1 %v1220_v59  ;;  %1613 = vmatpush2.msra.mxu0 %v1088_v35  ;;  %v1213_v59 = vld [vmem:[#allocation5 + $0x778] sm:$0xff]  ;;  %v1208_v58 = vld [vmem:[#allocation5 + $0x750] sm:$0xff]  ;;  %5056 = vst [vmem:[#allocation32_spill] sm:$0xff] %v4289_v10 }
 0x168   : > { %1773 = vmatprep.subr.mxu1 %v1217_v7  ;;  %1376 = vmatprep.mubr.f32.mxu0 %v5049_v62  ;;  %5050 = vst [vmem:[#allocation29_spill] sm:$0xff] %v4263_v43  ;;  %v1081_v35 = vld [vmem:[#allocation5 + $0x358] sm:$0xff]  ;;  %v1212_v62 = vld [vmem:[#allocation5 + $0x770] sm:$0xff] }
 0x169   : > { %1537 = vmatprep.mubr.f32.mxu1 %v5051_v2  ;;  %1614 = vmatprep.subr.mxu0 %v1085_v61  ;;  %v1209_v61 = vld [vmem:[#allocation5 + $0x758] sm:$0xff]  ;;  %v734_v2 = vpop.f32.mrf.mxu0 }
 0x16a   : > { %1774 = vmatpush2.msra.mxu1 %v1216_v47  ;;  %1377 = vmatmul.mubr.f32.gmra.mxu0 %v5002_v16  ;;  %v1077_v7 = vld [vmem:[#allocation5 + $0x338] sm:$0xff]  ;;  %v895_v47 = vpop.f32.mrf.mxu1  ;;  %v4282_v16 = vadd.f32 %v889_v49, %v3944_v30 }
 0x16b   : > { %1538 = vmatmul.mubr.f32.gmra.mxu1 %v5053_v63  ;;  %1615 = vmatpush2.msra.mxu0 %v1084_v12  ;;  %v5005_v63 = vmax.f32 %v4269_v42, 0.0  ;;  %v5055_v12 = vmax.f32 %v4248_v13, 0.0  ;;  %v1073_v49 = vld [vmem:[#allocation5 + $0x318] sm:$0xff]  ;;  %v4293_v23 = vpop.f32.mrf.mxu0  ;;  %v1200_v42 = vld [vmem:[#allocation5 + $0x710] sm:$0xff] }
 0x16c   : > { %1775 = vmatprep.subr.mxu1 %v1213_v59  ;;  %1616 = vmatprep.subr.mxu0 %v1081_v35  ;;  %5054 = vst [vmem:[#allocation31_spill] sm:$0xff] %v4282_v16  ;;  %v1076_v59 = vld [vmem:[#allocation5 + $0x330] sm:$0xff]  ;;  %v5057_v35 = vmax.f32 %v4252_v55, 0.0  ;;  %v899_v21 = vpop.f32.mrf.mxu1  ;;  %v1201_v55 = vld [vmem:[#allocation5 + $0x718] sm:$0xff] }
 0x16d   : > { %1776 = vmatpush2.msra.mxu1 %v1212_v62  ;;  %1617 = vmatpush2.msra.mxu0 %v1080_v15  ;;  %v1205_v62 = vld [vmem:[#allocation5 + $0x738] sm:$0xff]  ;;  %v4297_v15 = vadd.f32 %v4215_v54, %v3937_v28  ;;  %v4306_v54 = vadd.f32 %v734_v2, %v3940_v29  ;;  %v4317_v2 = vadd.f32 %v4259_v25, %v3934_v27  ;;  %v1192_v25 = vld [vmem:[#allocation5 + $0x6d0] sm:$0xff] }
 0x16e   : > { %1777 = vmatprep.subr.mxu1 %v1209_v61  ;;  %1382 = vmatprep.mubr.f32.mxu0 %v5055_v12  ;;  %v1072_v12 = vld [vmem:[#allocation5 + $0x310] sm:$0xff]  ;;  %v1069_v61 = vld [vmem:[#allocation5 + $0x2f8] sm:$0xff] }
 0x16f   : > { %1543 = vmatprep.mubr.f32.mxu1 %v5057_v35  ;;  %1618 = vmatprep.subr.mxu0 %v1077_v7  ;;  %5058 = vst [vmem:[#allocation33_spill] sm:$0xff] %v4297_v15  ;;  %v5059_v7 = vmax.f32 %v4263_v43, 0.0  ;;  %v740_v35 = vpop.f32.mrf.mxu0  ;;  %v5010_v43 = vmax.f32 %v4297_v15, 0.0  ;;  %v1057_v15 = vld [vmem:[#allocation5 + $0x298] sm:$0xff] }
 0x170   : > { %1778 = vmatpush2.msra.mxu1 %v1208_v58  ;;  %1383 = vmatmul.mubr.f32.gmra.mxu0 %v5005_v63  ;;  %v4310_v63 = vadd.f32 %v895_v47, %v3944_v30  ;;  %v1197_v47 = vld [vmem:[#allocation5 + $0x6f8] sm:$0xff]  ;;  %v1064_v58 = vld [vmem:[#allocation5 + $0x2d0] sm:$0xff] }
 0x171   : > { %1544 = vmatmul.mubr.f32.gmra.mxu1 %v5059_v7  ;;  %1619 = vmatpush2.msra.mxu0 %v1076_v59  ;;  %v5061_v59 = vmax.f32 %v4278_v48, 0.0  ;;  %v4323_v7 = vadd.f32 %v4254_v9, %v3937_v28  ;;  %v4332_v9 = vadd.f32 %v740_v35, %v3940_v29  ;;  %v4342_v35 = vadd.f32 %v899_v21, %v3934_v27 }
 0x172   : > { %1779 = vmatprep.subr.mxu1 %v1205_v62  ;;  %1620 = vmatprep.subr.mxu0 %v1073_v49  ;;  %5060 = vst [vmem:[#allocation34_spill] sm:$0xff] %v4310_v63  ;;  %v1068_v62 = vld [vmem:[#allocation5 + $0x2f0] sm:$0xff]  ;;  %v901_v49 = vpop.f32.mrf.mxu1 }
 0x173   : > { %1780 = vmatpush2.msra.mxu1 %v1204_v22  ;;  %1621 = vmatpush2.msra.mxu0 %v1072_v12  ;;  %v5062_v22 = vmax.f32 %v4282_v16, 0.0  ;;  %v1065_v12 = vld [vmem:[#allocation5 + $0x2d8] sm:$0xff]  ;;  %5063 = vst [vmem:[#allocation35_spill] sm:$0xff] %v4323_v7  ;;  %v5064_v16 = vmax.f32 %v4289_v10, 0.0  ;;  %v1056_v10 = vld [vmem:[#allocation5 + $0x290] sm:$0xff] }
 0x174   : > { %1781 = vmatprep.subr.mxu1 %v1201_v55  ;;  %1388 = vmatprep.mubr.f32.mxu0 %v5061_v59  ;;  %v1196_v59 = vld [vmem:[#allocation5 + $0x6f0] sm:$0xff]  ;;  %v1061_v55 = vld [vmem:[#allocation5 + $0x2b8] sm:$0xff] }
 0x175   : > { %1549 = vmatprep.mubr.f32.mxu1 %v5062_v22  ;;  %1622 = vmatprep.subr.mxu0 %v1069_v61  ;;  %v1193_v61 = vld [vmem:[#allocation5 + $0x6d8] sm:$0xff]  ;;  %v744_v22 = vpop.f32.mrf.mxu0 }
 0x176   : > { %1782 = vmatpush2.msra.mxu1 %v1200_v42  ;;  %1389 = vmatmul.mubr.f32.gmra.mxu0 %v5010_v43  ;;  %v905_v42 = vpop.f32.mrf.mxu1  ;;  %v4336_v43 = vadd.f32 %v901_v49, %v3944_v30 }
 0x177   : > { %1550 = vmatmul.mubr.f32.gmra.mxu1 %v5064_v16  ;;  %1623 = vmatpush2.msra.mxu0 %v1068_v62  ;;  %v5013_v16 = vmax.f32 %v4323_v7, 0.0  ;;  %v5065_v62 = vmax.f32 %v4306_v54, 0.0  ;;  %v746_v49 = vpop.f32.mrf.mxu0  ;;  %v1184_v7 = vld [vmem:[#allocation5 + $0x690] sm:$0xff] }
 0x178   : > { %1783 = vmatprep.subr.mxu1 %v1197_v47  ;;  %1624 = vmatprep.subr.mxu0 %v1065_v12  ;;  %v1060_v47 = vld [vmem:[#allocation5 + $0x2b0] sm:$0xff]  ;;  %v5066_v12 = vmax.f32 %v4310_v63, 0.0  ;;  %v907_v21 = vpop.f32.mrf.mxu1 }
 0x179   : > { %1784 = vmatpush2.msra.mxu1 %v1196_v59  ;;  %1625 = vmatpush2.msra.mxu0 %v1064_v58  ;;  %v1189_v59 = vld [vmem:[#allocation5 + $0x6b8] sm:$0xff]  ;;  %v4348_v58 = vadd.f32 %v4293_v23, %v3937_v28  ;;  %v4357_v23 = vadd.f32 %v746_v49, %v3940_v29  ;;  %v5069_v29 = vmax.f32 %v4336_v43, 0.0 }
 0x17a   : > { %1785 = vmatprep.subr.mxu1 %v1193_v61  ;;  %1394 = vmatprep.mubr.f32.mxu0 %v5065_v62  ;;  %v1188_v62 = vld [vmem:[#allocation5 + $0x6b0] sm:$0xff]  ;;  %v1053_v61 = vld [vmem:[#allocation5 + $0x278] sm:$0xff] }
 0x17b   : > { %1555 = vmatprep.mubr.f32.mxu1 %v5066_v12  ;;  %1626 = vmatprep.subr.mxu0 %v1061_v55  ;;  %v5067_v55 = vmax.f32 %v4317_v2, 0.0  ;;  %v1185_v12 = vld [vmem:[#allocation5 + $0x698] sm:$0xff]  ;;  %v966_v63 = vmax.f32 %v4348_v58, 0.0  ;;  %v2054_v58 = vld [vmem:[#allocation7 + $0x2f0] sm:$0xff] }
 0x17c   : > { %1786 = vmatpush2.msra.mxu1 %v1192_v25  ;;  %1395 = vmatmul.mubr.f32.gmra.mxu0 %v5013_v16  ;;  %v968_v25 = vmax.f32 %v4342_v35, 0.0  ;;  %v4361_v16 = vadd.f32 %v907_v21, %v3944_v30  ;;  %v1181_v49 = vld [vmem:[#allocation5 + $0x678] sm:$0xff]  ;;  %v4372_v30 = vadd.f32 %v744_v22, %v3937_v28  ;;  %v1180_v21 = vld [vmem:[#allocation5 + $0x670] sm:$0xff] }
 0x17d   : > { %1556 = vmatmul.mubr.f32.gmra.mxu1 %v5067_v55  ;;  %1627 = vmatpush2.msra.mxu0 %v1060_v47  ;;  %v5068_v47 = vmax.f32 %v4332_v9, 0.0  ;;  %v1048_v55 = vld [vmem:[#allocation5 + $0x250] sm:$0xff] }
 0x17e   : > { %1787 = vmatprep.subr.mxu1 %v1189_v59  ;;  %1628 = vmatprep.subr.mxu0 %v1057_v15  ;;  %v1052_v59 = vld [vmem:[#allocation5 + $0x270] sm:$0xff]  ;;  %v4367_v15 = vadd.f32 %v905_v42, %v3934_v27  ;;  %v973_v27 = vmax.f32 %v4361_v16, 0.0  ;;  %v1177_v42 = vld [vmem:[#allocation5 + $0x658] sm:$0xff]  ;;  %v970_v22 = vmax.f32 %v4372_v30, 0.0 }
 0x17f   : > { %1788 = vmatpush2.msra.mxu1 %v1188_v62  ;;  %1629 = vmatpush2.msra.mxu0 %v1056_v10  ;;  %v1049_v62 = vld [vmem:[#allocation5 + $0x258] sm:$0xff]  ;;  %v971_v10 = vmax.f32 %v4357_v23, 0.0  ;;  %v1993_v23 = vld [vmem:[#allocation7 + $0x108] sm:$0xff]  ;;  %v2050_v30 = vld [vmem:[#allocation7 + $0x2d0] sm:$0xff] }
 0x180   : > { %1789 = vmatprep.subr.mxu1 %v1185_v12  ;;  %1400 = vmatprep.mubr.f32.mxu0 %v5068_v47  ;;  %v5015_v28 = vmax.f32 %v4367_v15, 0.0  ;;  %v1044_v12 = vld [vmem:[#allocation5 + $0x230] sm:$0xff]  ;;  %v1173_v47 = vld [vmem:[#allocation5 + $0x638] sm:$0xff]  ;;  %v5145_v35 = vmax.f32 %v4367_v15, 0.0  ;;  %v2045_v15 = vld [vmem:[#allocation7 + $0x2a8] sm:$0xff] }
 0x181   : > { %1561 = vmatprep.mubr.f32.mxu1 %v5069_v29  ;;  %1630 = vmatprep.subr.mxu0 %v1053_v61  ;;  %v1045_v61 = vld [vmem:[#allocation5 + $0x238] sm:$0xff]  ;;  %v1172_v29 = vld [vmem:[#allocation5 + $0x630] sm:$0xff] }
 0x182   : > { %1790 = vmatpush2.msra.mxu1 %v1184_v7  ;;  %1401 = vmatmul.mubr.f32.gmra.mxu0 %v966_v63  ;;  %v1176_v7 = vld [vmem:[#allocation5 + $0x650] sm:$0xff]  ;;  %v2051_v16 = vld [vmem:[#allocation7 + $0x2d8] sm:$0xff] }
 0x183   : > { %1562 = vmatmul.mubr.f32.gmra.mxu1 %v968_v25  ;;  %1631 = vmatpush2.msra.mxu0 %v1052_v59  ;;  %v1041_v59 = vld [vmem:[#allocation5 + $0x218] sm:$0xff] }
 0x184   : > { %1791 = vmatprep.subr.mxu1 %v1181_v49  ;;  %1632 = vmatprep.subr.mxu0 %v1049_v62  ;;  %v1040_v49 = vld [vmem:[#allocation5 + $0x210] sm:$0xff]  ;;  %v1169_v62 = vld [vmem:[#allocation5 + $0x618] sm:$0xff] }
 0x185   : > { %1792 = vmatpush2.msra.mxu1 %v1180_v21  ;;  %1633 = vmatpush2.msra.mxu0 %v1048_v55  ;;  %v5070_v21 = vmax.f32 %v3953_v37, 0.0  ;;  %v1168_v55 = vld [vmem:[#allocation5 + $0x610] sm:$0xff]  ;;  %v5074_v37 = vmax.f32 %v3947_v33, 0.0  ;;  %v5078_v33 = vmax.f32 %v3963_v45, 0.0  ;;  %v5082_v45 = vmax.f32 %v3995_v6, 0.0 }
 0x186   : > { %1793 = vmatprep.subr.mxu1 %v1177_v42  ;;  %1406 = vmatprep.mubr.f32.mxu0 %v971_v10  ;;  %v5071_v42 = vmax.f32 %v3956_v38, 0.0  ;;  %v5075_v38 = vmax.f32 %v3972_v52, 0.0  ;;  %v5079_v52 = vmax.f32 %v3990_v4, 0.0  ;;  %v5083_v4 = vmax.f32 %v4013_v24, 0.0 }
 0x187   : > { %1567 = vmatprep.mubr.f32.mxu1 %v973_v27  ;;  %1634 = vmatprep.subr.mxu0 %v1045_v61  ;;  %v1991_v61 = vld [vmem:[#allocation7 + $0xf8] sm:$0xff]  ;;  %v5086_v6 = vmax.f32 %v4019_v41, 0.0  ;;  %v5087_v24 = vmax.f32 %v4037_v8, 0.0  ;;  %v5090_v41 = vmax.f32 %v4043_v17, 0.0  ;;  %v5091_v8 = vmax.f32 %v4063_v26, 0.0 }
 0x188   : > { %1794 = vmatpush2.msra.mxu1 %v1176_v7  ;;  %1407 = vmatmul.mubr.f32.gmra.mxu0 %v970_v22  ;;  %v5072_v7 = vmax.f32 %v3950_v34, 0.0  ;;  %v1986_v34 = vld [vmem:[#allocation7 + $0xd0] sm:$0xff]  ;;  %v5094_v17 = vmax.f32 %v4073_v18, 0.0  ;;  %v5095_v26 = vmax.f32 %v4095_v36, 0.0  ;;  %v5098_v18 = vmax.f32 %v4101_v56, 0.0 }
 0x189   : > { %1568 = vmatmul.mubr.f32.gmra.mxu1 %v5015_v28  ;;  %1635 = vmatpush2.msra.mxu0 %v1044_v12  ;;  %v1990_v28 = vld [vmem:[#allocation7 + $0xf0] sm:$0xff]  ;;  %v5073_v12 = vmax.f32 %v3969_v51, 0.0  ;;  %v1985_v51 = vld [vmem:[#allocation7 + $0xc8] sm:$0xff]  ;;  %v5099_v36 = vmax.f32 %v4128_v39, 0.0  ;;  %v5102_v56 = vmax.f32 %v4139_v60, 0.0 }
 0x18a   : > { %1795 = vmatprep.subr.mxu1 %v1173_v47  ;;  %1636 = vmatprep.subr.mxu0 %v1041_v59  ;;  %v1989_v47 = vld [vmem:[#allocation7 + $0xe8] sm:$0xff]  ;;  %v1988_v59 = vld [vmem:[#allocation7 + $0xe0] sm:$0xff] }
 0x18b   : > { %1638 = vmatprep.mubr.f32.mxu0 %v5070_v21  ;;  %1796 = vmatpush2.msra.mxu1 %v1172_v29  ;;  %v1987_v29 = vld [vmem:[#allocation7 + $0xd8] sm:$0xff]  ;;  %v1984_v21 = vld [vmem:[#allocation7 + $0xc0] sm:$0xff] }
 0x18c   : > { %1799 = vmatprep.mubr.f32.mxu1 %v5071_v42  ;;  %1637 = vmatpush2.msra.mxu0 %v1040_v49  ;;  %v5076_v49 = vmax.f32 %v3966_v50, 0.0  ;;  %v5080_v50 = vmax.f32 %v4000_v11, 0.0  ;;  %v1981_v42 = vld [vmem:[#allocation7 + $0xa8] sm:$0xff]  ;;  %v5084_v11 = vmax.f32 %v4024_v53, 0.0  ;;  %v5088_v53 = vmax.f32 %v4050_v46, 0.0 }
 0x18d   : > { %1797 = vmatprep.subr.mxu1 %v1169_v62  ;;  %1639 = vmatmul.mubr.f32.vlgmr.msra.gmra.mxu0 %v5072_v7  ;;  %v5077_v62 = vmax.f32 %v3987_v3, 0.0  ;;  %v5081_v3 = vmax.f32 %v4009_v19, 0.0  ;;  %v1979_v7 = vld [vmem:[#allocation7 + $0x98] sm:$0xff]  ;;  %v5085_v19 = vmax.f32 %v4033_v1, 0.0  ;;  %v5089_v1 = vmax.f32 %v4059_v32, 0.0 }
 0x18e   : > { %1798 = vmatpush2.msra.mxu1 %v1168_v55  ;;  %1644 = vmatprep.mubr.f32.mxu0 %v5073_v12  ;;  %v1982_v55 = vld [vmem:[#allocation7 + $0xb0] sm:$0xff]  ;;  %v5092_v46 = vmax.f32 %v4078_v57, 0.0  ;;  %v5093_v32 = vmax.f32 %v4091_v0, 0.0  ;;  %v5096_v57 = vmax.f32 %v4111_v5, 0.0  ;;  %v5097_v0 = vmax.f32 %v4124_v31, 0.0 }
 0x18f   : > { %1800 = vmatmul.mubr.f32.vlgmr.msra.gmra.mxu1 %v5074_v37  ;;  %2100 = vmatprep.subr.mxu0 %v1991_v61  ;;  %v1980_v61 = vld [vmem:[#allocation7 + $0xa0] sm:$0xff]  ;;  %v1978_v12 = vld [vmem:[#allocation7 + $0x90] sm:$0xff]  ;;  %v5100_v5 = vmax.f32 %v4145_v40, 0.0  ;;  %v5101_v31 = vmax.f32 %v4156_v14, 0.0  ;;  %v5105_v40 = vmax.f32 %v4177_v44, 0.0 }
 0x190   : > { %1805 = vmatprep.mubr.f32.mxu1 %v5075_v38  ;;  %2101 = vmatpush1.msra.mxu0 %v1990_v28  ;;  %v1983_v28 = vld [vmem:[#allocation7 + $0xb8] sm:$0xff]  ;;  %v1976_v37 = vld [vmem:[#allocation7 + $0x80] sm:$0xff]  ;;  %v1974_v38 = vld [vmem:[#allocation7 + $0x70] sm:$0xff] }
 0x191   : > { %1645 = vmatmul.mubr.f32.gmra.mxu0 %v5076_v49  ;;  %2102 = vmatprep.subr.mxu0 %v1989_v47  ;;  %v1977_v47 = vld [vmem:[#allocation7 + $0x88] sm:$0xff]  ;;  %v1972_v49 = vld [vmem:[#allocation7 + $0x60] sm:$0xff] }
 0x192   : > { %1650 = vmatprep.mubr.f32.mxu0 %v5077_v62  ;;  %2103 = vmatpush1.msra.mxu0 %v1988_v59  ;;  %v1975_v59 = vld [vmem:[#allocation7 + $0x78] sm:$0xff]  ;;  %v1970_v62 = vld [vmem:[#allocation7 + $0x50] sm:$0xff] }
 0x193   : > { %1806 = vmatmul.mubr.f32.gmra.mxu1 %v5078_v33  ;;  %2104 = vmatprep.subr.mxu0 %v1987_v29  ;;  %v1973_v29 = vld [vmem:[#allocation7 + $0x68] sm:$0xff]  ;;  %v1968_v33 = vld [vmem:[#allocation7 + $0x40] sm:$0xff] }
 0x194   : > { %1811 = vmatprep.mubr.f32.mxu1 %v5079_v52  ;;  %2105 = vmatpush1.msra.mxu0 %v1986_v34  ;;  %v1971_v34 = vld [vmem:[#allocation7 + $0x58] sm:$0xff]  ;;  %v1966_v52 = vld [vmem:[#allocation7 + $0x30] sm:$0xff] }
 0x195   : > { %1651 = vmatmul.mubr.f32.gmra.mxu0 %v5080_v50  ;;  %2106 = vmatprep.subr.mxu0 %v1985_v51  ;;  %v1969_v51 = vld [vmem:[#allocation7 + $0x48] sm:$0xff]  ;;  %v1964_v50 = vld [vmem:[#allocation7 + $0x20] sm:$0xff] }
 0x196   : > { %1656 = vmatprep.mubr.f32.mxu0 %v5081_v3  ;;  %2107 = vmatpush1.msra.mxu0 %v1984_v21  ;;  %v1967_v21 = vld [vmem:[#allocation7 + $0x38] sm:$0xff]  ;;  %v1962_v3 = vld [vmem:[#allocation7 + $0x10] sm:$0xff] }
 0x197   : > { %1812 = vmatmul.mubr.f32.gmra.mxu1 %v5082_v45  ;;  %2108 = vmatprep.subr.mxu0 %v1983_v28  ;;  %v1965_v28 = vld [vmem:[#allocation7 + $0x28] sm:$0xff]  ;;  %v1960_v45 = vld [vmem:[#allocation7] sm:$0xff] }
 0x198   : > { %1817 = vmatprep.mubr.f32.mxu1 %v5083_v4  ;;  %2109 = vmatpush1.msra.mxu0 %v1982_v55  ;;  %v1963_v55 = vld [vmem:[#allocation7 + $0x18] sm:$0xff] }
 0x199   : > { %1657 = vmatmul.mubr.f32.gmra.mxu0 %v5084_v11  ;;  %2110 = vmatprep.subr.mxu0 %v1981_v42  ;;  %v1961_v42 = vld [vmem:[#allocation7 + $0x8] sm:$0xff]  ;;  %v2023_v4 = vld [vmem:[#allocation7 + $0x1f8] sm:$0xff] }
 0x19a   : > { %1662 = vmatprep.mubr.f32.mxu0 %v5085_v19  ;;  %2111 = vmatpush1.msra.mxu0 %v1980_v61  ;;  %v5103_v61 = vld [vmem:[#allocation19_spill] sm:$0xff]  ;;  %v5106_v11 = vld [vmem:[#allocation21_spill] sm:$0xff]  ;;  %v5108_v19 = vld [vmem:[#allocation20_spill] sm:$0xff] }
 0x19b   : > { %1818 = vmatmul.mubr.f32.gmra.mxu1 %v5086_v6  ;;  %2112 = vmatprep.subr.mxu0 %v1979_v7  ;;  %v5104_v39 = vmax.f32 %v5103_v61, 0.0  ;;  %v2022_v7 = vld [vmem:[#allocation7 + $0x1f0] sm:$0xff]  ;;  %v5107_v14 = vmax.f32 %v5106_v11, 0.0  ;;  %v5109_v60 = vmax.f32 %v5108_v19, 0.0  ;;  %v2004_v11 = vld [vmem:[#allocation7 + $0x160] sm:$0xff]  ;;  %v2003_v19 = vld [vmem:[#allocation7 + $0x158] sm:$0xff] }
 0x19c   : > { %1823 = vmatprep.mubr.f32.mxu1 %v5087_v24  ;;  %2113 = vmatpush1.msra.mxu0 %v1978_v12  ;;  %v2021_v12 = vld [vmem:[#allocation7 + $0x1e8] sm:$0xff]  ;;  %v5110_v6 = vld [vmem:[#allocation22_spill] sm:$0xff]  ;;  %v2019_v24 = vld [vmem:[#allocation7 + $0x1d8] sm:$0xff] }
 0x19d   : > { %1663 = vmatmul.mubr.f32.gmra.mxu0 %v5088_v53  ;;  %2114 = vmatprep.subr.mxu0 %v1977_v47  ;;  %v2020_v47 = vld [vmem:[#allocation7 + $0x1e0] sm:$0xff]  ;;  %v2018_v53 = vld [vmem:[#allocation7 + $0x1d0] sm:$0xff] }
 0x19e   : > { %1668 = vmatprep.mubr.f32.mxu0 %v5089_v1  ;;  %2115 = vmatpush1.msra.mxu0 %v1976_v37  ;;  %v5111_v37 = vmax.f32 %v5110_v6, 0.0  ;;  %v2017_v1 = vld [vmem:[#allocation7 + $0x1c8] sm:$0xff]  ;;  %v2002_v6 = vld [vmem:[#allocation7 + $0x150] sm:$0xff] }
 0x19f   : > { %1824 = vmatmul.mubr.f32.gmra.mxu1 %v5090_v41  ;;  %2116 = vmatprep.subr.mxu0 %v1975_v59  ;;  %v5112_v59 = vld [vmem:[#allocation24_spill] sm:$0xff] }
 0x1a0   : > { %1829 = vmatprep.mubr.f32.mxu1 %v5091_v8  ;;  %2117 = vmatpush1.msra.mxu0 %v1974_v38  ;;  %v5113_v44 = vmax.f32 %v5112_v59, 0.0  ;;  %v5114_v38 = vmax.f32 %v4219_v20, 0.0  ;;  %v5117_v8 = vld [vmem:[#allocation25_spill] sm:$0xff]  ;;  %v5121_v20 = vmax.f32 %v4248_v13, 0.0  ;;  %v5128_v13 = vmax.f32 %v4278_v48, 0.0  ;;  %v2000_v59 = vld [vmem:[#allocation7 + $0x140] sm:$0xff] }
 0x1a1   : > { %1669 = vmatmul.mubr.f32.gmra.mxu0 %v5092_v46  ;;  %2118 = vmatprep.subr.mxu0 %v1973_v29  ;;  %v5115_v29 = vld [vmem:[#allocation23_spill] sm:$0xff]  ;;  %v5135_v48 = vmax.f32 %v4306_v54, 0.0  ;;  %v5142_v54 = vmax.f32 %v4332_v9, 0.0  ;;  %v1997_v9 = vld [vmem:[#allocation7 + $0x128] sm:$0xff] }
 0x1a2   : > { %1674 = vmatprep.mubr.f32.mxu0 %v5093_v32  ;;  %2119 = vmatpush1.msra.mxu0 %v1972_v49  ;;  %v5116_v41 = vmax.f32 %v5115_v29, 0.0  ;;  %v2016_v49 = vld [vmem:[#allocation7 + $0x1c0] sm:$0xff]  ;;  %v2015_v46 = vld [vmem:[#allocation7 + $0x1b8] sm:$0xff] }
 0x1a3   : > { %1830 = vmatmul.mubr.f32.gmra.mxu1 %v5094_v17  ;;  %2120 = vmatprep.subr.mxu0 %v1971_v34  ;;  %v5118_v34 = vmax.f32 %v5117_v8, 0.0  ;;  %v2013_v17 = vld [vmem:[#allocation7 + $0x1a8] sm:$0xff]  ;;  %v2052_v29 = vld [vmem:[#allocation7 + $0x2e0] sm:$0xff] }
 0x1a4   : > { %1835 = vmatprep.mubr.f32.mxu1 %v5095_v26  ;;  %2121 = vmatpush1.msra.mxu0 %v1970_v62  ;;  %v5119_v62 = vld [vmem:[#allocation27_spill] sm:$0xff]  ;;  %v2044_v8 = vld [vmem:[#allocation7 + $0x2a0] sm:$0xff] }
 0x1a5   : > { %1675 = vmatmul.mubr.f32.gmra.mxu0 %v5096_v57  ;;  %2122 = vmatprep.subr.mxu0 %v1969_v51  ;;  %v5120_v32 = vmax.f32 %v5119_v62, 0.0  ;;  %v2014_v51 = vld [vmem:[#allocation7 + $0x1b0] sm:$0xff]  ;;  %v5124_v57 = vld [vmem:[#allocation28_spill] sm:$0xff]  ;;  %v2041_v62 = vld [vmem:[#allocation7 + $0x288] sm:$0xff] }
 0x1a6   : > { %1680 = vmatprep.mubr.f32.mxu0 %v5097_v0  ;;  %2123 = vmatpush1.msra.mxu0 %v1968_v33  ;;  %v5122_v33 = vld [vmem:[#allocation26_spill] sm:$0xff]  ;;  %v2011_v0 = vld [vmem:[#allocation7 + $0x198] sm:$0xff] }
 0x1a7   : > { %1836 = vmatmul.mubr.f32.gmra.mxu1 %v5098_v18  ;;  %2124 = vmatprep.subr.mxu0 %v1967_v21  ;;  %v5123_v26 = vmax.f32 %v5122_v33, 0.0  ;;  %v2012_v21 = vld [vmem:[#allocation7 + $0x1a0] sm:$0xff] }
 0x1a8   : > { %1841 = vmatprep.mubr.f32.mxu1 %v5099_v36  ;;  %2125 = vmatpush1.msra.mxu0 %v1966_v52  ;;  %v5125_v52 = vmax.f32 %v5124_v57, 0.0  ;;  %v2009_v36 = vld [vmem:[#allocation7 + $0x188] sm:$0xff]  ;;  %v2036_v33 = vld [vmem:[#allocation7 + $0x260] sm:$0xff] }
 0x1a9   : > { %1681 = vmatmul.mubr.f32.gmra.mxu0 %v5100_v5  ;;  %2126 = vmatprep.subr.mxu0 %v1965_v28  ;;  %v5126_v28 = vld [vmem:[#allocation30_spill] sm:$0xff]  ;;  %v2033_v57 = vld [vmem:[#allocation7 + $0x248] sm:$0xff] }
 0x1aa   : > { %1686 = vmatprep.mubr.f32.mxu0 %v5101_v31  ;;  %2127 = vmatpush1.msra.mxu0 %v1964_v50  ;;  %v5127_v18 = vmax.f32 %v5126_v28, 0.0  ;;  %v2010_v50 = vld [vmem:[#allocation7 + $0x190] sm:$0xff]  ;;  %v5131_v31 = vld [vmem:[#allocation31_spill] sm:$0xff] }
 0x1ab   : > { %1842 = vmatmul.mubr.f32.gmra.mxu1 %v5102_v56  ;;  %2128 = vmatprep.subr.mxu0 %v1963_v55  ;;  %v5129_v55 = vld [vmem:[#allocation29_spill] sm:$0xff]  ;;  %v2007_v56 = vld [vmem:[#allocation7 + $0x178] sm:$0xff]  ;;  %v2030_v28 = vld [vmem:[#allocation7 + $0x230] sm:$0xff] }
 0x1ac   : > { %1847 = vmatprep.mubr.f32.mxu1 %v5104_v39  ;;  %2129 = vmatpush1.msra.mxu0 %v1962_v3  ;;  %v5130_v5 = vmax.f32 %v5129_v55, 0.0  ;;  %v2008_v3 = vld [vmem:[#allocation7 + $0x180] sm:$0xff]  ;;  %v2006_v39 = vld [vmem:[#allocation7 + $0x170] sm:$0xff]  ;;  %v2025_v55 = vld [vmem:[#allocation7 + $0x208] sm:$0xff] }
 0x1ad   : > { %1687 = vmatmul.mubr.f32.gmra.mxu0 %v5105_v40  ;;  %2130 = vmatprep.subr.mxu0 %v1961_v42  ;;  %v5132_v42 = vmax.f32 %v5131_v31, 0.0  ;;  %v5136_v40 = vld [vmem:[#allocation32_spill] sm:$0xff] }
 0x1ae   : > { %1692 = vmatprep.mubr.f32.mxu0 %v5107_v14  ;;  %2131 = vmatpush1.msra.mxu0 %v1960_v45  ;;  %v5133_v45 = vld [vmem:[#allocation33_spill] sm:$0xff]  ;;  %v5138_v14 = vld [vmem:[#allocation34_spill] sm:$0xff]  ;;  %v4521_v31 = vld [vmem:[%s4937_s4] sm:$0xf] }
 0x1af   : > { %1848 = vmatmul.mubr.f32.gmra.mxu1 %v5109_v60  ;;  %2132 = vmatprep.subr.mxu0 %v2023_v4  ;;  %v5134_v61 = vmax.f32 %v5133_v45, 0.0  ;;  %v2005_v4 = vld [vmem:[#allocation7 + $0x168] sm:$0xff]  ;;  %v5140_v60 = vld [vmem:[#allocation35_spill] sm:$0xff]  ;;  %v2084_v45 = vld [vmem:[#allocation7 + $0x3e0] sm:$0xff] }
 0x1b0   : > { %1853 = vmatprep.mubr.f32.mxu1 %v5111_v37  ;;  %2133 = vmatpush2.msra.mxu0 %v2022_v7  ;;  %v5137_v7 = vmax.f32 %v5136_v40, 0.0  ;;  %v2001_v37 = vld [vmem:[#allocation7 + $0x148] sm:$0xff]  ;;  %v5147_v40 = vld [vmem:[#allocation18_spill] sm:$0xff] }
 0x1b1   : > { %1693 = vmatmul.mubr.f32.gmra.mxu0 %v5113_v44  ;;  %2134 = vmatprep.subr.mxu0 %v2021_v12  ;;  %v5139_v12 = vmax.f32 %v5138_v14, 0.0  ;;  %v5144_v44 = vmax.f32 %v4336_v43, 0.0  ;;  %v1995_v43 = vld [vmem:[#allocation7 + $0x118] sm:$0xff] }
 0x1b2   : > { %1698 = vmatprep.mubr.f32.mxu0 %v5114_v38  ;;  %2135 = vmatpush2.msra.mxu0 %v2020_v47  ;;  %v5141_v47 = vmax.f32 %v5140_v60, 0.0  ;;  %v1998_v38 = vld [vmem:[#allocation7 + $0x130] sm:$0xff] }
 0x1b3   : > { %1854 = vmatmul.mubr.f32.gmra.mxu1 %v5116_v41  ;;  %2136 = vmatprep.subr.mxu0 %v2019_v24  ;;  %v5143_v24 = vmax.f32 %v4317_v2, 0.0  ;;  %v1996_v2 = vld [vmem:[#allocation7 + $0x120] sm:$0xff]  ;;  %v2047_v41 = vld [vmem:[#allocation7 + $0x2b8] sm:$0xff] }
 0x1b4   : > { %1859 = vmatprep.mubr.f32.mxu1 %v5118_v34  ;;  %2137 = vmatpush2.msra.mxu0 %v2018_v53  ;;  %v1999_v53 = vld [vmem:[#allocation7 + $0x138] sm:$0xff] }
 0x1b5   : > { %1699 = vmatmul.mubr.f32.gmra.mxu0 %v5120_v32  ;;  %2138 = vmatprep.subr.mxu0 %v2017_v1  ;;  %v2055_v1 = vld [vmem:[#allocation7 + $0x2f8] sm:$0xff]  ;;  %v2040_v32 = vld [vmem:[#allocation7 + $0x280] sm:$0xff] }
 0x1b6   : > { %1704 = vmatprep.mubr.f32.mxu0 %v5121_v20  ;;  %2139 = vmatpush2.msra.mxu0 %v2016_v49  ;;  %v2046_v49 = vld [vmem:[#allocation7 + $0x2b0] sm:$0xff]  ;;  %v2043_v34 = vld [vmem:[#allocation7 + $0x298] sm:$0xff] }
 0x1b7   : > { %1860 = vmatmul.mubr.f32.gmra.mxu1 %v5123_v26  ;;  %2140 = vmatprep.subr.mxu0 %v2015_v46  ;;  %v2042_v46 = vld [vmem:[#allocation7 + $0x290] sm:$0xff]  ;;  %v2035_v26 = vld [vmem:[#allocation7 + $0x258] sm:$0xff] }
 0x1b8   : > { %1865 = vmatprep.mubr.f32.mxu1 %v5125_v52  ;;  %2141 = vmatpush2.msra.mxu0 %v2014_v51  ;;  %v2039_v51 = vld [vmem:[#allocation7 + $0x278] sm:$0xff]  ;;  %v2038_v20 = vld [vmem:[#allocation7 + $0x270] sm:$0xff]  ;;  %v2032_v52 = vld [vmem:[#allocation7 + $0x240] sm:$0xff] }
 0x1b9   : > { %1705 = vmatmul.mubr.f32.gmra.mxu0 %v5127_v18  ;;  %2142 = vmatprep.subr.mxu0 %v2013_v17  ;;  %v2037_v17 = vld [vmem:[#allocation7 + $0x268] sm:$0xff] }
 0x1ba   : > { %1710 = vmatprep.mubr.f32.mxu0 %v5128_v13  ;;  %2143 = vmatpush2.msra.mxu0 %v2012_v21  ;;  %v2034_v21 = vld [vmem:[#allocation7 + $0x250] sm:$0xff]  ;;  %v2029_v18 = vld [vmem:[#allocation7 + $0x228] sm:$0xff]  ;;  %v2027_v13 = vld [vmem:[#allocation7 + $0x218] sm:$0xff] }
 0x1bb   : > { %1866 = vmatmul.mubr.f32.gmra.mxu1 %v5130_v5  ;;  %2144 = vmatprep.subr.mxu0 %v2011_v0  ;;  %v2031_v0 = vld [vmem:[#allocation7 + $0x238] sm:$0xff]  ;;  %v2024_v5 = vld [vmem:[#allocation7 + $0x200] sm:$0xff] }
 0x1bc   : > { %1871 = vmatprep.mubr.f32.mxu1 %v5132_v42  ;;  %2145 = vmatpush2.msra.mxu0 %v2010_v50  ;;  %v2028_v50 = vld [vmem:[#allocation7 + $0x220] sm:$0xff]  ;;  %v2086_v42 = vld [vmem:[#allocation7 + $0x3f0] sm:$0xff] }
 0x1bd   : > { %1711 = vmatmul.mubr.f32.gmra.mxu0 %v5134_v61  ;;  %2146 = vmatprep.subr.mxu0 %v2009_v36  ;;  %v2026_v36 = vld [vmem:[#allocation7 + $0x210] sm:$0xff]  ;;  %v5146_v61 = vld [vmem:[#allocation17_spill] sm:$0xff] }
 0x1be   : > { %1716 = vmatprep.mubr.f32.mxu0 %v5135_v48  ;;  %2147 = vmatpush2.msra.mxu0 %v2008_v3  ;;  %v2087_v3 = vld [vmem:[#allocation7 + $0x3f8] sm:$0xff] }
 0x1bf   : > { %1872 = vmatmul.mubr.f32.gmra.mxu1 %v5137_v7  ;;  %2148 = vmatprep.subr.mxu0 %v2007_v56  ;;  %v2085_v56 = vld [vmem:[#allocation7 + $0x3e8] sm:$0xff]  ;;  %v2083_v48 = vld [vmem:[#allocation7 + $0x3d8] sm:$0xff]  ;;  %v4529_v7 = vrot.slane %v4521_v31, %v5147_v40 }
 0x1c0   : > { %1877 = vmatprep.mubr.f32.mxu1 %v5139_v12  ;;  %2149 = vmatpush2.msra.mxu0 %v2006_v39  ;;  %v4525_v39 = vrot.slane %v4521_v31, %v5146_v61 }
 0x1c1   : > { %1717 = vmatmul.mubr.f32.gmra.mxu0 %v5141_v47  ;;  %2150 = vmatprep.subr.mxu0 %v2005_v4  ;;  %v2082_v4 = vld [vmem:[#allocation7 + $0x3d0] sm:$0xff]  ;;  %v2079_v47 = vld [vmem:[#allocation7 + $0x3b8] sm:$0xff] }
 0x1c2   : > { %1722 = vmatprep.mubr.f32.mxu0 %v5142_v54  ;;  %2151 = vmatpush2.msra.mxu0 %v2004_v11  ;;  %v2081_v11 = vld [vmem:[#allocation7 + $0x3c8] sm:$0xff] }
 0x1c3   : > { %1878 = vmatmul.mubr.f32.gmra.mxu1 %v5143_v24  ;;  %2152 = vmatprep.subr.mxu0 %v2003_v19  ;;  %v2080_v19 = vld [vmem:[#allocation7 + $0x3c0] sm:$0xff] }
 0x1c4   : > { %1883 = vmatprep.mubr.f32.mxu1 %v5144_v44  ;;  %2153 = vmatpush2.msra.mxu0 %v2002_v6 }
 0x1c5   : > { %1723 = vmatmul.mubr.f32.gmra.mxu0 %v966_v63  ;;  %2154 = vmatprep.subr.mxu0 %v2001_v37  ;;  %v1994_v63 = vld [vmem:[#allocation7 + $0x110] sm:$0xff] }
 0x1c6   : > { %1728 = vmatprep.mubr.f32.mxu0 %v971_v10  ;;  %2155 = vmatpush2.msra.mxu0 %v2000_v59  ;;  %v2053_v10 = vld [vmem:[#allocation7 + $0x2e8] sm:$0xff]  ;;  %v2078_v37 = vld [vmem:[#allocation7 + $0x3b0] sm:$0xff] }
 0x1c7   : > { %1884 = vmatmul.mubr.f32.gmra.mxu1 %v968_v25  ;;  %2156 = vmatprep.subr.mxu0 %v1999_v53  ;;  %v1992_v25 = vld [vmem:[#allocation7 + $0x100] sm:$0xff]  ;;  %v2077_v59 = vld [vmem:[#allocation7 + $0x3a8] sm:$0xff] }
 0x1c8   : > { %1889 = vmatprep.mubr.f32.mxu1 %v973_v27  ;;  %2157 = vmatpush2.msra.mxu0 %v1998_v38  ;;  %v2049_v27 = vld [vmem:[#allocation7 + $0x2c8] sm:$0xff]  ;;  %v2076_v53 = vld [vmem:[#allocation7 + $0x3a0] sm:$0xff] }
 0x1c9   : > { %1729 = vmatmul.mubr.f32.gmra.mxu0 %v970_v22  ;;  %2158 = vmatprep.subr.mxu0 %v1997_v9  ;;  %v2048_v22 = vld [vmem:[#allocation7 + $0x2c0] sm:$0xff] }
 0x1ca   : > { %2159 = vmatpush2.msra.mxu0 %v1996_v2  ;;  %2261 = vmatprep.subr.mxu1 %v2055_v1  ;;  %v2075_v2 = vld [vmem:[#allocation7 + $0x398] sm:$0xff] }
 0x1cb   : > { %1890 = vmatmul.mubr.f32.gmra.mxu1 %v5145_v35  ;;  %2160 = vmatprep.subr.mxu0 %v1995_v43 }
 0x1cc   : > { %2161 = vmatpush2.msra.mxu0 %v1994_v63  ;;  %2262 = vmatpush1.msra.mxu1 %v2054_v58  ;;  %v2074_v63 = vld [vmem:[#allocation7 + $0x390] sm:$0xff] }
 0x1cd   : > { %2162 = vmatprep.subr.mxu0 %v1993_v23  ;;  %2263 = vmatprep.subr.mxu1 %v2053_v10  ;;  %v2073_v10 = vld [vmem:[#allocation7 + $0x388] sm:$0xff] }
 0x1ce   : > { %2163 = vmatpush2.msra.mxu0 %v1992_v25  ;;  %2264 = vmatpush1.msra.mxu1 %v2052_v29 }
 0x1cf   : > { %2265 = vmatprep.subr.mxu1 %v2051_v16  ;;  %v2072_v16 = vld [vmem:[#allocation7 + $0x380] sm:$0xff] }
 0x1d0   : > { %2266 = vmatpush1.msra.mxu1 %v2050_v30 }
 0x1d1   : > { %2267 = vmatprep.subr.mxu1 %v2049_v27  ;;  %v2071_v27 = vld [vmem:[#allocation7 + $0x378] sm:$0xff] }
 0x1d2   : > { %2268 = vmatpush1.msra.mxu1 %v2048_v22 }
 0x1d3   : > { %2269 = vmatprep.subr.mxu1 %v2047_v41  ;;  %v2070_v41 = vld [vmem:[#allocation7 + $0x370] sm:$0xff] }
 0x1d4   : > { %2270 = vmatpush1.msra.mxu1 %v2046_v49 }
 0x1d5   : > { %2271 = vmatprep.subr.mxu1 %v2045_v15  ;;  %v2069_v15 = vld [vmem:[#allocation7 + $0x368] sm:$0xff] }
 0x1d6   : > { %2272 = vmatpush1.msra.mxu1 %v2044_v8 }
 0x1d7   : > { %2273 = vmatprep.subr.mxu1 %v2043_v34 }
 0x1d8   : > { %2274 = vmatpush1.msra.mxu1 %v2042_v46 }
 0x1d9   : > { %2275 = vmatprep.subr.mxu1 %v2041_v62  ;;  %v2068_v62 = vld [vmem:[#allocation7 + $0x360] sm:$0xff] }
 0x1da   : > { %2276 = vmatpush1.msra.mxu1 %v2040_v32 }
 0x1db   : > { %2277 = vmatprep.subr.mxu1 %v2039_v51 }
 0x1dc   : > { %2278 = vmatpush1.msra.mxu1 %v2038_v20  ;;  %v2067_v20 = vld [vmem:[#allocation7 + $0x358] sm:$0xff] }
 0x1dd   : > { %2279 = vmatprep.subr.mxu1 %v2037_v17 }
 0x1de   : > { %2280 = vmatpush1.msra.mxu1 %v2036_v33 }
 0x1df   : > { %2281 = vmatprep.subr.mxu1 %v2035_v26  ;;  %v2066_v26 = vld [vmem:[#allocation7 + $0x350] sm:$0xff] }
 0x1e0   : > { %2282 = vmatpush1.msra.mxu1 %v2034_v21 }
 0x1e1   : > { %2283 = vmatprep.subr.mxu1 %v2033_v57  ;;  %v2065_v57 = vld [vmem:[#allocation7 + $0x348] sm:$0xff] }
 0x1e2   : > { %2284 = vmatpush1.msra.mxu1 %v2032_v52 }
 0x1e3   : > { %2285 = vmatprep.subr.mxu1 %v2031_v0  ;;  %v2064_v0 = vld [vmem:[#allocation7 + $0x340] sm:$0xff] }
 0x1e4   : > { %2286 = vmatpush1.msra.mxu1 %v2030_v28 }
 0x1e5   : > { %2287 = vmatprep.subr.mxu1 %v2029_v18  ;;  %v2063_v18 = vld [vmem:[#allocation7 + $0x338] sm:$0xff] }
 0x1e6   : > { %2288 = vmatpush1.msra.mxu1 %v2028_v50 }
 0x1e7   : > { %2289 = vmatprep.subr.mxu1 %v2027_v13 }
 0x1e8   : > { %2290 = vmatpush1.msra.mxu1 %v2026_v36 }
 0x1e9   : > { %2291 = vmatprep.subr.mxu1 %v2025_v55  ;;  %v2062_v55 = vld [vmem:[#allocation7 + $0x330] sm:$0xff] }
 0x1ea   : > { %2292 = vmatpush1.msra.mxu1 %v2024_v5 }
 0x1eb   : > { %2293 = vmatprep.subr.mxu1 %v2087_v3 }
 0x1ec   : > { %2294 = vmatpush2.msra.mxu1 %v2086_v42  ;;  %v2061_v42 = vld [vmem:[#allocation7 + $0x328] sm:$0xff] }
 0x1ed   : > { %2295 = vmatprep.subr.mxu1 %v2085_v56 }
 0x1ee   : > { %2296 = vmatpush2.msra.mxu1 %v2084_v45 }
 0x1ef   : > { %v1318_v14 = vpop.f32.mrf.mxu0  ;;  %v1479_v12 = vpop.f32.mrf.mxu1  ;;  %2297 = vmatprep.subr.mxu1 %v2083_v48  ;;  %v2060_v48 = vld [vmem:[#allocation7 + $0x320] sm:$0xff] }
 0x1f0   : > { %v1319_v60 = vadd.f32 %v1318_v14, %v4525_v39  ;;  %2298 = vmatpush2.msra.mxu1 %v2082_v4 }
 0x1f1   : > { %v1320_v6 = vpop.f32.mrf.mxu0  ;;  %v1481_v54 = vpop.f32.mrf.mxu1  ;;  %2299 = vmatprep.subr.mxu1 %v2081_v11  ;;  %v2059_v11 = vld [vmem:[#allocation7 + $0x318] sm:$0xff] }
 0x1f2   : > { %v1321_v24 = vadd.f32 %v1320_v6, %v4529_v7  ;;  %2300 = vmatpush2.msra.mxu1 %v2080_v19  ;;  %v1480_v44 = vadd.f32 %v1479_v12, %v1319_v60  ;;  %v2058_v12 = vld [vmem:[#allocation7 + $0x310] sm:$0xff]  ;;  %v2057_v60 = vld [vmem:[#allocation7 + $0x308] sm:$0xff] }
 0x1f3   : > { %2301 = vmatprep.subr.mxu1 %v2079_v47 }
 0x1f4   : > { %v1482_v38 = vadd.f32 %v1481_v54, %v1321_v24  ;;  %v1324_v9 = vpop.f32.mrf.mxu0  ;;  %2302 = vmatpush2.msra.mxu1 %v2078_v37  ;;  %v1896_v35 = vmax.f32 %v1480_v44, 0.0  ;;  %v2056_v37 = vld [vmem:[#allocation7 + $0x300] sm:$0xff] }
 0x1f5   : > { %v1325_v1 = vadd.f32 %v1324_v9, %v4525_v39  ;;  %v1485_v43 = vpop.f32.mrf.mxu1  ;;  %2303 = vmatprep.subr.mxu1 %v2077_v59 }
 0x1f6   : > { %v1897_v58 = vmax.f32 %v1482_v38, 0.0  ;;  %v1326_v23 = vpop.f32.mrf.mxu0  ;;  %2304 = vmatpush2.msra.mxu1 %v2076_v53 }
 0x1f7   : > { %v1327_v25 = vadd.f32 %v1326_v23, %v4529_v7  ;;  %v1487_v29 = vpop.f32.mrf.mxu1  ;;  %2305 = vmatprep.subr.mxu1 %v2075_v2  ;;  %v1486_v30 = vadd.f32 %v1485_v43, %v1325_v1 }
 0x1f8   : > { %2164 = vmatprep.mubr.f32.mxu0 %v1897_v58  ;;  %2306 = vmatpush2.msra.mxu1 %v2074_v63 }
 0x1f9   : > { %v1488_v22 = vadd.f32 %v1487_v29, %v1327_v25  ;;  %2165 = vmatmul.mubr.f32.vlgmr.msra.gmra.mxu0 %v1896_v35  ;;  %2307 = vmatprep.subr.mxu1 %v2073_v10  ;;  %v1900_v32 = vmax.f32 %v1486_v30, 0.0 }
 0x1fa   : > { %v1330_v49 = vpop.f32.mrf.mxu0  ;;  %2308 = vmatpush2.msra.mxu1 %v2072_v16 }
 0x1fb   : > { %v1901_v8 = vmax.f32 %v1488_v22, 0.0  ;;  %v1331_v34 = vadd.f32 %v1330_v49, %v4525_v39  ;;  %v1491_v46 = vpop.f32.mrf.mxu1  ;;  %2309 = vmatprep.subr.mxu1 %v2071_v27 }
 0x1fc   : > { %v1332_v51 = vpop.f32.mrf.mxu0  ;;  %2310 = vmatpush2.msra.mxu1 %v2070_v41 }
 0x1fd   : > { %v1333_v17 = vadd.f32 %v1332_v51, %v4529_v7  ;;  %v1493_v33 = vpop.f32.mrf.mxu1  ;;  %2170 = vmatprep.mubr.f32.mxu0 %v1901_v8  ;;  %2311 = vmatprep.subr.mxu1 %v2069_v15  ;;  %v1492_v21 = vadd.f32 %v1491_v46, %v1331_v34 }
 0x1fe   : > { %2171 = vmatmul.mubr.f32.gmra.mxu0 %v1900_v32  ;;  %2312 = vmatpush2.msra.mxu1 %v2068_v62 }
 0x1ff   : > { %v1494_v52 = vadd.f32 %v1493_v33, %v1333_v17  ;;  %2313 = vmatprep.subr.mxu1 %v2067_v20  ;;  %v1904_v5 = vmax.f32 %v1492_v21, 0.0 }
 0x200   : > { %v1336_v28 = vpop.f32.mrf.mxu0  ;;  %2314 = vmatpush2.msra.mxu1 %v2066_v26 }
 0x201   : > { %v1905_v50 = vmax.f32 %v1494_v52, 0.0  ;;  %v1337_v13 = vadd.f32 %v1336_v28, %v4525_v39  ;;  %v1497_v36 = vpop.f32.mrf.mxu1  ;;  %2315 = vmatprep.subr.mxu1 %v2065_v57 }
 0x202   : > { %v1338_v3 = vpop.f32.mrf.mxu0  ;;  %2316 = vmatpush2.msra.mxu1 %v2064_v0 }
 0x203   : > { %v1339_v56 = vadd.f32 %v1338_v3, %v4529_v7  ;;  %v1499_v45 = vpop.f32.mrf.mxu1  ;;  %2176 = vmatprep.mubr.f32.mxu0 %v1905_v50  ;;  %2317 = vmatprep.subr.mxu1 %v2063_v18  ;;  %v1498_v4 = vadd.f32 %v1497_v36, %v1337_v13 }
 0x204   : > { %2177 = vmatmul.mubr.f32.gmra.mxu0 %v1904_v5  ;;  %2318 = vmatpush2.msra.mxu1 %v2062_v55 }
 0x205   : > { %v1500_v14 = vadd.f32 %v1499_v45, %v1339_v56  ;;  %2319 = vmatprep.subr.mxu1 %v2061_v42  ;;  %v1908_v24 = vmax.f32 %v1498_v4, 0.0 }
 0x206   : > { %v1342_v19 = vpop.f32.mrf.mxu0  ;;  %2320 = vmatpush2.msra.mxu1 %v2060_v48 }
 0x207   : > { %v1909_v47 = vmax.f32 %v1500_v14, 0.0  ;;  %v1343_v6 = vadd.f32 %v1342_v19, %v4525_v39  ;;  %v1503_v54 = vpop.f32.mrf.mxu1  ;;  %2321 = vmatprep.subr.mxu1 %v2059_v11 }
 0x208   : > { %v1344_v59 = vpop.f32.mrf.mxu0  ;;  %2322 = vmatpush2.msra.mxu1 %v2058_v12 }
 0x209   : > { %v1345_v44 = vadd.f32 %v1344_v59, %v4529_v7  ;;  %v1505_v53 = vpop.f32.mrf.mxu1  ;;  %2182 = vmatprep.mubr.f32.mxu0 %v1909_v47  ;;  %2323 = vmatprep.subr.mxu1 %v2057_v60  ;;  %v1504_v38 = vadd.f32 %v1503_v54, %v1343_v6 }
 0x20a   : > { %2183 = vmatmul.mubr.f32.gmra.mxu0 %v1908_v24  ;;  %2324 = vmatpush2.msra.mxu1 %v2056_v37 }
 0x20b   : > { %v1506_v9 = vadd.f32 %v1505_v53, %v1345_v44  ;;  %v1912_v58 = vmax.f32 %v1504_v38, 0.0 }
 0x20c   : > { %v1348_v2 = vpop.f32.mrf.mxu0 }
 0x20d   : > { %v1913_v1 = vmax.f32 %v1506_v9, 0.0  ;;  %v1349_v43 = vadd.f32 %v1348_v2, %v4525_v39  ;;  %v1509_v63 = vpop.f32.mrf.mxu1 }
 0x20e   : > { %v1350_v23 = vpop.f32.mrf.mxu0 }
 0x20f   : > { %v1351_v10 = vadd.f32 %v1350_v23, %v4529_v7  ;;  %v1511_v35 = vpop.f32.mrf.mxu1  ;;  %2188 = vmatprep.mubr.f32.mxu0 %v1913_v1  ;;  %v1510_v25 = vadd.f32 %v1509_v63, %v1349_v43 }
 0x210   : > { %2189 = vmatmul.mubr.f32.gmra.mxu0 %v1912_v58 }
 0x211   : > { %v1512_v29 = vadd.f32 %v1511_v35, %v1351_v10  ;;  %v1916_v41 = vmax.f32 %v1510_v25, 0.0 }
 0x212   : > { %v1354_v16 = vpop.f32.mrf.mxu0 }
 0x213   : > { %v1917_v30 = vmax.f32 %v1512_v29, 0.0  ;;  %v1355_v27 = vadd.f32 %v1354_v16, %v4525_v39  ;;  %v1515_v22 = vpop.f32.mrf.mxu1 }
 0x214   : > { %v1356_v49 = vpop.f32.mrf.mxu0 }
 0x215   : > { %v1357_v15 = vadd.f32 %v1356_v49, %v4529_v7  ;;  %v1517_v8 = vpop.f32.mrf.mxu1  ;;  %2194 = vmatprep.mubr.f32.mxu0 %v1917_v30  ;;  %v1516_v34 = vadd.f32 %v1515_v22, %v1355_v27 }
 0x216   : > { %2195 = vmatmul.mubr.f32.gmra.mxu0 %v1916_v41 }
 0x217   : > { %v1518_v46 = vadd.f32 %v1517_v8, %v1357_v15  ;;  %v1920_v17 = vmax.f32 %v1516_v34, 0.0 }
 0x218   : > { %v1360_v62 = vpop.f32.mrf.mxu0 }
 0x219   : > { %v1921_v32 = vmax.f32 %v1518_v46, 0.0  ;;  %v1361_v51 = vadd.f32 %v1360_v62, %v4525_v39  ;;  %v1521_v20 = vpop.f32.mrf.mxu1 }
 0x21a   : > { %v1362_v33 = vpop.f32.mrf.mxu0 }
 0x21b   : > { %v1363_v26 = vadd.f32 %v1362_v33, %v4529_v7  ;;  %v1523_v21 = vpop.f32.mrf.mxu1  ;;  %2200 = vmatprep.mubr.f32.mxu0 %v1921_v32  ;;  %v1522_v57 = vadd.f32 %v1521_v20, %v1361_v51 }
 0x21c   : > { %2201 = vmatmul.mubr.f32.gmra.mxu0 %v1920_v17 }
 0x21d   : > { %v1524_v52 = vadd.f32 %v1523_v21, %v1363_v26  ;;  %v1924_v13 = vmax.f32 %v1522_v57, 0.0 }
 0x21e   : > { %v1366_v0 = vpop.f32.mrf.mxu0 }
 0x21f   : > { %v1925_v28 = vmax.f32 %v1524_v52, 0.0  ;;  %v1367_v18 = vadd.f32 %v1366_v0, %v4525_v39  ;;  %v1527_v50 = vpop.f32.mrf.mxu1 }
 0x220   : > { %v1368_v36 = vpop.f32.mrf.mxu0 }
 0x221   : > { %v1369_v55 = vadd.f32 %v1368_v36, %v4529_v7  ;;  %v1529_v5 = vpop.f32.mrf.mxu1  ;;  %2206 = vmatprep.mubr.f32.mxu0 %v1925_v28  ;;  %v1528_v3 = vadd.f32 %v1527_v50, %v1367_v18  ;;  %v2485_v28 = vld [vmem:[%s4940_s7 + $0xf8] sm:$0xff] }
 0x222   : > { %2207 = vmatmul.mubr.f32.gmra.mxu0 %v1924_v13  ;;  %3259 = vmatprep.subr.mxu0 %v2485_v28 }
 0x223   : > { %v1530_v42 = vadd.f32 %v1529_v5, %v1369_v55  ;;  %v1928_v11 = vmax.f32 %v1528_v3, 0.0 }
 0x224   : > { %v1372_v56 = vpop.f32.mrf.mxu0 }
 0x225   : > { %v1929_v45 = vmax.f32 %v1530_v42, 0.0  ;;  %v1373_v48 = vadd.f32 %v1372_v56, %v4525_v39  ;;  %v1533_v4 = vpop.f32.mrf.mxu1  ;;  %v2469_v56 = vld [vmem:[%s4940_s7 + $0x78] sm:$0xff] }
 0x226   : > { %v1374_v14 = vpop.f32.mrf.mxu0  ;;  %3260 = vmatpush3.msra.mxu0 %v2469_v56 }
 0x227   : > { %v1375_v12 = vadd.f32 %v1374_v14, %v4529_v7  ;;  %v1535_v19 = vpop.f32.mrf.mxu1  ;;  %2212 = vmatprep.mubr.f32.mxu0 %v1929_v45  ;;  %v1534_v60 = vadd.f32 %v1533_v4, %v1373_v48  ;;  %v2484_v4 = vld [vmem:[%s4940_s7 + $0xf0] sm:$0xff] }
 0x228   : > { %2213 = vmatmul.mubr.f32.gmra.mxu0 %v1928_v11  ;;  %3261 = vmatprep.subr.mxu0 %v2484_v4  ;;  %v2465_v4 = vld [vmem:[%s4940_s7 + $0x58] sm:$0xff] }
 0x229   : > { %v1536_v47 = vadd.f32 %v1535_v19, %v1375_v12  ;;  %v1932_v59 = vmax.f32 %v1534_v60, 0.0 }
 0x22a   : > { %v1378_v6 = vpop.f32.mrf.mxu0 }
 0x22b   : > { %v1933_v54 = vmax.f32 %v1536_v47, 0.0  ;;  %v1379_v37 = vadd.f32 %v1378_v6, %v4525_v39  ;;  %v1539_v24 = vpop.f32.mrf.mxu1  ;;  %v5148_v6 = vld [vmem:[#allocation16_spill] sm:$0xff] }
 0x22c   : > { %v1380_v44 = vpop.f32.mrf.mxu0 }
 0x22d   : > { %v1381_v53 = vadd.f32 %v1380_v44, %v4529_v7  ;;  %v1541_v38 = vpop.f32.mrf.mxu1  ;;  %2218 = vmatprep.mubr.f32.mxu0 %v1933_v54  ;;  %v1540_v9 = vadd.f32 %v1539_v24, %v1379_v37  ;;  %v5149_v54 = vsub.s32 2, %v5148_v6  ;;  %v2468_v44 = vld [vmem:[%s4940_s7 + $0x70] sm:$0xff] }
 0x22e   : > { %2219 = vmatmul.mubr.f32.gmra.mxu0 %v1932_v59 }
 0x22f   : > { %v1542_v2 = vadd.f32 %v1541_v38, %v1381_v53  ;;  %v1936_v23 = vmax.f32 %v1540_v9, 0.0  ;;  %v4574_v37 = vrot.slane %v4521_v31, %v5149_v54  ;;  %v5150_v38 = vsub.s32 3, %v5148_v6  ;;  %3262 = vmatpush3.msra.mxu0 %v2468_v44 }
 0x230   : > { %v1384_v1 = vpop.f32.mrf.mxu0 }
 0x231   : > { %v1937_v43 = vmax.f32 %v1542_v2, 0.0  ;;  %v1385_v63 = vadd.f32 %v1384_v1, %v4525_v39  ;;  %v1545_v58 = vpop.f32.mrf.mxu1 }
 0x232   : > { %v1386_v10 = vpop.f32.mrf.mxu0 }
 0x233   : > { %v1387_v35 = vadd.f32 %v1386_v10, %v4529_v7  ;;  %v1547_v25 = vpop.f32.mrf.mxu1  ;;  %2224 = vmatprep.mubr.f32.mxu0 %v1937_v43  ;;  %v1546_v29 = vadd.f32 %v1545_v58, %v1385_v63 }
 0x234   : > { %2225 = vmatmul.mubr.f32.gmra.mxu0 %v1936_v23 }
 0x235   : > { %v1548_v16 = vadd.f32 %v1547_v25, %v1387_v35  ;;  %v1940_v49 = vmax.f32 %v1546_v29, 0.0  ;;  %v2467_v29 = vld [vmem:[%s4940_s7 + $0x68] sm:$0xff] }
 0x236   : > { %v1390_v30 = vpop.f32.mrf.mxu0 }
 0x237   : > { %v1941_v27 = vmax.f32 %v1548_v16, 0.0  ;;  %v1391_v22 = vadd.f32 %v1390_v30, %v4525_v39  ;;  %v1551_v41 = vpop.f32.mrf.mxu1 }
 0x238   : > { %v1392_v15 = vpop.f32.mrf.mxu0 }
 0x239   : > { %v1393_v8 = vadd.f32 %v1392_v15, %v4529_v7  ;;  %v1553_v34 = vpop.f32.mrf.mxu1  ;;  %2230 = vmatprep.mubr.f32.mxu0 %v1941_v27  ;;  %v1552_v46 = vadd.f32 %v1551_v41, %v1391_v22  ;;  %v2482_v41 = vld [vmem:[%s4940_s7 + $0xe0] sm:$0xff] }
 0x23a   : > { %2231 = vmatmul.mubr.f32.gmra.mxu0 %v1940_v49 }
 0x23b   : > { %v1554_v62 = vadd.f32 %v1553_v34, %v1393_v8  ;;  %v1944_v33 = vmax.f32 %v1552_v46, 0.0 }
 0x23c   : > { %v1396_v32 = vpop.f32.mrf.mxu0 }
 0x23d   : > { %v1945_v51 = vmax.f32 %v1554_v62, 0.0  ;;  %v1397_v20 = vadd.f32 %v1396_v32, %v4525_v39  ;;  %v1557_v17 = vpop.f32.mrf.mxu1 }
 0x23e   : > { %v1398_v26 = vpop.f32.mrf.mxu0 }
 0x23f   : > { %v1399_v21 = vadd.f32 %v1398_v26, %v4529_v7  ;;  %v1559_v57 = vpop.f32.mrf.mxu1  ;;  %2236 = vmatprep.mubr.f32.mxu0 %v1945_v51  ;;  %v1558_v52 = vadd.f32 %v1557_v17, %v1397_v20 }
 0x240   : > { %2237 = vmatmul.mubr.f32.gmra.mxu0 %v1944_v33  ;;  %v2466_v33 = vld [vmem:[%s4940_s7 + $0x60] sm:$0xff] }
 0x241   : > { %v1560_v0 = vadd.f32 %v1559_v57, %v1399_v21  ;;  %v1948_v55 = vmax.f32 %v1558_v52, 0.0 }
 0x242   : > { %v1402_v18 = vpop.f32.mrf.mxu0 }
 0x243   : > { %v1949_v50 = vmax.f32 %v1560_v0, 0.0  ;;  %v1403_v13 = vadd.f32 %v1402_v18, %v4525_v39  ;;  %v1563_v36 = vpop.f32.mrf.mxu1  ;;  %v2481_v18 = vld [vmem:[%s4940_s7 + $0xd8] sm:$0xff] }
 0x244   : > { %v1404_v5 = vpop.f32.mrf.mxu0 }
 0x245   : > { %v1405_v3 = vadd.f32 %v1404_v5, %v4529_v7  ;;  %v1565_v42 = vpop.f32.mrf.mxu1  ;;  %2242 = vmatprep.mubr.f32.mxu0 %v1949_v50  ;;  %v1564_v45 = vadd.f32 %v1563_v36, %v1403_v13 }
 0x246   : > { %2243 = vmatmul.mubr.f32.gmra.mxu0 %v1948_v55 }
 0x247   : > { %v1566_v48 = vadd.f32 %v1565_v42, %v1405_v3  ;;  %v1952_v60 = vmax.f32 %v1564_v45, 0.0 }
 0x248   : > { %v1408_v11 = vpop.f32.mrf.mxu0 }
 0x249   : > { %v1953_v14 = vmax.f32 %v1566_v48, 0.0  ;;  %v1409_v12 = vadd.f32 %v1408_v11, %v4525_v39  ;;  %v1569_v19 = vpop.f32.mrf.mxu1  ;;  %v4583_v39 = vrot.slane %v4521_v31, %v5150_v38 }
 0x24a   : > { %v1410_v47 = vpop.f32.mrf.mxu0 }
 0x24b   : > { %v1411_v24 = vadd.f32 %v1410_v47, %v4529_v7  ;;  %v1571_v59 = vpop.f32.mrf.mxu1  ;;  %2248 = vmatprep.mubr.f32.mxu0 %v1953_v14  ;;  %v1570_v53 = vadd.f32 %v1569_v19, %v1409_v12  ;;  %v2483_v7 = vld [vmem:[%s4940_s7 + $0xe8] sm:$0xff] }
 0x24c   : > { %2249 = vmatmul.mubr.f32.gmra.mxu0 %v1952_v60  ;;  %3263 = vmatprep.subr.mxu0 %v2483_v7  ;;  %v2480_v60 = vld [vmem:[%s4940_s7 + $0xd0] sm:$0xff] }
 0x24d   : > { %v1572_v9 = vadd.f32 %v1571_v59, %v1411_v24  ;;  %v1640_v2 = vpop.f32.mrf.mxu0  ;;  %v1956_v23 = vmax.f32 %v1570_v53, 0.0  ;;  %3264 = vmatpush3.msra.mxu0 %v2467_v29  ;;  %v2464_v7 = vld [vmem:[%s4940_s7 + $0x50] sm:$0xff] }
 0x24e   : > { %v1641_v1 = vadd.f32 %v1640_v2, %v4574_v37  ;;  %3265 = vmatprep.subr.mxu0 %v2482_v41 }
 0x24f   : > { %v1957_v43 = vmax.f32 %v1572_v9, 0.0  ;;  %v1801_v63 = vpop.f32.mrf.mxu1  ;;  %v1642_v58 = vpop.f32.mrf.mxu0  ;;  %3266 = vmatpush3.msra.mxu0 %v2466_v33 }
 0x250   : > { %v1643_v10 = vadd.f32 %v1642_v58, %v4583_v39  ;;  %v1802_v35 = vadd.f32 %v1801_v63, %v1641_v1  ;;  %3267 = vmatprep.subr.mxu0 %v2481_v18 }
 0x251   : > { %v1803_v31 = vpop.f32.mrf.mxu1  ;;  %v1646_v25 = vpop.f32.mrf.mxu0  ;;  %2254 = vmatprep.mubr.f32.mxu0 %v1957_v43  ;;  %3268 = vmatpush3.msra.mxu0 %v2465_v4 }
 0x252   : > { %v1804_v16 = vadd.f32 %v1803_v31, %v1643_v10  ;;  %v1647_v30 = vadd.f32 %v1646_v25, %v4574_v37  ;;  %2255 = vmatmul.mubr.f32.gmra.mxu0 %v1956_v23  ;;  %v1898_v8 = vmax.f32 %v1802_v35, 0.0  ;;  %3269 = vmatprep.subr.mxu0 %v2480_v60  ;;  %v2479_v35 = vld [vmem:[%s4940_s7 + $0xc8] sm:$0xff] }
 0x253   : > { %v1807_v27 = vpop.f32.mrf.mxu1  ;;  %v1648_v22 = vpop.f32.mrf.mxu0  ;;  %3270 = vmatpush3.msra.mxu0 %v2464_v7 }
 0x254   : > { %v1899_v49 = vmax.f32 %v1804_v16, 0.0  ;;  %v1649_v15 = vadd.f32 %v1648_v22, %v4583_v39  ;;  %v1808_v34 = vadd.f32 %v1807_v27, %v1647_v30  ;;  %3271 = vmatprep.subr.mxu0 %v2479_v35 }
 0x255   : > { %v1809_v46 = vpop.f32.mrf.mxu1  ;;  %v1652_v62 = vpop.f32.mrf.mxu0 }
 0x256   : > { %v1810_v32 = vadd.f32 %v1809_v46, %v1649_v15  ;;  %v1653_v51 = vadd.f32 %v1652_v62, %v4574_v37  ;;  %2325 = vmatprep.mubr.f32.mxu1 %v1899_v49  ;;  %v1902_v57 = vmax.f32 %v1808_v34, 0.0 }
 0x257   : > { %v1813_v20 = vpop.f32.mrf.mxu1  ;;  %v1654_v17 = vpop.f32.mrf.mxu0  ;;  %2326 = vmatmul.mubr.f32.vlgmr.msra.gmra.mxu1 %v1898_v8  ;;  %v2463_v8 = vld [vmem:[%s4940_s7 + $0x48] sm:$0xff] }
 0x258   : > { %v1903_v26 = vmax.f32 %v1810_v32, 0.0  ;;  %v1655_v21 = vadd.f32 %v1654_v17, %v4583_v39  ;;  %v1814_v52 = vadd.f32 %v1813_v20, %v1653_v51  ;;  %3272 = vmatpush3.msra.mxu0 %v2463_v8  ;;  %v2478_v51 = vld [vmem:[%s4940_s7 + $0xc0] sm:$0xff] }
 0x259   : > { %v1815_v0 = vpop.f32.mrf.mxu1  ;;  %v1658_v28 = vpop.f32.mrf.mxu0  ;;  %3273 = vmatprep.subr.mxu0 %v2478_v51 }
 0x25a   : > { %v1816_v50 = vadd.f32 %v1815_v0, %v1655_v21  ;;  %v1659_v13 = vadd.f32 %v1658_v28, %v4574_v37  ;;  %2331 = vmatprep.mubr.f32.mxu1 %v1903_v26  ;;  %v1906_v42 = vmax.f32 %v1814_v52, 0.0 }
 0x25b   : > { %v1819_v36 = vpop.f32.mrf.mxu1  ;;  %v1660_v55 = vpop.f32.mrf.mxu0  ;;  %2332 = vmatmul.mubr.f32.gmra.mxu1 %v1902_v57 }
 0x25c   : > { %v1907_v5 = vmax.f32 %v1816_v50, 0.0  ;;  %v1661_v3 = vadd.f32 %v1660_v55, %v4583_v39  ;;  %v1820_v56 = vadd.f32 %v1819_v36, %v1659_v13  ;;  %v2462_v50 = vld [vmem:[%s4940_s7 + $0x40] sm:$0xff] }
 0x25d   : > { %v1821_v45 = vpop.f32.mrf.mxu1  ;;  %v1664_v48 = vpop.f32.mrf.mxu0  ;;  %3274 = vmatpush3.msra.mxu0 %v2462_v50 }
 0x25e   : > { %v1822_v11 = vadd.f32 %v1821_v45, %v1661_v3  ;;  %v1665_v14 = vadd.f32 %v1664_v48, %v4574_v37  ;;  %2337 = vmatprep.mubr.f32.mxu1 %v1907_v5  ;;  %v1910_v54 = vmax.f32 %v1820_v56, 0.0  ;;  %v2477_v56 = vld [vmem:[%s4940_s7 + $0xb8] sm:$0xff] }
 0x25f   : > { %v1825_v12 = vpop.f32.mrf.mxu1  ;;  %v1666_v19 = vpop.f32.mrf.mxu0  ;;  %2338 = vmatmul.mubr.f32.gmra.mxu1 %v1906_v42  ;;  %3275 = vmatprep.subr.mxu0 %v2477_v56 }
 0x260   : > { %v1911_v47 = vmax.f32 %v1822_v11, 0.0  ;;  %v1667_v6 = vadd.f32 %v1666_v19, %v4583_v39  ;;  %v1826_v24 = vadd.f32 %v1825_v12, %v1665_v14 }
 0x261   : > { %v1827_v59 = vpop.f32.mrf.mxu1  ;;  %v1670_v44 = vpop.f32.mrf.mxu0 }
 0x262   : > { %v1828_v53 = vadd.f32 %v1827_v59, %v1667_v6  ;;  %v1671_v38 = vadd.f32 %v1670_v44, %v4574_v37  ;;  %2343 = vmatprep.mubr.f32.mxu1 %v1911_v47  ;;  %v1914_v63 = vmax.f32 %v1826_v24, 0.0 }
 0x263   : > { %v1831_v9 = vpop.f32.mrf.mxu1  ;;  %v1672_v2 = vpop.f32.mrf.mxu0  ;;  %2344 = vmatmul.mubr.f32.gmra.mxu1 %v1910_v54  ;;  %v2461_v54 = vld [vmem:[%s4940_s7 + $0x38] sm:$0xff] }
 0x264   : > { %v1915_v1 = vmax.f32 %v1828_v53, 0.0  ;;  %v1673_v43 = vadd.f32 %v1672_v2, %v4583_v39  ;;  %v1832_v58 = vadd.f32 %v1831_v9, %v1671_v38  ;;  %3276 = vmatpush3.msra.mxu0 %v2461_v54  ;;  %v2476_v38 = vld [vmem:[%s4940_s7 + $0xb0] sm:$0xff] }
 0x265   : > { %v1833_v23 = vpop.f32.mrf.mxu1  ;;  %v1676_v10 = vpop.f32.mrf.mxu0  ;;  %3277 = vmatprep.subr.mxu0 %v2476_v38 }
 0x266   : > { %v1834_v31 = vadd.f32 %v1833_v23, %v1673_v43  ;;  %v1677_v25 = vadd.f32 %v1676_v10, %v4574_v37  ;;  %2349 = vmatprep.mubr.f32.mxu1 %v1915_v1  ;;  %v1918_v22 = vmax.f32 %v1832_v58, 0.0 }
 0x267   : > { %v1837_v29 = vpop.f32.mrf.mxu1  ;;  %v1678_v16 = vpop.f32.mrf.mxu0  ;;  %2350 = vmatmul.mubr.f32.gmra.mxu1 %v1914_v63 }
 0x268   : > { %v1919_v30 = vmax.f32 %v1834_v31, 0.0  ;;  %v1679_v27 = vadd.f32 %v1678_v16, %v4583_v39  ;;  %v1838_v41 = vadd.f32 %v1837_v29, %v1677_v25  ;;  %v2460_v31 = vld [vmem:[%s4940_s7 + $0x30] sm:$0xff] }
 0x269   : > { %v1839_v49 = vpop.f32.mrf.mxu1  ;;  %v1682_v15 = vpop.f32.mrf.mxu0  ;;  %3278 = vmatpush3.msra.mxu0 %v2460_v31 }
 0x26a   : > { %v1840_v34 = vadd.f32 %v1839_v49, %v1679_v27  ;;  %v1683_v46 = vadd.f32 %v1682_v15, %v4574_v37  ;;  %2355 = vmatprep.mubr.f32.mxu1 %v1919_v30  ;;  %v1922_v33 = vmax.f32 %v1838_v41, 0.0  ;;  %v2475_v41 = vld [vmem:[%s4940_s7 + $0xa8] sm:$0xff] }
 0x26b   : > { %v1843_v62 = vpop.f32.mrf.mxu1  ;;  %v1684_v32 = vpop.f32.mrf.mxu0  ;;  %2356 = vmatmul.mubr.f32.gmra.mxu1 %v1918_v22  ;;  %3279 = vmatprep.subr.mxu0 %v2475_v41 }
 0x26c   : > { %v1923_v20 = vmax.f32 %v1840_v34, 0.0  ;;  %v1685_v17 = vadd.f32 %v1684_v32, %v4583_v39  ;;  %v1844_v26 = vadd.f32 %v1843_v62, %v1683_v46 }
 0x26d   : > { %v1845_v21 = vpop.f32.mrf.mxu1  ;;  %v1688_v57 = vpop.f32.mrf.mxu0 }
 0x26e   : > { %v1846_v52 = vadd.f32 %v1845_v21, %v1685_v17  ;;  %v1689_v0 = vadd.f32 %v1688_v57, %v4574_v37  ;;  %2361 = vmatprep.mubr.f32.mxu1 %v1923_v20  ;;  %v1926_v55 = vmax.f32 %v1844_v26, 0.0 }
 0x26f   : > { %v1849_v28 = vpop.f32.mrf.mxu1  ;;  %v1690_v18 = vpop.f32.mrf.mxu0  ;;  %2362 = vmatmul.mubr.f32.gmra.mxu1 %v1922_v33  ;;  %v2459_v33 = vld [vmem:[%s4940_s7 + $0x28] sm:$0xff] }
 0x270   : > { %v1927_v13 = vmax.f32 %v1846_v52, 0.0  ;;  %v1691_v36 = vadd.f32 %v1690_v18, %v4583_v39  ;;  %v1850_v5 = vadd.f32 %v1849_v28, %v1689_v0  ;;  %3280 = vmatpush3.msra.mxu0 %v2459_v33  ;;  %v2474_v0 = vld [vmem:[%s4940_s7 + $0xa0] sm:$0xff] }
 0x271   : > { %v1851_v3 = vpop.f32.mrf.mxu1  ;;  %v1694_v42 = vpop.f32.mrf.mxu0  ;;  %3281 = vmatprep.subr.mxu0 %v2474_v0 }
 0x272   : > { %v1852_v45 = vadd.f32 %v1851_v3, %v1691_v36  ;;  %v1695_v48 = vadd.f32 %v1694_v42, %v4574_v37  ;;  %2367 = vmatprep.mubr.f32.mxu1 %v1927_v13  ;;  %v1930_v19 = vmax.f32 %v1850_v5, 0.0 }
 0x273   : > { %v1855_v4 = vpop.f32.mrf.mxu1  ;;  %v1696_v11 = vpop.f32.mrf.mxu0  ;;  %2368 = vmatmul.mubr.f32.gmra.mxu1 %v1926_v55 }
 0x274   : > { %v1931_v14 = vmax.f32 %v1852_v45, 0.0  ;;  %v1697_v12 = vadd.f32 %v1696_v11, %v4583_v39  ;;  %v1856_v60 = vadd.f32 %v1855_v4, %v1695_v48  ;;  %v2458_v45 = vld [vmem:[%s4940_s7 + $0x20] sm:$0xff] }
 0x275   : > { %v1857_v47 = vpop.f32.mrf.mxu1  ;;  %v1700_v6 = vpop.f32.mrf.mxu0  ;;  %3282 = vmatpush3.msra.mxu0 %v2458_v45 }
 0x276   : > { %v1858_v24 = vadd.f32 %v1857_v47, %v1697_v12  ;;  %v1701_v59 = vadd.f32 %v1700_v6, %v4574_v37  ;;  %2373 = vmatprep.mubr.f32.mxu1 %v1931_v14  ;;  %v1934_v7 = vmax.f32 %v1856_v60, 0.0  ;;  %v2473_v60 = vld [vmem:[%s4940_s7 + $0x98] sm:$0xff] }
 0x277   : > { %v1861_v44 = vpop.f32.mrf.mxu1  ;;  %v1702_v53 = vpop.f32.mrf.mxu0  ;;  %2374 = vmatmul.mubr.f32.gmra.mxu1 %v1930_v19  ;;  %3283 = vmatprep.subr.mxu0 %v2473_v60 }
 0x278   : > { %v1935_v9 = vmax.f32 %v1858_v24, 0.0  ;;  %v1703_v2 = vadd.f32 %v1702_v53, %v4583_v39  ;;  %v1862_v1 = vadd.f32 %v1861_v44, %v1701_v59 }
 0x279   : > { %v1863_v43 = vpop.f32.mrf.mxu1  ;;  %v1706_v63 = vpop.f32.mrf.mxu0 }
 0x27a   : > { %v1864_v58 = vadd.f32 %v1863_v43, %v1703_v2  ;;  %v1707_v23 = vadd.f32 %v1706_v63, %v4574_v37  ;;  %2379 = vmatprep.mubr.f32.mxu1 %v1935_v9  ;;  %v1938_v16 = vmax.f32 %v1862_v1, 0.0  ;;  %v2457_v2 = vld [vmem:[%s4940_s7 + $0x18] sm:$0xff]  ;;  %v2471_v63 = vld [vmem:[%s4940_s7 + $0x88] sm:$0xff] }
 0x27b   : > { %v1867_v10 = vpop.f32.mrf.mxu1  ;;  %v1708_v35 = vpop.f32.mrf.mxu0  ;;  %2380 = vmatmul.mubr.f32.gmra.mxu1 %v1934_v7  ;;  %3284 = vmatpush3.msra.mxu0 %v2457_v2 }
 0x27c   : > { %v1939_v25 = vmax.f32 %v1864_v58, 0.0  ;;  %v1709_v29 = vadd.f32 %v1708_v35, %v4583_v39  ;;  %v1868_v30 = vadd.f32 %v1867_v10, %v1707_v23  ;;  %v2455_v58 = vld [vmem:[%s4940_s7 + $0x8] sm:$0xff]  ;;  %v2470_v23 = vld [vmem:[%s4940_s7 + $0x80] sm:$0xff] }
 0x27d   : > { %v1869_v27 = vpop.f32.mrf.mxu1  ;;  %v1712_v22 = vpop.f32.mrf.mxu0  ;;  %v2454_v10 = vld [vmem:[%s4940_s7] sm:$0xff] }
 0x27e   : > { %v1870_v49 = vadd.f32 %v1869_v27, %v1709_v29  ;;  %v1713_v15 = vadd.f32 %v1712_v22, %v4574_v37  ;;  %2385 = vmatprep.mubr.f32.mxu1 %v1939_v25  ;;  %v1942_v32 = vmax.f32 %v1868_v30, 0.0  ;;  %v2661_v25 = vld [vmem:[%s4942_s9 + $0x38] sm:$0xff]  ;;  %v2660_v29 = vld [vmem:[%s4942_s9 + $0x30] sm:$0xff]  ;;  %v2659_v30 = vld [vmem:[%s4942_s9 + $0x28] sm:$0xff] }
 0x27f   : > { %v1873_v8 = vpop.f32.mrf.mxu1  ;;  %v1714_v34 = vpop.f32.mrf.mxu0  ;;  %2386 = vmatmul.mubr.f32.gmra.mxu1 %v1938_v16  ;;  %3381 = vmatprep.subr.mxu1 %v2661_v25 }
 0x280   : > { %v1943_v46 = vmax.f32 %v1870_v49, 0.0  ;;  %v1715_v62 = vadd.f32 %v1714_v34, %v4583_v39  ;;  %v1874_v51 = vadd.f32 %v1873_v8, %v1713_v15  ;;  %3382 = vmatpush3.msra.mxu1 %v2661_v25 }
 0x281   : > { %v1875_v20 = vpop.f32.mrf.mxu1  ;;  %v1718_v17 = vpop.f32.mrf.mxu0  ;;  %3383 = vmatprep.subr.mxu1 %v2660_v29 }
 0x282   : > { %v1876_v26 = vadd.f32 %v1875_v20, %v1715_v62  ;;  %v1719_v21 = vadd.f32 %v1718_v17, %v4574_v37  ;;  %2391 = vmatprep.mubr.f32.mxu1 %v1943_v46  ;;  %v1946_v50 = vmax.f32 %v1874_v51, 0.0  ;;  %3384 = vmatpush3.msra.mxu1 %v2660_v29  ;;  %v2088_v17 = vld [vmem:[%s4939_s6] sm:$0x3] }
 0x283   : > { %v1879_v57 = vpop.f32.mrf.mxu1  ;;  %v1720_v52 = vpop.f32.mrf.mxu0  ;;  %2392 = vmatmul.mubr.f32.gmra.mxu1 %v1942_v32  ;;  %3385 = vmatprep.subr.mxu1 %v2659_v30 }
 0x284   : > { %v1947_v28 = vmax.f32 %v1876_v26, 0.0  ;;  %v1721_v18 = vadd.f32 %v1720_v52, %v4583_v39  ;;  %v1880_v13 = vadd.f32 %v1879_v57, %v1719_v21  ;;  %3386 = vmatpush3.msra.mxu1 %v2659_v30  ;;  %v4722_v26 = vrot.slane %v2088_v17, %v5146_v61 }
 0x285   : > { %v1881_v36 = vpop.f32.mrf.mxu1  ;;  %v1724_v55 = vpop.f32.mrf.mxu0  ;;  %v4725_v21 = vrot.slane %v2088_v17, %v5147_v40 }
 0x286   : > { %v1882_v5 = vadd.f32 %v1881_v36, %v1721_v18  ;;  %v1725_v3 = vadd.f32 %v1724_v55, %v4574_v37  ;;  %2397 = vmatprep.mubr.f32.mxu1 %v1947_v28  ;;  %v1950_v11 = vmax.f32 %v1880_v13, 0.0 }
 0x287   : > { %v1885_v42 = vpop.f32.mrf.mxu1  ;;  %v1726_v56 = vpop.f32.mrf.mxu0  ;;  %2398 = vmatmul.mubr.f32.gmra.mxu1 %v1946_v50 }
 0x288   : > { %v1951_v48 = vmax.f32 %v1882_v5, 0.0  ;;  %v1727_v4 = vadd.f32 %v1726_v56, %v4583_v39  ;;  %v1886_v14 = vadd.f32 %v1885_v42, %v1725_v3 }
 0x289   : > { %v1887_v12 = vpop.f32.mrf.mxu1  ;;  %v1730_v19 = vpop.f32.mrf.mxu0 }
 0x28a   : > { %v1888_v47 = vadd.f32 %v1887_v12, %v1727_v4  ;;  %v1731_v6 = vadd.f32 %v1730_v19, %v4574_v37  ;;  %2403 = vmatprep.mubr.f32.mxu1 %v1951_v48  ;;  %v1954_v53 = vmax.f32 %v1886_v14, 0.0  ;;  %v2472_v37 = vld [vmem:[%s4940_s7 + $0x90] sm:$0xff] }
 0x28b   : > { %v1891_v54 = vpop.f32.mrf.mxu1  ;;  %v1732_v24 = vpop.f32.mrf.mxu0  ;;  %2404 = vmatmul.mubr.f32.gmra.mxu1 %v1950_v11  ;;  %3285 = vmatprep.subr.mxu0 %v2472_v37 }
 0x28c   : > { %v1955_v59 = vmax.f32 %v1888_v47, 0.0  ;;  %v1733_v44 = vadd.f32 %v1732_v24, %v4583_v39  ;;  %v1892_v38 = vadd.f32 %v1891_v54, %v1731_v6  ;;  %v2456_v39 = vld [vmem:[%s4940_s7 + $0x10] sm:$0xff] }
 0x28d   : > { %v1893_v9 = vpop.f32.mrf.mxu1  ;;  %3286 = vmatpush3.msra.mxu0 %v2456_v39 }
 0x28e   : > { %v1894_v7 = vadd.f32 %v1893_v9, %v1733_v44  ;;  %2409 = vmatprep.mubr.f32.mxu1 %v1955_v59  ;;  %v1958_v43 = vmax.f32 %v1892_v38, 0.0  ;;  %3287 = vmatprep.subr.mxu0 %v2471_v63 }
 0x28f   : > { %2410 = vmatmul.mubr.f32.gmra.mxu1 %v1954_v53  ;;  %3288 = vmatpush3.msra.mxu0 %v2455_v58 }
 0x290   : > { %v1959_v1 = vmax.f32 %v1894_v7, 0.0  ;;  %3289 = vmatprep.subr.mxu0 %v2470_v23 }
 0x291   : > { %3290 = vmatpush3.msra.mxu0 %v2454_v10 }
 0x292   : > { %2415 = vmatprep.mubr.f32.mxu1 %v1959_v1 }
 0x293   : > { %2416 = vmatmul.mubr.f32.gmra.mxu1 %v1958_v43 }
 0x2b9   : > { %v2166_v35 = vpop.f32.mrf.mxu0 }
 0x2ba   : > { %v2167_v52 = vadd.f32 %v2166_v35, %v4722_v26 }
 0x2bb   : > { %v2168_v31 = vpop.f32.mrf.mxu0 }
 0x2bc   : > { %v2169_v28 = vadd.f32 %v2168_v31, %v4725_v21 }
 0x2be   : > { %v2172_v16 = vpop.f32.mrf.mxu0 }
 0x2bf   : > { %v2173_v55 = vadd.f32 %v2172_v16, %v4722_v26 }
 0x2c0   : > { %v2174_v27 = vpop.f32.mrf.mxu0 }
 0x2c1   : > { %v2175_v61 = vadd.f32 %v2174_v27, %v4725_v21 }
 0x2c4   : > { %v2178_v22 = vpop.f32.mrf.mxu0 }
 0x2c5   : > { %v2179_v4 = vadd.f32 %v2178_v22, %v4722_v26 }
 0x2c6   : > { %v2180_v41 = vpop.f32.mrf.mxu0 }
 0x2c7   : > { %v2181_v14 = vadd.f32 %v2180_v41, %v4725_v21 }
 0x2ca   : > { %v2184_v49 = vpop.f32.mrf.mxu0 }
 0x2cb   : > { %v2185_v24 = vadd.f32 %v2184_v49, %v4722_v26 }
 0x2cc   : > { %v2186_v15 = vpop.f32.mrf.mxu0 }
 0x2cd   : > { %v2187_v44 = vadd.f32 %v2186_v15, %v4725_v21 }
 0x2d0   : > { %v2190_v8 = vpop.f32.mrf.mxu0 }
 0x2d1   : > { %v2191_v1 = vadd.f32 %v2190_v8, %v4722_v26 }
 0x2d2   : > { %v2192_v34 = vpop.f32.mrf.mxu0 }
 0x2d3   : > { %v2193_v39 = vadd.f32 %v2192_v34, %v4725_v21 }
 0x2d6   : > { %v2196_v46 = vpop.f32.mrf.mxu0 }
 0x2d7   : > { %v2197_v25 = vadd.f32 %v2196_v46, %v4722_v26 }
 0x2d8   : > { %v2198_v62 = vpop.f32.mrf.mxu0 }
 0x2d9   : > { %v2199_v16 = vadd.f32 %v2198_v62, %v4725_v21 }
 0x2dc   : > { %v4710_v32 = vpop.f32.mrf.mxu0 }
 0x2dd   : > { %v2203_v8 = vadd.f32 %v4710_v32, %v4722_v26 }
 0x2de   : > { %v4712_v51 = vpop.f32.mrf.mxu0 }
 0x2df   : > { %v2205_v17 = vadd.f32 %v4712_v51, %v4725_v21 }
 0x2e2   : > { %v4714_v20 = vpop.f32.mrf.mxu0 }
 0x2e4   : > { %v4719_v33 = vpop.f32.mrf.mxu0 }
 0x2e5   : > { %v2211_v32 = vadd.f32 %v4719_v33, %v4725_v21 }
 0x2e8   : > { %v4727_v57 = vpop.f32.mrf.mxu0 }
 0x2ea   : > { %v4731_v18 = vpop.f32.mrf.mxu0 }
 0x2ee   : > { %v4735_v40 = vpop.f32.mrf.mxu0 }
 0x2f0   : > { %v4739_v19 = vpop.f32.mrf.mxu0 }
 0x2f4   : > { %v4743_v38 = vpop.f32.mrf.mxu0 }
 0x2f6   : > { %v4747_v58 = vpop.f32.mrf.mxu0 }
 0x2fa   : > { %v2232_v27 = vpop.f32.mrf.mxu0 }
 0x317   : > { %v2327_v0 = vpop.f32.mrf.mxu1 }
 0x318   : > { %v2328_v50 = vadd.f32 %v2327_v0, %v2167_v52  ;;  %v2234_v52 = vpop.f32.mrf.mxu0 }
 0x319   : > { %v2329_v13 = vpop.f32.mrf.mxu1 }
 0x31a   : > { %v2330_v36 = vadd.f32 %v2329_v13, %v2169_v28  ;;  %v2422_v42 = vmax.f32 %v2328_v50, 0.0  ;;  %v2209_v13 = vadd.f32 %v4714_v20, %v4722_v26  ;;  %v2217_v20 = vadd.f32 %v4731_v18, %v4725_v21 }
 0x31b   : > { %v2333_v5 = vpop.f32.mrf.mxu1 }
 0x31c   : > { %v2423_v3 = vmax.f32 %v2330_v36, 0.0  ;;  %v2334_v56 = vadd.f32 %v2333_v5, %v2173_v55  ;;  %v2238_v5 = vpop.f32.mrf.mxu0 }
 0x31d   : > { %v2335_v45 = vpop.f32.mrf.mxu1 }
 0x31e   : > { %v2336_v48 = vadd.f32 %v2335_v45, %v2175_v61  ;;  %2557 = vmatprep.mubr.f32.mxu0 %v2423_v3  ;;  %v2424_v60 = vmax.f32 %v2334_v56, 0.0  ;;  %v2215_v56 = vadd.f32 %v4727_v57, %v4722_v26  ;;  %v2223_v57 = vadd.f32 %v4739_v19, %v4725_v21 }
 0x31f   : > { %v2339_v11 = vpop.f32.mrf.mxu1  ;;  %2558 = vmatmul.mubr.f32.vlgmr.msra.gmra.mxu0 %v2422_v42 }
 0x320   : > { %v2425_v12 = vmax.f32 %v2336_v48, 0.0  ;;  %v2340_v47 = vadd.f32 %v2339_v11, %v2179_v4  ;;  %v2240_v4 = vpop.f32.mrf.mxu0 }
 0x321   : > { %v2341_v6 = vpop.f32.mrf.mxu1 }
 0x322   : > { %v2342_v54 = vadd.f32 %v2341_v6, %v2181_v14  ;;  %2562 = vmatprep.mubr.f32.mxu0 %v2425_v12  ;;  %v2426_v9 = vmax.f32 %v2340_v47, 0.0 }
 0x323   : > { %v2345_v59 = vpop.f32.mrf.mxu1  ;;  %2563 = vmatmul.mubr.f32.gmra.mxu0 %v2424_v60  ;;  %v2221_v60 = vadd.f32 %v4735_v40, %v4722_v26  ;;  %v2229_v40 = vadd.f32 %v4747_v58, %v4725_v21  ;;  %v2239_v58 = vadd.f32 %v2238_v5, %v4722_v26 }
 0x324   : > { %v2427_v53 = vmax.f32 %v2342_v54, 0.0  ;;  %v2346_v2 = vadd.f32 %v2345_v59, %v2185_v24  ;;  %v2244_v54 = vpop.f32.mrf.mxu0 }
 0x325   : > { %v2347_v7 = vpop.f32.mrf.mxu1 }
 0x326   : > { %v2348_v37 = vadd.f32 %v2347_v7, %v2187_v44  ;;  %2567 = vmatprep.mubr.f32.mxu0 %v2427_v53  ;;  %v2428_v23 = vmax.f32 %v2346_v2, 0.0  ;;  %v2227_v53 = vadd.f32 %v4743_v38, %v4722_v26  ;;  %v2246_v7 = vpop.f32.mrf.mxu0 }
 0x327   : > { %v2351_v43 = vpop.f32.mrf.mxu1  ;;  %2568 = vmatmul.mubr.f32.gmra.mxu0 %v2426_v9 }
 0x328   : > { %v2429_v63 = vmax.f32 %v2348_v37, 0.0  ;;  %v2352_v10 = vadd.f32 %v2351_v43, %v2191_v1  ;;  %v2250_v38 = vpop.f32.mrf.mxu0 }
 0x329   : > { %v2353_v35 = vpop.f32.mrf.mxu1 }
 0x32a   : > { %v2354_v31 = vadd.f32 %v2353_v35, %v2193_v39  ;;  %2572 = vmatprep.mubr.f32.mxu0 %v2429_v63  ;;  %v2430_v22 = vmax.f32 %v2352_v10, 0.0  ;;  %v2233_v39 = vadd.f32 %v2232_v27, %v4722_v26 }
 0x32b   : > { %v2357_v29 = vpop.f32.mrf.mxu1  ;;  %2573 = vmatmul.mubr.f32.gmra.mxu0 %v2428_v23  ;;  %v2235_v23 = vadd.f32 %v2234_v52, %v4725_v21 }
 0x32c   : > { %v2431_v30 = vmax.f32 %v2354_v31, 0.0  ;;  %v2358_v41 = vadd.f32 %v2357_v29, %v2197_v25 }
 0x32d   : > { %v2359_v49 = vpop.f32.mrf.mxu1 }
 0x32e   : > { %v2360_v15 = vadd.f32 %v2359_v49, %v2199_v16  ;;  %2577 = vmatprep.mubr.f32.mxu0 %v2431_v30  ;;  %v2432_v0 = vmax.f32 %v2358_v41, 0.0  ;;  %v2241_v30 = vadd.f32 %v2240_v4, %v4725_v21  ;;  %v2252_v41 = vpop.f32.mrf.mxu0 }
 0x32f   : > { %v2363_v34 = vpop.f32.mrf.mxu1  ;;  %2578 = vmatmul.mubr.f32.gmra.mxu0 %v2430_v22 }
 0x330   : > { %v2433_v46 = vmax.f32 %v2360_v15, 0.0  ;;  %v2364_v28 = vadd.f32 %v2363_v34, %v2203_v8  ;;  %v2245_v34 = vadd.f32 %v2244_v54, %v4722_v26  ;;  %v2654_v54 = vld [vmem:[%s4942_s9] sm:$0xff] }
 0x331   : > { %v2365_v62 = vpop.f32.mrf.mxu1 }
 0x332   : > { %v2366_v50 = vadd.f32 %v2365_v62, %v2205_v17  ;;  %2582 = vmatprep.mubr.f32.mxu0 %v2433_v46  ;;  %v2434_v61 = vmax.f32 %v2364_v28, 0.0  ;;  %v2247_v46 = vadd.f32 %v2246_v7, %v4725_v21 }
 0x333   : > { %v2369_v36 = vpop.f32.mrf.mxu1  ;;  %2583 = vmatmul.mubr.f32.gmra.mxu0 %v2432_v0  ;;  %v2256_v0 = vpop.f32.mrf.mxu0 }
 0x334   : > { %v2435_v55 = vmax.f32 %v2366_v50, 0.0  ;;  %v2370_v3 = vadd.f32 %v2369_v36, %v2209_v13  ;;  %v2251_v36 = vadd.f32 %v2250_v38, %v4722_v26 }
 0x335   : > { %v2371_v51 = vpop.f32.mrf.mxu1 }
 0x336   : > { %v2372_v42 = vadd.f32 %v2371_v51, %v2211_v32  ;;  %2587 = vmatprep.mubr.f32.mxu0 %v2435_v55  ;;  %v2436_v11 = vmax.f32 %v2370_v3, 0.0  ;;  %v2253_v55 = vadd.f32 %v2252_v41, %v4725_v21 }
 0x337   : > { %v2375_v45 = vpop.f32.mrf.mxu1  ;;  %2588 = vmatmul.mubr.f32.gmra.mxu0 %v2434_v61  ;;  %v2258_v61 = vpop.f32.mrf.mxu0 }
 0x338   : > { %v2437_v48 = vmax.f32 %v2372_v42, 0.0  ;;  %v2376_v14 = vadd.f32 %v2375_v45, %v2215_v56  ;;  %v2257_v45 = vadd.f32 %v2256_v0, %v4722_v26  ;;  %v2657_v26 = vld [vmem:[%s4942_s9 + $0x18] sm:$0xff] }
 0x339   : > { %v2377_v33 = vpop.f32.mrf.mxu1 }
 0x33a   : > { %v2378_v12 = vadd.f32 %v2377_v33, %v2217_v20  ;;  %2592 = vmatprep.mubr.f32.mxu0 %v2437_v48  ;;  %v2438_v24 = vmax.f32 %v2376_v14, 0.0  ;;  %v2259_v48 = vadd.f32 %v2258_v61, %v4725_v21  ;;  %v2656_v21 = vld [vmem:[%s4942_s9 + $0x10] sm:$0xff] }
 0x33b   : > { %v2381_v47 = vpop.f32.mrf.mxu1  ;;  %2593 = vmatmul.mubr.f32.gmra.mxu0 %v2436_v11 }
 0x33c   : > { %v2439_v6 = vmax.f32 %v2378_v12, 0.0  ;;  %v2382_v59 = vadd.f32 %v2381_v47, %v2221_v60 }
 0x33d   : > { %v2383_v18 = vpop.f32.mrf.mxu1 }
 0x33e   : > { %v2384_v44 = vadd.f32 %v2383_v18, %v2223_v57  ;;  %2597 = vmatprep.mubr.f32.mxu0 %v2439_v6  ;;  %v2440_v37 = vmax.f32 %v2382_v59, 0.0  ;;  %v2658_v57 = vld [vmem:[%s4942_s9 + $0x20] sm:$0xff]  ;;  %v2655_v6 = vld [vmem:[%s4942_s9 + $0x8] sm:$0xff] }
 0x33f   : > { %v2387_v9 = vpop.f32.mrf.mxu1  ;;  %2598 = vmatmul.mubr.f32.gmra.mxu0 %v2438_v24  ;;  %3387 = vmatprep.subr.mxu1 %v2658_v57  ;;  %v4799_v59 = vld [vmem:[%s4941_s8] ss:$0 sm:$0xff] }
 0x340   : > { %v2441_v2 = vmax.f32 %v2384_v44, 0.0  ;;  %v2388_v1 = vadd.f32 %v2387_v9, %v2227_v53  ;;  %3388 = vmatpush3.msra.mxu1 %v2658_v57 }
 0x341   : > { %v2389_v19 = vpop.f32.mrf.mxu1  ;;  %3389 = vmatprep.subr.mxu1 %v2657_v26 }
 0x342   : > { %v2390_v43 = vadd.f32 %v2389_v19, %v2229_v40  ;;  %2602 = vmatprep.mubr.f32.mxu0 %v2441_v2  ;;  %v2442_v35 = vmax.f32 %v2388_v1, 0.0  ;;  %3390 = vmatpush3.msra.mxu1 %v2657_v26 }
 0x343   : > { %v2393_v63 = vpop.f32.mrf.mxu1  ;;  %2603 = vmatmul.mubr.f32.gmra.mxu0 %v2440_v37  ;;  %3391 = vmatprep.subr.mxu1 %v2656_v21 }
 0x344   : > { %v2443_v10 = vmax.f32 %v2390_v43, 0.0  ;;  %v2394_v31 = vadd.f32 %v2393_v63, %v2233_v39  ;;  %3392 = vmatpush3.msra.mxu1 %v2656_v21 }
 0x345   : > { %v2395_v25 = vpop.f32.mrf.mxu1  ;;  %3393 = vmatprep.subr.mxu1 %v2655_v6 }
 0x346   : > { %v2396_v29 = vadd.f32 %v2395_v25, %v2235_v23  ;;  %2607 = vmatprep.mubr.f32.mxu0 %v2443_v10  ;;  %v2444_v27 = vmax.f32 %v2394_v31, 0.0  ;;  %3394 = vmatpush3.msra.mxu1 %v2655_v6 }
 0x347   : > { %v2399_v16 = vpop.f32.mrf.mxu1  ;;  %2608 = vmatmul.mubr.f32.gmra.mxu0 %v2442_v35  ;;  %3395 = vmatprep.subr.mxu1 %v2654_v54 }
 0x348   : > { %v2445_v22 = vmax.f32 %v2396_v29, 0.0  ;;  %v2400_v49 = vadd.f32 %v2399_v16, %v2239_v58  ;;  %3396 = vmatpush3.msra.mxu1 %v2654_v54 }
 0x349   : > { %v2401_v15 = vpop.f32.mrf.mxu1 }
 0x34a   : > { %v2402_v8 = vadd.f32 %v2401_v15, %v2241_v30  ;;  %2612 = vmatprep.mubr.f32.mxu0 %v2445_v22  ;;  %v2446_v28 = vmax.f32 %v2400_v49, 0.0 }
 0x34b   : > { %v2405_v17 = vpop.f32.mrf.mxu1  ;;  %2613 = vmatmul.mubr.f32.gmra.mxu0 %v2444_v27 }
 0x34c   : > { %v2447_v52 = vmax.f32 %v2402_v8, 0.0  ;;  %v2406_v62 = vadd.f32 %v2405_v17, %v2245_v34 }
 0x34d   : > { %v2407_v50 = vpop.f32.mrf.mxu1 }
 0x34e   : > { %v2408_v13 = vadd.f32 %v2407_v50, %v2247_v46  ;;  %2617 = vmatprep.mubr.f32.mxu0 %v2447_v52  ;;  %v2448_v3 = vmax.f32 %v2406_v62, 0.0 }
 0x34f   : > { %v2411_v32 = vpop.f32.mrf.mxu1  ;;  %2618 = vmatmul.mubr.f32.gmra.mxu0 %v2446_v28 }
 0x350   : > { %v2449_v5 = vmax.f32 %v2408_v13, 0.0  ;;  %v2412_v51 = vadd.f32 %v2411_v32, %v2251_v36 }
 0x351   : > { %v2413_v42 = vpop.f32.mrf.mxu1 }
 0x352   : > { %v2414_v56 = vadd.f32 %v2413_v42, %v2253_v55  ;;  %2622 = vmatprep.mubr.f32.mxu0 %v2449_v5  ;;  %v2450_v11 = vmax.f32 %v2412_v51, 0.0 }
 0x353   : > { %v2417_v20 = vpop.f32.mrf.mxu1  ;;  %2623 = vmatmul.mubr.f32.gmra.mxu0 %v2448_v3 }
 0x354   : > { %v2451_v4 = vmax.f32 %v2414_v56, 0.0  ;;  %v2418_v14 = vadd.f32 %v2417_v20, %v2257_v45 }
 0x355   : > { %v2419_v33 = vpop.f32.mrf.mxu1 }
 0x356   : > { %v2420_v12 = vadd.f32 %v2419_v33, %v2259_v48  ;;  %2627 = vmatprep.mubr.f32.mxu0 %v2451_v4  ;;  %v2452_v47 = vmax.f32 %v2418_v14, 0.0 }
 0x357   : > { %2628 = vmatmul.mubr.f32.gmra.mxu0 %v2450_v11 }
 0x358   : > { %v2453_v60 = vmax.f32 %v2420_v12, 0.0 }
 0x35a   : > { %2632 = vmatprep.mubr.f32.mxu0 %v2453_v60 }
 0x35b   : > { %2633 = vmatmul.mubr.f32.gmra.mxu0 %v2452_v47 }
 0x3df   : > { %v3291_v24 = vpop.f32.mrf.mxu0 }
 0x3e1   : > { %v3292_v18 = vpop.f32.mrf.mxu0 }
 0x3e2   : > { %v3293_v44 = vadd.f32 %v3292_v18, %v3291_v24 }
 0x3e3   : > { %v3294_v53 = vpop.f32.mrf.mxu0 }
 0x3e4   : > { %v2560_v9 = vadd.f32 %v3293_v44, %v4799_v59 }
 0x3e5   : > { %v3295_v40 = vpop.f32.mrf.mxu0 }
 0x3e6   : > { %v2638_v2 = vmax.f32 %v2560_v9, 0.0  ;;  %v3296_v7 = vadd.f32 %v3295_v40, %v3294_v53 }
 0x3e7   : > { %v3297_v37 = vpop.f32.mrf.mxu0 }
 0x3e8   : > { %v2565_v1 = vadd.f32 %v3296_v7, %v4799_v59  ;;  %3397 = vmatprep.mubr.msk.f32.mxu1 %vm2669_vm0, %v2638_v2 }
 0x3e9   : > { %v3298_v19 = vpop.f32.mrf.mxu0 }
 0x3ea   : > { %v2639_v43 = vmax.f32 %v2565_v1, 0.0  ;;  %v3299_v39 = vadd.f32 %v3298_v19, %v3297_v37 }
 0x3eb   : > { %v3300_v63 = vpop.f32.mrf.mxu0 }
 0x3ec   : > { %v2570_v23 = vadd.f32 %v3299_v39, %v4799_v59  ;;  %3398 = vmatmul.mubr.msk.f32.vlgmr.msra.gmra.mxu1 %vm2669_vm0, %v2639_v43 }
 0x3ed   : > { %v3301_v10 = vpop.f32.mrf.mxu0 }
 0x3ee   : > { %v2640_v38 = vmax.f32 %v2570_v23, 0.0  ;;  %v3302_v35 = vadd.f32 %v3301_v10, %v3300_v63 }
 0x3ef   : > { %v3303_v31 = vpop.f32.mrf.mxu0 }
 0x3f0   : > { %v2575_v25 = vadd.f32 %v3302_v35, %v4799_v59  ;;  %3400 = vmatprep.mubr.msk.f32.mxu1 %vm2669_vm0, %v2640_v38  ;;  %v2880_v35 = vld [vmem:[%s4944_s11 + $0x8] sm:$0xff] }
 0x3f1   : > { %v3304_v29 = vpop.f32.mrf.mxu0  ;;  %3421 = vmatprep.subr.mxu1 %v2880_v35 }
 0x3f2   : > { %v2641_v58 = vmax.f32 %v2575_v25, 0.0  ;;  %v3305_v16 = vadd.f32 %v3304_v29, %v3303_v31  ;;  %v2879_v31 = vld [vmem:[%s4944_s11] sm:$0xff]  ;;  %3422 = vmatpush3.msra.mxu1 %v2880_v35 }
 0x3f3   : > { %v3306_v30 = vpop.f32.mrf.mxu0  ;;  %3423 = vmatprep.subr.mxu1 %v2879_v31 }
 0x3f4   : > { %v2580_v22 = vadd.f32 %v3305_v16, %v4799_v59  ;;  %3401 = vmatmul.mubr.msk.f32.gmra.mxu1 %vm2669_vm0, %v2641_v58 }
 0x3f5   : > { %v3307_v41 = vpop.f32.mrf.mxu0  ;;  %3424 = vmatpush3.msra.mxu1 %v2879_v31 }
 0x3f6   : > { %v2642_v27 = vmax.f32 %v2580_v22, 0.0  ;;  %v3308_v49 = vadd.f32 %v3307_v41, %v3306_v30 }
 0x3f7   : > { %v3309_v15 = vpop.f32.mrf.mxu0 }
 0x3f8   : > { %v2585_v8 = vadd.f32 %v3308_v49, %v4799_v59  ;;  %3403 = vmatprep.mubr.msk.f32.mxu1 %vm2669_vm0, %v2642_v27 }
 0x3f9   : > { %v3310_v34 = vpop.f32.mrf.mxu0 }
 0x3fa   : > { %v2643_v17 = vmax.f32 %v2585_v8, 0.0  ;;  %v3311_v46 = vadd.f32 %v3310_v34, %v3309_v15 }
 0x3fb   : > { %v3312_v52 = vpop.f32.mrf.mxu0 }
 0x3fc   : > { %v2590_v0 = vadd.f32 %v3311_v46, %v4799_v59  ;;  %3404 = vmatmul.mubr.msk.f32.gmra.mxu1 %vm2669_vm0, %v2643_v17 }
 0x3fd   : > { %v3313_v28 = vpop.f32.mrf.mxu0 }
 0x3fe   : > { %v2644_v62 = vmax.f32 %v2590_v0, 0.0  ;;  %v3314_v50 = vadd.f32 %v3313_v28, %v3312_v52 }
 0x3ff   : > { %v3315_v13 = vpop.f32.mrf.mxu0 }
 0x400   : > { %v2595_v36 = vadd.f32 %v3314_v50, %v4799_v59  ;;  %3406 = vmatprep.mubr.msk.f32.mxu1 %vm2669_vm0, %v2644_v62 }
 0x401   : > { %v3316_v32 = vpop.f32.mrf.mxu0 }
 0x402   : > { %v2645_v55 = vmax.f32 %v2595_v36, 0.0  ;;  %v3317_v5 = vadd.f32 %v3316_v32, %v3315_v13 }
 0x403   : > { %v3318_v61 = vpop.f32.mrf.mxu0 }
 0x404   : > { %v2600_v3 = vadd.f32 %v3317_v5, %v4799_v59  ;;  %3407 = vmatmul.mubr.msk.f32.gmra.mxu1 %vm2669_vm0, %v2645_v55 }
 0x405   : > { %v3319_v51 = vpop.f32.mrf.mxu0 }
 0x406   : > { %v2646_v42 = vmax.f32 %v2600_v3, 0.0  ;;  %v3320_v56 = vadd.f32 %v3319_v51, %v3318_v61 }
 0x407   : > { %v3321_v45 = vpop.f32.mrf.mxu0 }
 0x408   : > { %v2605_v20 = vadd.f32 %v3320_v56, %v4799_v59  ;;  %3409 = vmatprep.mubr.msk.f32.mxu1 %vm2669_vm0, %v2646_v42 }
 0x409   : > { %v3322_v48 = vpop.f32.mrf.mxu0 }
 0x40a   : > { %v2647_v4 = vmax.f32 %v2605_v20, 0.0  ;;  %v3323_v11 = vadd.f32 %v3322_v48, %v3321_v45 }
 0x40b   : > { %v3324_v14 = vpop.f32.mrf.mxu0 }
 0x40c   : > { %v2610_v33 = vadd.f32 %v3323_v11, %v4799_v59  ;;  %3410 = vmatmul.mubr.msk.f32.gmra.mxu1 %vm2669_vm0, %v2647_v4 }
 0x40d   : > { %v3325_v12 = vpop.f32.mrf.mxu0 }
 0x40e   : > { %v2648_v60 = vmax.f32 %v2610_v33, 0.0  ;;  %v3326_v47 = vadd.f32 %v3325_v12, %v3324_v14 }
 0x40f   : > { %v3327_v57 = vpop.f32.mrf.mxu0 }
 0x410   : > { %v2615_v26 = vadd.f32 %v3326_v47, %v4799_v59  ;;  %3412 = vmatprep.mubr.msk.f32.mxu1 %vm2669_vm0, %v2648_v60 }
 0x411   : > { %v3328_v21 = vpop.f32.mrf.mxu0 }
 0x412   : > { %v2649_v6 = vmax.f32 %v2615_v26, 0.0  ;;  %v3329_v54 = vadd.f32 %v3328_v21, %v3327_v57 }
 0x413   : > { %v3330_v24 = vpop.f32.mrf.mxu0 }
 0x414   : > { %v2620_v18 = vadd.f32 %v3329_v54, %v4799_v59  ;;  %3413 = vmatmul.mubr.msk.f32.gmra.mxu1 %vm2669_vm0, %v2649_v6 }
 0x415   : > { %v3331_v44 = vpop.f32.mrf.mxu0 }
 0x416   : > { %v2650_v53 = vmax.f32 %v2620_v18, 0.0  ;;  %v3332_v9 = vadd.f32 %v3331_v44, %v3330_v24 }
 0x417   : > { %v3333_v40 = vpop.f32.mrf.mxu0 }
 0x418   : > { %v2625_v2 = vadd.f32 %v3332_v9, %v4799_v59  ;;  %3415 = vmatprep.mubr.msk.f32.mxu1 %vm2669_vm0, %v2650_v53  ;;  %v3236_v9 = vld [vmem:[%s4945_s12] ss:$0 sm:$0xff] }
 0x419   : > { %v3334_v7 = vpop.f32.mrf.mxu0 }
 0x41a   : > { %v2651_v37 = vmax.f32 %v2625_v2, 0.0  ;;  %v3335_v1 = vadd.f32 %v3334_v7, %v3333_v40 }
 0x41b   : > { %v3336_v19 = vpop.f32.mrf.mxu0 }
 0x41c   : > { %v2630_v43 = vadd.f32 %v3335_v1, %v4799_v59  ;;  %3416 = vmatmul.mubr.msk.f32.gmra.mxu1 %vm2669_vm0, %v2651_v37 }
 0x41d   : > { %v3337_v39 = vpop.f32.mrf.mxu0 }
 0x41e   : > { %v2652_v63 = vmax.f32 %v2630_v43, 0.0  ;;  %v3338_v23 = vadd.f32 %v3337_v39, %v3336_v19 }
 0x420   : > { %v2635_v10 = vadd.f32 %v3338_v23, %v4799_v59  ;;  %3418 = vmatprep.mubr.msk.f32.mxu1 %vm2669_vm0, %v2652_v63  ;;  %v3219_v59 = vld [vmem:[%s4943_s10] ss:$0 sm:$0xff] }
 0x422   : > { %v2653_v38 = vmax.f32 %v2635_v10, 0.0 }
 0x424   : > { %3419 = vmatmul.mubr.msk.f32.gmra.mxu1 %vm2669_vm0, %v2653_v38 }
 0x4ac   : > { %v3399_v25 = vpop.f32.mrf.mxu1 }
 0x4ad   : > { %v2790_v29 = vadd.f32 %v3399_v25, %v3219_v59 }
 0x4ae   : > { %v2784_v58 = vpop.f32.mrf.mxu1 }
 0x4af   : > { %v2785_v16 = vadd.f32 %v3219_v59, %v2784_v58  ;;  %v2864_v22 = vmax.f32 %v2790_v29, 0.0 }
 0x4b1   : > { %v2863_v30 = vmax.f32 %v2785_v16, 0.0 }
 0x4b3   : > { %3425 = vmatprep.mubr.msk.f32.mxu1 %vm2888_vm1, %v2863_v30 }
 0x4b4   : > { %v3402_v41 = vpop.f32.mrf.mxu1  ;;  %3426 = vmatmul.mubr.msk.f32.vlgmr.msra.gmra.mxu1 %vm2888_vm1, %v2864_v22 }
 0x4b5   : > { %v2800_v27 = vadd.f32 %v3402_v41, %v3219_v59 }
 0x4b6   : > { %v2794_v49 = vpop.f32.mrf.mxu1 }
 0x4b7   : > { %v2795_v15 = vadd.f32 %v3219_v59, %v2794_v49  ;;  %v2866_v34 = vmax.f32 %v2800_v27, 0.0 }
 0x4b9   : > { %v2865_v8 = vmax.f32 %v2795_v15, 0.0 }
 0x4bb   : > { %3428 = vmatprep.mubr.msk.f32.mxu1 %vm2888_vm1, %v2865_v8 }
 0x4bc   : > { %v3405_v17 = vpop.f32.mrf.mxu1  ;;  %3429 = vmatmul.mubr.msk.f32.gmra.mxu1 %vm2888_vm1, %v2866_v34 }
 0x4bd   : > { %v2810_v46 = vadd.f32 %v3405_v17, %v3219_v59 }
 0x4be   : > { %v2804_v52 = vpop.f32.mrf.mxu1 }
 0x4bf   : > { %v2805_v0 = vadd.f32 %v3219_v59, %v2804_v52  ;;  %v2868_v62 = vmax.f32 %v2810_v46, 0.0 }
 0x4c1   : > { %v2867_v28 = vmax.f32 %v2805_v0, 0.0 }
 0x4c3   : > { %3431 = vmatprep.mubr.msk.f32.mxu1 %vm2888_vm1, %v2867_v28 }
 0x4c4   : > { %v3408_v50 = vpop.f32.mrf.mxu1  ;;  %3432 = vmatmul.mubr.msk.f32.gmra.mxu1 %vm2888_vm1, %v2868_v62 }
 0x4c5   : > { %v2820_v13 = vadd.f32 %v3408_v50, %v3219_v59 }
 0x4c6   : > { %v2814_v36 = vpop.f32.mrf.mxu1 }
 0x4c7   : > { %v2815_v32 = vadd.f32 %v3219_v59, %v2814_v36  ;;  %v2870_v5 = vmax.f32 %v2820_v13, 0.0 }
 0x4c9   : > { %v2869_v55 = vmax.f32 %v2815_v32, 0.0 }
 0x4cb   : > { %3434 = vmatprep.mubr.msk.f32.mxu1 %vm2888_vm1, %v2869_v55 }
 0x4cc   : > { %v3411_v61 = vpop.f32.mrf.mxu1  ;;  %3435 = vmatmul.mubr.msk.f32.gmra.mxu1 %vm2888_vm1, %v2870_v5 }
 0x4cd   : > { %v2830_v3 = vadd.f32 %v3411_v61, %v3219_v59 }
 0x4ce   : > { %v2824_v51 = vpop.f32.mrf.mxu1 }
 0x4cf   : > { %v2825_v42 = vadd.f32 %v3219_v59, %v2824_v51  ;;  %v2872_v45 = vmax.f32 %v2830_v3, 0.0 }
 0x4d1   : > { %v2871_v56 = vmax.f32 %v2825_v42, 0.0 }
 0x4d3   : > { %3437 = vmatprep.mubr.msk.f32.mxu1 %vm2888_vm1, %v2871_v56 }
 0x4d4   : > { %v3414_v20 = vpop.f32.mrf.mxu1  ;;  %3438 = vmatmul.mubr.msk.f32.gmra.mxu1 %vm2888_vm1, %v2872_v45 }
 0x4d5   : > { %v2840_v48 = vadd.f32 %v3414_v20, %v3219_v59 }
 0x4d6   : > { %v2834_v4 = vpop.f32.mrf.mxu1 }
 0x4d7   : > { %v2835_v11 = vadd.f32 %v3219_v59, %v2834_v4  ;;  %v2874_v33 = vmax.f32 %v2840_v48, 0.0 }
 0x4d9   : > { %v2873_v14 = vmax.f32 %v2835_v11, 0.0 }
 0x4db   : > { %3440 = vmatprep.mubr.msk.f32.mxu1 %vm2888_vm1, %v2873_v14 }
 0x4dc   : > { %v3417_v12 = vpop.f32.mrf.mxu1  ;;  %3441 = vmatmul.mubr.msk.f32.gmra.mxu1 %vm2888_vm1, %v2874_v33 }
 0x4dd   : > { %v2850_v60 = vadd.f32 %v3417_v12, %v3219_v59 }
 0x4de   : > { %v2844_v47 = vpop.f32.mrf.mxu1 }
 0x4df   : > { %v2845_v57 = vadd.f32 %v3219_v59, %v2844_v47  ;;  %v2876_v21 = vmax.f32 %v2850_v60, 0.0 }
 0x4e1   : > { %v2875_v26 = vmax.f32 %v2845_v57, 0.0 }
 0x4e3   : > { %3443 = vmatprep.mubr.msk.f32.mxu1 %vm2888_vm1, %v2875_v26 }
 0x4e4   : > { %v3420_v6 = vpop.f32.mrf.mxu1  ;;  %3444 = vmatmul.mubr.msk.f32.gmra.mxu1 %vm2888_vm1, %v2876_v21 }
 0x4e5   : > { %v2860_v54 = vadd.f32 %v3420_v6, %v3219_v59 }
 0x4e6   : > { %v2854_v24 = vpop.f32.mrf.mxu1 }
 0x4e7   : > { %v2855_v18 = vadd.f32 %v3219_v59, %v2854_v24  ;;  %v2878_v53 = vmax.f32 %v2860_v54, 0.0 }
 0x4e9   : > { %v2877_v44 = vmax.f32 %v2855_v18, 0.0 }
 0x4eb   : > { %3446 = vmatprep.mubr.msk.f32.mxu1 %vm2888_vm1, %v2877_v44 }
 0x4ec   : > { %3447 = vmatmul.mubr.msk.f32.gmra.mxu1 %vm2888_vm1, %v2878_v53 }
 0x574   : > { %v3427_v40 = vpop.f32.mrf.mxu1 }
 0x575   : > { %v3009_v2 = vadd.f32 %v3427_v40, %v3236_v9 }
 0x576   : > { %v3003_v7 = vpop.f32.mrf.mxu1 }
 0x577   : > { %3083 = vst [vmem:[%s4864_s14 + $0x8] sm:$0xff] %v3009_v2  ;;  %v3004_v37 = vadd.f32 %v3236_v9, %v3003_v7 }
 0x579   : > { %3082 = vst [vmem:[%s4864_s14] sm:$0xff] %v3004_v37 }
 0x57c   : > { %v3430_v1 = vpop.f32.mrf.mxu1 }
 0x57d   : > { %v3019_v19 = vadd.f32 %v3430_v1, %v3236_v9 }
 0x57e   : > { %v3013_v43 = vpop.f32.mrf.mxu1 }
 0x57f   : > { %3085 = vst [vmem:[%s4864_s14 + $0x18] sm:$0xff] %v3019_v19  ;;  %v3014_v39 = vadd.f32 %v3236_v9, %v3013_v43 }
 0x581   : > { %3084 = vst [vmem:[%s4864_s14 + $0x10] sm:$0xff] %v3014_v39 }
 0x584   : > { %v3433_v63 = vpop.f32.mrf.mxu1 }
 0x585   : > { %v3029_v23 = vadd.f32 %v3433_v63, %v3236_v9 }
 0x586   : > { %v3023_v10 = vpop.f32.mrf.mxu1 }
 0x587   : > { %3087 = vst [vmem:[%s4864_s14 + $0x28] sm:$0xff] %v3029_v23  ;;  %v3024_v38 = vadd.f32 %v3236_v9, %v3023_v10 }
 0x589   : > { %3086 = vst [vmem:[%s4864_s14 + $0x20] sm:$0xff] %v3024_v38 }
 0x58c   : > { %v3436_v35 = vpop.f32.mrf.mxu1 }
 0x58d   : > { %v3039_v31 = vadd.f32 %v3436_v35, %v3236_v9 }
 0x58e   : > { %v3033_v59 = vpop.f32.mrf.mxu1 }
 0x58f   : > { %3089 = vst [vmem:[%s4864_s14 + $0x38] sm:$0xff] %v3039_v31  ;;  %v3034_v25 = vadd.f32 %v3236_v9, %v3033_v59 }
 0x591   : > { %3088 = vst [vmem:[%s4864_s14 + $0x30] sm:$0xff] %v3034_v25 }
 0x594   : > { %v3439_v29 = vpop.f32.mrf.mxu1 }
 0x595   : > { %v3049_v58 = vadd.f32 %v3439_v29, %v3236_v9 }
 0x596   : > { %v3043_v16 = vpop.f32.mrf.mxu1 }
 0x597   : > { %3091 = vst [vmem:[%s4864_s14 + $0x48] sm:$0xff] %v3049_v58  ;;  %v3044_v30 = vadd.f32 %v3236_v9, %v3043_v16 }
 0x599   : > { %3090 = vst [vmem:[%s4864_s14 + $0x40] sm:$0xff] %v3044_v30 }
 0x59c   : > { %v3442_v22 = vpop.f32.mrf.mxu1 }
 0x59d   : > { %v3059_v41 = vadd.f32 %v3442_v22, %v3236_v9 }
 0x59e   : > { %v3053_v27 = vpop.f32.mrf.mxu1 }
 0x59f   : > { %3093 = vst [vmem:[%s4864_s14 + $0x58] sm:$0xff] %v3059_v41  ;;  %v3054_v49 = vadd.f32 %v3236_v9, %v3053_v27 }
 0x5a1   : > { %3092 = vst [vmem:[%s4864_s14 + $0x50] sm:$0xff] %v3054_v49 }
 0x5a4   : > { %v3445_v15 = vpop.f32.mrf.mxu1 }
 0x5a5   : > { %v3069_v8 = vadd.f32 %v3445_v15, %v3236_v9 }
 0x5a6   : > { %v3063_v34 = vpop.f32.mrf.mxu1 }
 0x5a7   : > { %3095 = vst [vmem:[%s4864_s14 + $0x68] sm:$0xff] %v3069_v8  ;;  %v3064_v17 = vadd.f32 %v3236_v9, %v3063_v34 }
 0x5a9   : > { %3094 = vst [vmem:[%s4864_s14 + $0x60] sm:$0xff] %v3064_v17 }
 0x5ac   : > { %v3448_v46 = vpop.f32.mrf.mxu1 }
 0x5ad   : > { %v3079_v52 = vadd.f32 %v3448_v46, %v3236_v9 }
 0x5ae   : > { %v3073_v0 = vpop.f32.mrf.mxu1 }
 0x5af   : > { %3097 = vst [vmem:[%s4864_s14 + $0x78] sm:$0xff] %v3079_v52  ;;  %v3074_v28 = vadd.f32 %v3236_v9, %v3073_v0 }
 0x5b1   : > { %3096 = vst [vmem:[%s4864_s14 + $0x70] sm:$0xff] %v3074_v28 }
 0x5b2   : > { %3617 = shalt.err (!%p3614_p0)
}
 0x5b3   : > { %s3618_s21 = scalar_lea.hbm %s4885_s23, 2048  ;;  %s3622_s22 = scalar_lea.hbm %s4946_s13, 4096 }
 0x5b4   : > { %p3619_p6 = scmp.ne.s32.totalorder %s4885_s23, %s3618_s21  ;;  %p3623_p5 = scmp.lt.s32.totalorder %s4885_s23, %s4946_s13 }
 0x5b5   : > { %p3624_p1 = scmp.lt.s32.totalorder %s3622_s22, %s3618_s21 }
 0x5b6   : > { %p3620_p9 = pnand %p3619_p6, %p5151_p3 }
 0x5b7   : > { %p3625_p10 = por %p3624_p1, %p3623_p5 }
 0x5b8   : > { %p3621_p13 = pneg %p3620_p9 }
 0x5ba   : > { %p3626_p12 = pnand %p3625_p10, %p3621_p13 }
 0x5bc   : > { %3629 = shalt.err (!%p3626_p12)
}
 0x5bd   : > { %s3683_s29 = smov 128   ;;  %s3684_s16 = smov 8  }
 0x5be   : > { %3461 = dma.vmem_to_hbm [thread:$0]  (%p5151_p3), %s4887_s15, 2048, %s4885_s23, %s4893_s30, %s3683_s29, %s3683_s29, %s3684_s16  }
 0x5bf PF: > { %s5152_s24 = sld [smem:[#allocation15_spill]]  ;;  %p3483_p2 = scmp.ge.s32.totalorder %s3672_s28, 2 }
 0x5c0   : > { %s3127_s17 = sand.u32 1, %s3660_s25  }
 0x5c1   : > { %s3128_s21 = scalar_lea.sflag [#allocation4], %s3127_s17 }
 0x5c5   : > { %p5153_p4 = scmp.ne.s32.totalorder %s5152_s24, 0 }
 0x5c7   : > { %p3474_p7 = pnand %p3483_p2, %p5153_p4 }
 0x5c9   : > { %p3475_p8 = pneg %p3474_p7 }
 0x5cb   : > { %3655 = dma.done.wait (%p3475_p8), %s3128_s21, 2048  }
 0x5cc   : > { %3657 = vsyncadd (%p3475_p8), %s3128_s21, 4294965248  ;;  %s5154_s28 = sld [smem:[#allocation13_spill]]  ;;  %s5157_s25 = smov %s3664_s26 }
 0x5cd   : > { %s5155_s27 = sld [smem:[#allocation12_spill]] }
 0x5ce   : > { %s5156_s14 = sld [smem:[#allocation14_spill]] }
 0x5d2   : > { %p25_p11 = scmp.ge.s32.totalorder %s5154_s28, 4  }
 0x5d3   : > { %s5158_s26 = smov %s5155_s27 }
 0x5d4   : > { %s5159_s27 = smov %s5156_s14  ;;  %27 = sbr.rel (!%p25_p11) target bundleno = 5 (0x5), region = 120 }
 0x5d9   :  { %3133 = vsyncpa [#allocation3], 1 }
 0x5da   :  { %3135 = vsyncpa [#allocation3 + $0x1], 1 }
 0x5db   :  { %3136 = vsyncpa [#allocation6], 1 }
 0x5dc   :  { %3137 = vsyncpa [#allocation4], 1 }
 0x5dd   :  { %3139 = vsyncpa [#allocation4 + $0x1], 1 }

</bundles_post_ra>
